<compile_context>
chip_gen: v6e
topology: v6e:2x2x1
jax: 0.10.0
libtpu: 0.0.40
codegen_flags: <defaults>
</compile_context>

<pallas_src>
import functools
import math

import jax
import jax.numpy as jnp
from jax.experimental import pallas as pl
from jax.experimental.pallas import tpu as pltpu


# ---------------------------------------------------------------------------
# helpers (usable both inside kernels and in the pure-JAX reference)
# ---------------------------------------------------------------------------
def _layernorm(x, w, b, eps=1e-5):
    mu = jnp.mean(x, axis=-1, keepdims=True)
    var = jnp.mean((x - mu) ** 2, axis=-1, keepdims=True)
    return (x - mu) * jax.lax.rsqrt(var + eps) * w + b


# ---------------------------------------------------------------------------
# fused forward kernel: one batch element (sequence) per grid step
# ---------------------------------------------------------------------------
def fused_forward_kernel(*refs, seq, num_heads, num_layers):
    """refs layout (weights are full-array VMEM-resident blocks):
      [0]            x       (S, input_dim)   -- one sequence (batch squeezed)
      [1], [2]       emb_w (I, H), emb_b (1, H)
      [3 : 3+12*L]   per-layer params, 12 each:
                     wqkv (H,3H)  bqkv (1,3H)   (1/sqrt(hd) folded into Q part)
                     wo (H,H)     bo (1,H)
                     ln1w ln1b (1,H)
                     w1 (H,FF) bf16  b1 (1,FF)  w2 (FF,H) bf16  b2 (1,H)
                     ln2w ln2b (1,H)
      [3+12*L]       fc_w (H, C)
      [3+12*L+1]     fc_b (1, C)
      [3+12*L+2]     out  (1, C)
    """
    S, nh, L = seq, num_heads, num_layers
    x_ref, emb_w_ref, emb_b_ref = refs[0], refs[1], refs[2]
    n = 3 + 12 * L
    fc_w_ref, fc_b_ref, o_ref = refs[n], refs[n + 1], refs[n + 2]

    # ---- embedding: (S, I) @ (I, H) ----------------------------------------
    h = (jnp.dot(x_ref[...], emb_w_ref[...],
                 preferred_element_type=jnp.float32) + emb_b_ref[...])
    H = h.shape[-1]
    hd = H // nh

    # ---- encoder layers (static unroll, L is small & known) ----------------
    for l in range(L):
        (wqkv_ref, bqkv_ref, wo_ref, bo_ref, ln1w_ref, ln1b_ref,
         w1_ref, b1_ref, w2_ref, b2_ref, ln2w_ref, ln2b_ref) = \
            refs[3 + 12 * l: 3 + 12 * (l + 1)]

        # --- self attention --------------------------------------------------
        # packed projection: ONE (S,H)@(H,3H) MXU matmul (scale folded into Q)
        qkv = (jnp.dot(h, wqkv_ref[...], preferred_element_type=jnp.float32)
               + bqkv_ref[...])                                   # (S, 3H)

        # split into heads only for the score / p@v steps (static lane slices,
        # stacked into a leading head-batch dim)
        def split_heads(off):
            return jnp.stack(
                [qkv[:, off + hh * hd: off + (hh + 1) * hd] for hh in range(nh)],
                axis=0)                                           # (nh, S, hd)

        qh, kh, vh = split_heads(0), split_heads(H), split_heads(2 * H)

        s = jnp.einsum('hqd,hkd->hqk', qh, kh,
                       preferred_element_type=jnp.float32)        # (nh, S, S)
        s = s - jnp.max(s, axis=-1, keepdims=True)
        p = jnp.exp(s)
        p = p * pl.reciprocal(jnp.sum(p, axis=-1, keepdims=True), approx=True)

        a = jnp.einsum('hqk,hkd->hqd', p, vh,
                       preferred_element_type=jnp.float32)        # (nh, S, hd)

        # concat heads back to (S, H) and apply the out-proj as ONE matmul
        a2 = jnp.concatenate([a[hh] for hh in range(nh)], axis=-1)  # (S, H)
        attn = (jnp.dot(a2, wo_ref[...], preferred_element_type=jnp.float32)
                + bo_ref[...])

        # residual + post-LayerNorm (dropout = identity in eval mode)
        h = _layernorm(h + attn, ln1w_ref[...], ln1b_ref[...])

        # --- feed forward: Linear -> ReLU -> Linear (bf16 weights, f32 acc) --
        mid = jnp.maximum(
            jnp.dot(h.astype(jnp.bfloat16), w1_ref[...],
                    preferred_element_type=jnp.float32) + b1_ref[...], 0.0)
        ff = (jnp.dot(mid.astype(jnp.bfloat16), w2_ref[...],
                      preferred_element_type=jnp.float32) + b2_ref[...])
        h = _layernorm(h + ff, ln2w_ref[...], ln2b_ref[...])

    # ---- dropout (identity in eval) -> mean over seq -> fc ------------------
    pooled = jnp.mean(h, axis=0, keepdims=True)                   # (1, H)
    o_ref[...] = (jnp.dot(pooled, fc_w_ref[...],
                          preferred_element_type=jnp.float32) + fc_b_ref[...])


# ---------------------------------------------------------------------------
# wrapper: weight re-layout (pure JAX, done once) + single fused pallas_call
# ---------------------------------------------------------------------------
def prepare_kernel_params(params, num_heads):
    """Fold 1/sqrt(head_dim) into the Q columns of the packed in_proj and cast
    the big FFN weights to bf16 (halves their HBM->VMEM DMA traffic)."""
    (emb_w, emb_b), layers, (fc_w, fc_b) = params
    H = emb_w.shape[1]
    hd = H // num_heads
    scale = 1.0 / math.sqrt(hd)

    flat = []
    for (wqkv, bqkv, wo, bo, ln1w, ln1b, w1, b1, w2, b2, ln2w, ln2b) in layers:
        wqkv_s = jnp.concatenate([wqkv[:, :H] * scale, wqkv[:, H:]], axis=1)
        bqkv_s = jnp.concatenate([bqkv[:, :H] * scale, bqkv[:, H:]], axis=1)
        flat.extend([
            wqkv_s, bqkv_s, wo, bo, ln1w, ln1b,
            w1.astype(jnp.bfloat16), b1, w2.astype(jnp.bfloat16), b2,
            ln2w, ln2b,
        ])
    return (emb_w, emb_b), tuple(flat), (fc_w, fc_b)


def forward(x, params, num_heads):
    (emb_w, emb_b), flat_layers, (fc_w, fc_b) = prepare_kernel_params(
        params, num_heads)
    B, S, I = x.shape
    C = fc_w.shape[1]
    num_layers = len(flat_layers) // 12

    kernel = functools.partial(
        fused_forward_kernel, seq=S, num_heads=num_heads, num_layers=num_layers)

    def resident(a):
        # full-array block with a constant block index: DMA'd once, stays
        # resident in VMEM across all grid steps (~0.7 MiB total here).
        return pl.BlockSpec(a.shape, lambda b, _nd=a.ndim: (0,) * _nd)

    in_specs = ([pl.BlockSpec((None, S, I), lambda b: (b, 0, 0)),
                 resident(emb_w), resident(emb_b)]
                + [resident(a) for a in flat_layers]
                + [resident(fc_w), resident(fc_b)])

    # Grid over batch: on v7x the "parallel" axis shards the two sequences
    # across the two TensorCores; on v5e/v6e it is a cheap sequential loop.
    # TODO(synk): at realistic H / dim_feedforward / num_layers, add an
    # "arbitrary" grid axis over layers with per-layer weight BlockSpecs (so
    # layer l+1 weights prefetch while layer l computes) and set
    # pltpu.CompilerParams(vmem_limit_bytes=...) to stay within v7x's VMEM.
    out = pl.pallas_call(
        kernel,
        grid=(B,),
        in_specs=in_specs,
        out_specs=pl.BlockSpec((None, 1, C), lambda b: (b, 0, 0)),
        out_shape=jax.ShapeDtypeStruct((B, 1, C), jnp.float32),
        compiler_params=pltpu.CompilerParams(
            dimension_semantics=("parallel",)),
    )(x, emb_w, emb_b, *flat_layers, fc_w, fc_b)
    return out.reshape(B, C)


# ---------------------------------------------------------------------------
# deterministic parameter init (synthetic weights, PyTorch shapes transposed)
# ---------------------------------------------------------------------------
def init_params(key, input_dim, hidden_dim, num_layers, num_heads, num_classes,
                ff_dim):
    def dense(k, fan_in, fan_out):
        kw, kb = jax.random.split(k)
        w = jax.random.normal(kw, (fan_in, fan_out), jnp.float32) / math.sqrt(fan_in)
        b = 0.01 * jax.random.normal(kb, (1, fan_out), jnp.float32)
        return w, b

    keys = jax.random.split(key, 2 + num_layers)
    emb_w, emb_b = dense(keys[0], input_dim, hidden_dim)
    fc_w, fc_b = dense(keys[1], hidden_dim, num_classes)

    layers = []
    for l in range(num_layers):
        ks = jax.random.split(keys[2 + l], 4)
        wqkv, bqkv = dense(ks[0], hidden_dim, 3 * hidden_dim)   # in_proj
        wo, bo = dense(ks[1], hidden_dim, hidden_dim)           # out_proj
        ln1w = jnp.ones((1, hidden_dim), jnp.float32)
        ln1b = jnp.zeros((1, hidden_dim), jnp.float32)
        w1, b1 = dense(ks[2], hidden_dim, ff_dim)               # linear1
        w2, b2 = dense(ks[3], ff_dim, hidden_dim)               # linear2
        ln2w = jnp.ones((1, hidden_dim), jnp.float32)
        ln2b = jnp.zeros((1, hidden_dim), jnp.float32)
        layers.append((wqkv, bqkv, wo, bo, ln1w, ln1b,
                       w1, b1, w2, b2, ln2w, ln2b))
    return (emb_w, emb_b), layers, (fc_w, fc_b)


# ---------------------------------------------------------------------------
# pure-JAX reference (same math as the PyTorch module, no Pallas)
# ---------------------------------------------------------------------------
def forward_ref(x, params, num_heads):
    (emb_w, emb_b), layers, (fc_w, fc_b) = params
    h = x @ emb_w + emb_b
    B, S, H = h.shape
    hd = H // num_heads
    for (wqkv, bqkv, wo, bo, ln1w, ln1b, w1, b1, w2, b2, ln2w, ln2b) in layers:
        qkv = h @ wqkv + bqkv
        q, k, v = jnp.split(qkv, 3, axis=-1)
        q = q.reshape(B, S, num_heads, hd).transpose(0, 2, 1, 3)
        k = k.reshape(B, S, num_heads, hd).transpose(0, 2, 1, 3)
        v = v.reshape(B, S, num_heads, hd).transpose(0, 2, 1, 3)
        s = jnp.einsum('bhqd,bhkd->bhqk', q, k) / math.sqrt(hd)
        p = jax.nn.softmax(s, axis=-1)
        a = jnp.einsum('bhqk,bhkd->bhqd', p, v).transpose(0, 2, 1, 3).reshape(B, S, H)
        a = a @ wo + bo
        h1 = _layernorm(h + a, ln1w, ln1b)
        ff = jnp.maximum(h1 @ w1 + b1, 0.0) @ w2 + b2
        h = _layernorm(h1 + ff, ln2w, ln2b)
    pooled = h.mean(axis=1)
    return pooled @ fc_w + fc_b


# ---------------------------------------------------------------------------
if __name__ == "__main__":
    B, S = 2, 8
    INPUT_DIM, HIDDEN_DIM = 16, 32
    NUM_LAYERS, NUM_HEADS, NUM_CLASSES = 2, 4, 5
    FF_DIM = 2048  # nn.TransformerEncoderLayer default dim_feedforward

    key = jax.random.PRNGKey(0)
    kx, kp = jax.random.split(key)

    # one-hot tokens, matching the module docstring ("one-hot input tokens")
    tokens = jax.random.randint(kx, (B, S), 0, INPUT_DIM)
    x = jax.nn.one_hot(tokens, INPUT_DIM, dtype=jnp.float32)   # (B, S, input_dim)

    params = init_params(kp, INPUT_DIM, HIDDEN_DIM, NUM_LAYERS, NUM_HEADS,
                         NUM_CLASSES, FF_DIM)

    out = jax.block_until_ready(forward(x, params, NUM_HEADS))
    assert out.shape == (B, NUM_CLASSES), out.shape

    with jax.default_matmul_precision("highest"):
        ref = jax.block_until_ready(forward_ref(x, params, NUM_HEADS))

    # FFN weights/activations run in bf16 inside the kernel (f32 accumulation),
    # so compare against the f32 reference with a bf16-level tolerance.
    assert jnp.allclose(out, ref, atol=5e-2, rtol=5e-2), (out, ref)

    print("KERNEL_OK")
</pallas_src>

<mosaic_0001>
module attributes {stable_mosaic.version = 11 : i64} {
  func.func @fused_forward_kernel(%arg0: i32, %arg1: memref<1x8x16xf32, #tpu.memory_space<vmem>>, %arg2: memref<16x32xf32, #tpu.memory_space<vmem>>, %arg3: memref<1x32xf32, #tpu.memory_space<vmem>>, %arg4: memref<32x96xf32, #tpu.memory_space<vmem>>, %arg5: memref<1x96xf32, #tpu.memory_space<vmem>>, %arg6: memref<32x32xf32, #tpu.memory_space<vmem>>, %arg7: memref<1x32xf32, #tpu.memory_space<vmem>>, %arg8: memref<1x32xf32, #tpu.memory_space<vmem>>, %arg9: memref<1x32xf32, #tpu.memory_space<vmem>>, %arg10: memref<32x2048xbf16, #tpu.memory_space<vmem>>, %arg11: memref<1x2048xf32, #tpu.memory_space<vmem>>, %arg12: memref<2048x32xbf16, #tpu.memory_space<vmem>>, %arg13: memref<1x32xf32, #tpu.memory_space<vmem>>, %arg14: memref<1x32xf32, #tpu.memory_space<vmem>>, %arg15: memref<1x32xf32, #tpu.memory_space<vmem>>, %arg16: memref<32x96xf32, #tpu.memory_space<vmem>>, %arg17: memref<1x96xf32, #tpu.memory_space<vmem>>, %arg18: memref<32x32xf32, #tpu.memory_space<vmem>>, %arg19: memref<1x32xf32, #tpu.memory_space<vmem>>, %arg20: memref<1x32xf32, #tpu.memory_space<vmem>>, %arg21: memref<1x32xf32, #tpu.memory_space<vmem>>, %arg22: memref<32x2048xbf16, #tpu.memory_space<vmem>>, %arg23: memref<1x2048xf32, #tpu.memory_space<vmem>>, %arg24: memref<2048x32xbf16, #tpu.memory_space<vmem>>, %arg25: memref<1x32xf32, #tpu.memory_space<vmem>>, %arg26: memref<1x32xf32, #tpu.memory_space<vmem>>, %arg27: memref<1x32xf32, #tpu.memory_space<vmem>>, %arg28: memref<32x5xf32, #tpu.memory_space<vmem>>, %arg29: memref<1x5xf32, #tpu.memory_space<vmem>>, %arg30: memref<1x1x5xf32, #tpu.memory_space<vmem>>) attributes {dimension_semantics = [#tpu.dimension_semantics<parallel>], iteration_bounds = array<i64: 2>, scalar_prefetch = 0 : i64, scratch_operands = 0 : i64, tpu.core_type = #tpu.core_type<tc>, window_params = [{transform_indices = @transform_0, window_bounds = array<i64: 1, 8, 16>}, {pipeline_mode = #tpu.pipeline_mode<synchronous>, transform_indices = @transform_1, window_bounds = array<i64: 16, 32>}, {pipeline_mode = #tpu.pipeline_mode<synchronous>, transform_indices = @transform_2, window_bounds = array<i64: 1, 32>}, {pipeline_mode = #tpu.pipeline_mode<synchronous>, transform_indices = @transform_3, window_bounds = array<i64: 32, 96>}, {pipeline_mode = #tpu.pipeline_mode<synchronous>, transform_indices = @transform_4, window_bounds = array<i64: 1, 96>}, {pipeline_mode = #tpu.pipeline_mode<synchronous>, transform_indices = @transform_5, window_bounds = array<i64: 32, 32>}, {pipeline_mode = #tpu.pipeline_mode<synchronous>, transform_indices = @transform_6, window_bounds = array<i64: 1, 32>}, {pipeline_mode = #tpu.pipeline_mode<synchronous>, transform_indices = @transform_7, window_bounds = array<i64: 1, 32>}, {pipeline_mode = #tpu.pipeline_mode<synchronous>, transform_indices = @transform_8, window_bounds = array<i64: 1, 32>}, {pipeline_mode = #tpu.pipeline_mode<synchronous>, transform_indices = @transform_9, window_bounds = array<i64: 32, 2048>}, {pipeline_mode = #tpu.pipeline_mode<synchronous>, transform_indices = @transform_10, window_bounds = array<i64: 1, 2048>}, {pipeline_mode = #tpu.pipeline_mode<synchronous>, transform_indices = @transform_11, window_bounds = array<i64: 2048, 32>}, {pipeline_mode = #tpu.pipeline_mode<synchronous>, transform_indices = @transform_12, window_bounds = array<i64: 1, 32>}, {pipeline_mode = #tpu.pipeline_mode<synchronous>, transform_indices = @transform_13, window_bounds = array<i64: 1, 32>}, {pipeline_mode = #tpu.pipeline_mode<synchronous>, transform_indices = @transform_14, window_bounds = array<i64: 1, 32>}, {pipeline_mode = #tpu.pipeline_mode<synchronous>, transform_indices = @transform_15, window_bounds = array<i64: 32, 96>}, {pipeline_mode = #tpu.pipeline_mode<synchronous>, transform_indices = @transform_16, window_bounds = array<i64: 1, 96>}, {pipeline_mode = #tpu.pipeline_mode<synchronous>, transform_indices = @transform_17, window_bounds = array<i64: 32, 32>}, {pipeline_mode = #tpu.pipeline_mode<synchronous>, transform_indices = @transform_18, window_bounds = array<i64: 1, 32>}, {pipeline_mode = #tpu.pipeline_mode<synchronous>, transform_indices = @transform_19, window_bounds = array<i64: 1, 32>}, {pipeline_mode = #tpu.pipeline_mode<synchronous>, transform_indices = @transform_20, window_bounds = array<i64: 1, 32>}, {pipeline_mode = #tpu.pipeline_mode<synchronous>, transform_indices = @transform_21, window_bounds = array<i64: 32, 2048>}, {pipeline_mode = #tpu.pipeline_mode<synchronous>, transform_indices = @transform_22, window_bounds = array<i64: 1, 2048>}, {pipeline_mode = #tpu.pipeline_mode<synchronous>, transform_indices = @transform_23, window_bounds = array<i64: 2048, 32>}, {pipeline_mode = #tpu.pipeline_mode<synchronous>, transform_indices = @transform_24, window_bounds = array<i64: 1, 32>}, {pipeline_mode = #tpu.pipeline_mode<synchronous>, transform_indices = @transform_25, window_bounds = array<i64: 1, 32>}, {pipeline_mode = #tpu.pipeline_mode<synchronous>, transform_indices = @transform_26, window_bounds = array<i64: 1, 32>}, {pipeline_mode = #tpu.pipeline_mode<synchronous>, transform_indices = @transform_27, window_bounds = array<i64: 32, 5>}, {pipeline_mode = #tpu.pipeline_mode<synchronous>, transform_indices = @transform_28, window_bounds = array<i64: 1, 5>}, {transform_indices = @transform_29, window_bounds = array<i64: 1, 1, 5>}]} {
    %c0 = arith.constant 0 : index
    %c0_0 = arith.constant 0 : index
    %c0_1 = arith.constant 0 : index
    %0 = vector.load %arg1[%c0, %c0_0, %c0_1] : memref<1x8x16xf32, #tpu.memory_space<vmem>>, vector<1x8x16xf32>
    %1 = vector.shape_cast %0 : vector<1x8x16xf32> to vector<8x16xf32>
    %c0_2 = arith.constant 0 : index
    %c0_3 = arith.constant 0 : index
    %2 = vector.load %arg2[%c0_2, %c0_3] : memref<16x32xf32, #tpu.memory_space<vmem>>, vector<16x32xf32>
    %cst = arith.constant dense<0.000000e+00> : vector<8x32xf32>
    %3 = tpu.matmul %1, %2, %cst {dimension_numbers = #tpu.dot_dimension_numbers<[1], [0], [0], [1], [0, 0, 1, 1], [], []>} : vector<8x16xf32>, vector<16x32xf32>, vector<8x32xf32> -> vector<8x32xf32>
    %c0_4 = arith.constant 0 : index
    %c0_5 = arith.constant 0 : index
    %4 = vector.load %arg3[%c0_4, %c0_5] : memref<1x32xf32, #tpu.memory_space<vmem>>, vector<1x32xf32>
    %5 = vector.broadcast %4 : vector<1x32xf32> to vector<8x32xf32>
    %6 = arith.addf %3, %5 : vector<8x32xf32>
    %c0_6 = arith.constant 0 : index
    %c0_7 = arith.constant 0 : index
    %7 = vector.load %arg4[%c0_6, %c0_7] : memref<32x96xf32, #tpu.memory_space<vmem>>, vector<32x96xf32>
    %cst_8 = arith.constant dense<0.000000e+00> : vector<8x96xf32>
    %8 = tpu.matmul %6, %7, %cst_8 {dimension_numbers = #tpu.dot_dimension_numbers<[1], [0], [0], [1], [0, 0, 1, 1], [], []>} : vector<8x32xf32>, vector<32x96xf32>, vector<8x96xf32> -> vector<8x96xf32>
    %c0_9 = arith.constant 0 : index
    %c0_10 = arith.constant 0 : index
    %9 = vector.load %arg5[%c0_9, %c0_10] : memref<1x96xf32, #tpu.memory_space<vmem>>, vector<1x96xf32>
    %10 = vector.broadcast %9 : vector<1x96xf32> to vector<8x96xf32>
    %11 = arith.addf %8, %10 : vector<8x96xf32>
    %12 = vector.extract_strided_slice %11 {offsets = [0, 0], sizes = [8, 8], strides = [1, 1]} : vector<8x96xf32> to vector<8x8xf32>
    %13 = vector.extract_strided_slice %11 {offsets = [0, 8], sizes = [8, 8], strides = [1, 1]} : vector<8x96xf32> to vector<8x8xf32>
    %14 = vector.extract_strided_slice %11 {offsets = [0, 16], sizes = [8, 8], strides = [1, 1]} : vector<8x96xf32> to vector<8x8xf32>
    %15 = vector.extract_strided_slice %11 {offsets = [0, 24], sizes = [8, 8], strides = [1, 1]} : vector<8x96xf32> to vector<8x8xf32>
    %16 = vector.shape_cast %12 : vector<8x8xf32> to vector<1x8x8xf32>
    %17 = vector.shape_cast %13 : vector<8x8xf32> to vector<1x8x8xf32>
    %18 = vector.shape_cast %14 : vector<8x8xf32> to vector<1x8x8xf32>
    %19 = vector.shape_cast %15 : vector<8x8xf32> to vector<1x8x8xf32>
    %20 = tpu.concatenate %16, %17, %18, %19 in 0 : vector<1x8x8xf32>, vector<1x8x8xf32>, vector<1x8x8xf32>, vector<1x8x8xf32> -> vector<4x8x8xf32>
    %21 = vector.extract_strided_slice %11 {offsets = [0, 32], sizes = [8, 8], strides = [1, 1]} : vector<8x96xf32> to vector<8x8xf32>
    %22 = vector.extract_strided_slice %11 {offsets = [0, 40], sizes = [8, 8], strides = [1, 1]} : vector<8x96xf32> to vector<8x8xf32>
    %23 = vector.extract_strided_slice %11 {offsets = [0, 48], sizes = [8, 8], strides = [1, 1]} : vector<8x96xf32> to vector<8x8xf32>
    %24 = vector.extract_strided_slice %11 {offsets = [0, 56], sizes = [8, 8], strides = [1, 1]} : vector<8x96xf32> to vector<8x8xf32>
    %25 = vector.shape_cast %21 : vector<8x8xf32> to vector<1x8x8xf32>
    %26 = vector.shape_cast %22 : vector<8x8xf32> to vector<1x8x8xf32>
    %27 = vector.shape_cast %23 : vector<8x8xf32> to vector<1x8x8xf32>
    %28 = vector.shape_cast %24 : vector<8x8xf32> to vector<1x8x8xf32>
    %29 = tpu.concatenate %25, %26, %27, %28 in 0 : vector<1x8x8xf32>, vector<1x8x8xf32>, vector<1x8x8xf32>, vector<1x8x8xf32> -> vector<4x8x8xf32>
    %30 = vector.extract_strided_slice %11 {offsets = [0, 64], sizes = [8, 8], strides = [1, 1]} : vector<8x96xf32> to vector<8x8xf32>
    %31 = vector.extract_strided_slice %11 {offsets = [0, 72], sizes = [8, 8], strides = [1, 1]} : vector<8x96xf32> to vector<8x8xf32>
    %32 = vector.extract_strided_slice %11 {offsets = [0, 80], sizes = [8, 8], strides = [1, 1]} : vector<8x96xf32> to vector<8x8xf32>
    %33 = vector.extract_strided_slice %11 {offsets = [0, 88], sizes = [8, 8], strides = [1, 1]} : vector<8x96xf32> to vector<8x8xf32>
    %34 = vector.shape_cast %30 : vector<8x8xf32> to vector<1x8x8xf32>
    %35 = vector.shape_cast %31 : vector<8x8xf32> to vector<1x8x8xf32>
    %36 = vector.shape_cast %32 : vector<8x8xf32> to vector<1x8x8xf32>
    %37 = vector.shape_cast %33 : vector<8x8xf32> to vector<1x8x8xf32>
    %38 = tpu.concatenate %34, %35, %36, %37 in 0 : vector<1x8x8xf32>, vector<1x8x8xf32>, vector<1x8x8xf32>, vector<1x8x8xf32> -> vector<4x8x8xf32>
    "tpu.trace_start"() <{level = 10 : i32, message = "hqd,hkd->hqk"}> : () -> ()
    %cst_11 = arith.constant dense<0.000000e+00> : vector<4x8x8xf32>
    %39 = tpu.matmul %20, %29, %cst_11 {dimension_numbers = #tpu.dot_dimension_numbers<[2], [2], [1], [1], [0, 0, 0, 1, 1, 1], [0], [0]>} : vector<4x8x8xf32>, vector<4x8x8xf32>, vector<4x8x8xf32> -> vector<4x8x8xf32>
    "tpu.trace_stop"() : () -> ()
    %cst_12 = arith.constant dense<0xFF800000> : vector<4x8xf32>
    %40 = vector.multi_reduction <maximumf>, %39, %cst_12 [2] : vector<4x8x8xf32> to vector<4x8xf32>
    %41 = vector.shape_cast %40 : vector<4x8xf32> to vector<4x8x1xf32>
    %42 = vector.broadcast %41 : vector<4x8x1xf32> to vector<4x8x8xf32>
    %43 = arith.subf %39, %42 : vector<4x8x8xf32>
    %44 = math.exp %43 : vector<4x8x8xf32>
    %cst_13 = arith.constant dense<0.000000e+00> : vector<4x8xf32>
    %45 = vector.multi_reduction <add>, %44, %cst_13 [2] : vector<4x8x8xf32> to vector<4x8xf32>
    %46 = vector.shape_cast %45 : vector<4x8xf32> to vector<4x8x1xf32>
    %47 = tpu.reciprocal %46 {approx = true} : vector<4x8x1xf32> -> vector<4x8x1xf32>
    %48 = vector.broadcast %47 : vector<4x8x1xf32> to vector<4x8x8xf32>
    %49 = arith.mulf %44, %48 : vector<4x8x8xf32>
    "tpu.trace_start"() <{level = 10 : i32, message = "hqk,hkd->hqd"}> : () -> ()
    %cst_14 = arith.constant dense<0.000000e+00> : vector<4x8x8xf32>
    %50 = tpu.matmul %49, %38, %cst_14 {dimension_numbers = #tpu.dot_dimension_numbers<[2], [1], [1], [2], [0, 0, 0, 1, 1, 2], [0], [0]>} : vector<4x8x8xf32>, vector<4x8x8xf32>, vector<4x8x8xf32> -> vector<4x8x8xf32>
    "tpu.trace_stop"() : () -> ()
    %51 = vector.extract_strided_slice %50 {offsets = [0, 0, 0], sizes = [1, 8, 8], strides = [1, 1, 1]} : vector<4x8x8xf32> to vector<1x8x8xf32>
    %52 = vector.shape_cast %51 : vector<1x8x8xf32> to vector<8x8xf32>
    %53 = vector.extract_strided_slice %50 {offsets = [1, 0, 0], sizes = [1, 8, 8], strides = [1, 1, 1]} : vector<4x8x8xf32> to vector<1x8x8xf32>
    %54 = vector.shape_cast %53 : vector<1x8x8xf32> to vector<8x8xf32>
    %55 = vector.extract_strided_slice %50 {offsets = [2, 0, 0], sizes = [1, 8, 8], strides = [1, 1, 1]} : vector<4x8x8xf32> to vector<1x8x8xf32>
    %56 = vector.shape_cast %55 : vector<1x8x8xf32> to vector<8x8xf32>
    %57 = vector.extract_strided_slice %50 {offsets = [3, 0, 0], sizes = [1, 8, 8], strides = [1, 1, 1]} : vector<4x8x8xf32> to vector<1x8x8xf32>
    %58 = vector.shape_cast %57 : vector<1x8x8xf32> to vector<8x8xf32>
    %59 = tpu.concatenate %52, %54, %56, %58 in 1 : vector<8x8xf32>, vector<8x8xf32>, vector<8x8xf32>, vector<8x8xf32> -> vector<8x32xf32>
    %c0_15 = arith.constant 0 : index
    %c0_16 = arith.constant 0 : index
    %60 = vector.load %arg6[%c0_15, %c0_16] : memref<32x32xf32, #tpu.memory_space<vmem>>, vector<32x32xf32>
    %cst_17 = arith.constant dense<0.000000e+00> : vector<8x32xf32>
    %61 = tpu.matmul %59, %60, %cst_17 {dimension_numbers = #tpu.dot_dimension_numbers<[1], [0], [0], [1], [0, 0, 1, 1], [], []>} : vector<8x32xf32>, vector<32x32xf32>, vector<8x32xf32> -> vector<8x32xf32>
    %c0_18 = arith.constant 0 : index
    %c0_19 = arith.constant 0 : index
    %62 = vector.load %arg7[%c0_18, %c0_19] : memref<1x32xf32, #tpu.memory_space<vmem>>, vector<1x32xf32>
    %63 = vector.broadcast %62 : vector<1x32xf32> to vector<8x32xf32>
    %64 = arith.addf %61, %63 : vector<8x32xf32>
    %65 = arith.addf %6, %64 : vector<8x32xf32>
    %c0_20 = arith.constant 0 : index
    %c0_21 = arith.constant 0 : index
    %66 = vector.load %arg8[%c0_20, %c0_21] : memref<1x32xf32, #tpu.memory_space<vmem>>, vector<1x32xf32>
    %c0_22 = arith.constant 0 : index
    %c0_23 = arith.constant 0 : index
    %67 = vector.load %arg9[%c0_22, %c0_23] : memref<1x32xf32, #tpu.memory_space<vmem>>, vector<1x32xf32>
    %cst_24 = arith.constant dense<0.000000e+00> : vector<8xf32>
    %68 = vector.multi_reduction <add>, %65, %cst_24 [1] : vector<8x32xf32> to vector<8xf32>
    %69 = vector.shape_cast %68 : vector<8xf32> to vector<8x1xf32>
    %cst_25 = arith.constant 3.200000e+01 : f32
    %70 = vector.broadcast %cst_25 : f32 to vector<8x1xf32>
    %71 = arith.divf %69, %70 : vector<8x1xf32>
    %72 = vector.broadcast %71 : vector<8x1xf32> to vector<8x32xf32>
    %73 = arith.subf %65, %72 : vector<8x32xf32>
    %74 = arith.mulf %73, %73 : vector<8x32xf32>
    %cst_26 = arith.constant dense<0.000000e+00> : vector<8xf32>
    %75 = vector.multi_reduction <add>, %74, %cst_26 [1] : vector<8x32xf32> to vector<8xf32>
    %76 = vector.shape_cast %75 : vector<8xf32> to vector<8x1xf32>
    %cst_27 = arith.constant 3.200000e+01 : f32
    %77 = vector.broadcast %cst_27 : f32 to vector<8x1xf32>
    %78 = arith.divf %76, %77 : vector<8x1xf32>
    %79 = vector.broadcast %71 : vector<8x1xf32> to vector<8x32xf32>
    %80 = arith.subf %65, %79 : vector<8x32xf32>
    %cst_28 = arith.constant 9.99999974E-6 : f32
    %81 = vector.broadcast %cst_28 : f32 to vector<8x1xf32>
    %82 = arith.addf %78, %81 : vector<8x1xf32>
    %83 = math.rsqrt %82 : vector<8x1xf32>
    %84 = vector.broadcast %83 : vector<8x1xf32> to vector<8x32xf32>
    %85 = arith.mulf %80, %84 : vector<8x32xf32>
    %86 = vector.broadcast %66 : vector<1x32xf32> to vector<8x32xf32>
    %87 = arith.mulf %85, %86 : vector<8x32xf32>
    %88 = vector.broadcast %67 : vector<1x32xf32> to vector<8x32xf32>
    %89 = arith.addf %87, %88 : vector<8x32xf32>
    %90 = arith.truncf %89 : vector<8x32xf32> to vector<8x32xbf16>
    %c0_29 = arith.constant 0 : index
    %c0_30 = arith.constant 0 : index
    %91 = vector.load %arg10[%c0_29, %c0_30] : memref<32x2048xbf16, #tpu.memory_space<vmem>>, vector<32x2048xbf16>
    %cst_31 = arith.constant dense<0.000000e+00> : vector<8x2048xf32>
    %92 = tpu.matmul %90, %91, %cst_31 {dimension_numbers = #tpu.dot_dimension_numbers<[1], [0], [0], [1], [0, 0, 1, 1], [], []>} : vector<8x32xbf16>, vector<32x2048xbf16>, vector<8x2048xf32> -> vector<8x2048xf32>
    %c0_32 = arith.constant 0 : index
    %c0_33 = arith.constant 0 : index
    %93 = vector.load %arg11[%c0_32, %c0_33] : memref<1x2048xf32, #tpu.memory_space<vmem>>, vector<1x2048xf32>
    %94 = vector.broadcast %93 : vector<1x2048xf32> to vector<8x2048xf32>
    %95 = arith.addf %92, %94 : vector<8x2048xf32>
    %cst_34 = arith.constant 0.000000e+00 : f32
    %96 = vector.broadcast %cst_34 : f32 to vector<8x2048xf32>
    %97 = arith.maximumf %95, %96 : vector<8x2048xf32>
    %98 = arith.truncf %97 : vector<8x2048xf32> to vector<8x2048xbf16>
    %c0_35 = arith.constant 0 : index
    %c0_36 = arith.constant 0 : index
    %99 = vector.load %arg12[%c0_35, %c0_36] : memref<2048x32xbf16, #tpu.memory_space<vmem>>, vector<2048x32xbf16>
    %cst_37 = arith.constant dense<0.000000e+00> : vector<8x32xf32>
    %100 = tpu.matmul %98, %99, %cst_37 {dimension_numbers = #tpu.dot_dimension_numbers<[1], [0], [0], [1], [0, 0, 1, 1], [], []>} : vector<8x2048xbf16>, vector<2048x32xbf16>, vector<8x32xf32> -> vector<8x32xf32>
    %c0_38 = arith.constant 0 : index
    %c0_39 = arith.constant 0 : index
    %101 = vector.load %arg13[%c0_38, %c0_39] : memref<1x32xf32, #tpu.memory_space<vmem>>, vector<1x32xf32>
    %102 = vector.broadcast %101 : vector<1x32xf32> to vector<8x32xf32>
    %103 = arith.addf %100, %102 : vector<8x32xf32>
    %104 = arith.addf %89, %103 : vector<8x32xf32>
    %c0_40 = arith.constant 0 : index
    %c0_41 = arith.constant 0 : index
    %105 = vector.load %arg14[%c0_40, %c0_41] : memref<1x32xf32, #tpu.memory_space<vmem>>, vector<1x32xf32>
    %c0_42 = arith.constant 0 : index
    %c0_43 = arith.constant 0 : index
    %106 = vector.load %arg15[%c0_42, %c0_43] : memref<1x32xf32, #tpu.memory_space<vmem>>, vector<1x32xf32>
    %cst_44 = arith.constant dense<0.000000e+00> : vector<8xf32>
    %107 = vector.multi_reduction <add>, %104, %cst_44 [1] : vector<8x32xf32> to vector<8xf32>
    %108 = vector.shape_cast %107 : vector<8xf32> to vector<8x1xf32>
    %cst_45 = arith.constant 3.200000e+01 : f32
    %109 = vector.broadcast %cst_45 : f32 to vector<8x1xf32>
    %110 = arith.divf %108, %109 : vector<8x1xf32>
    %111 = vector.broadcast %110 : vector<8x1xf32> to vector<8x32xf32>
    %112 = arith.subf %104, %111 : vector<8x32xf32>
    %113 = arith.mulf %112, %112 : vector<8x32xf32>
    %cst_46 = arith.constant dense<0.000000e+00> : vector<8xf32>
    %114 = vector.multi_reduction <add>, %113, %cst_46 [1] : vector<8x32xf32> to vector<8xf32>
    %115 = vector.shape_cast %114 : vector<8xf32> to vector<8x1xf32>
    %cst_47 = arith.constant 3.200000e+01 : f32
    %116 = vector.broadcast %cst_47 : f32 to vector<8x1xf32>
    %117 = arith.divf %115, %116 : vector<8x1xf32>
    %118 = vector.broadcast %110 : vector<8x1xf32> to vector<8x32xf32>
    %119 = arith.subf %104, %118 : vector<8x32xf32>
    %cst_48 = arith.constant 9.99999974E-6 : f32
    %120 = vector.broadcast %cst_48 : f32 to vector<8x1xf32>
    %121 = arith.addf %117, %120 : vector<8x1xf32>
    %122 = math.rsqrt %121 : vector<8x1xf32>
    %123 = vector.broadcast %122 : vector<8x1xf32> to vector<8x32xf32>
    %124 = arith.mulf %119, %123 : vector<8x32xf32>
    %125 = vector.broadcast %105 : vector<1x32xf32> to vector<8x32xf32>
    %126 = arith.mulf %124, %125 : vector<8x32xf32>
    %127 = vector.broadcast %106 : vector<1x32xf32> to vector<8x32xf32>
    %128 = arith.addf %126, %127 : vector<8x32xf32>
    %c0_49 = arith.constant 0 : index
    %c0_50 = arith.constant 0 : index
    %129 = vector.load %arg16[%c0_49, %c0_50] : memref<32x96xf32, #tpu.memory_space<vmem>>, vector<32x96xf32>
    %cst_51 = arith.constant dense<0.000000e+00> : vector<8x96xf32>
    %130 = tpu.matmul %128, %129, %cst_51 {dimension_numbers = #tpu.dot_dimension_numbers<[1], [0], [0], [1], [0, 0, 1, 1], [], []>} : vector<8x32xf32>, vector<32x96xf32>, vector<8x96xf32> -> vector<8x96xf32>
    %c0_52 = arith.constant 0 : index
    %c0_53 = arith.constant 0 : index
    %131 = vector.load %arg17[%c0_52, %c0_53] : memref<1x96xf32, #tpu.memory_space<vmem>>, vector<1x96xf32>
    %132 = vector.broadcast %131 : vector<1x96xf32> to vector<8x96xf32>
    %133 = arith.addf %130, %132 : vector<8x96xf32>
    %134 = vector.extract_strided_slice %133 {offsets = [0, 0], sizes = [8, 8], strides = [1, 1]} : vector<8x96xf32> to vector<8x8xf32>
    %135 = vector.extract_strided_slice %133 {offsets = [0, 8], sizes = [8, 8], strides = [1, 1]} : vector<8x96xf32> to vector<8x8xf32>
    %136 = vector.extract_strided_slice %133 {offsets = [0, 16], sizes = [8, 8], strides = [1, 1]} : vector<8x96xf32> to vector<8x8xf32>
    %137 = vector.extract_strided_slice %133 {offsets = [0, 24], sizes = [8, 8], strides = [1, 1]} : vector<8x96xf32> to vector<8x8xf32>
    %138 = vector.shape_cast %134 : vector<8x8xf32> to vector<1x8x8xf32>
    %139 = vector.shape_cast %135 : vector<8x8xf32> to vector<1x8x8xf32>
    %140 = vector.shape_cast %136 : vector<8x8xf32> to vector<1x8x8xf32>
    %141 = vector.shape_cast %137 : vector<8x8xf32> to vector<1x8x8xf32>
    %142 = tpu.concatenate %138, %139, %140, %141 in 0 : vector<1x8x8xf32>, vector<1x8x8xf32>, vector<1x8x8xf32>, vector<1x8x8xf32> -> vector<4x8x8xf32>
    %143 = vector.extract_strided_slice %133 {offsets = [0, 32], sizes = [8, 8], strides = [1, 1]} : vector<8x96xf32> to vector<8x8xf32>
    %144 = vector.extract_strided_slice %133 {offsets = [0, 40], sizes = [8, 8], strides = [1, 1]} : vector<8x96xf32> to vector<8x8xf32>
    %145 = vector.extract_strided_slice %133 {offsets = [0, 48], sizes = [8, 8], strides = [1, 1]} : vector<8x96xf32> to vector<8x8xf32>
    %146 = vector.extract_strided_slice %133 {offsets = [0, 56], sizes = [8, 8], strides = [1, 1]} : vector<8x96xf32> to vector<8x8xf32>
    %147 = vector.shape_cast %143 : vector<8x8xf32> to vector<1x8x8xf32>
    %148 = vector.shape_cast %144 : vector<8x8xf32> to vector<1x8x8xf32>
    %149 = vector.shape_cast %145 : vector<8x8xf32> to vector<1x8x8xf32>
    %150 = vector.shape_cast %146 : vector<8x8xf32> to vector<1x8x8xf32>
    %151 = tpu.concatenate %147, %148, %149, %150 in 0 : vector<1x8x8xf32>, vector<1x8x8xf32>, vector<1x8x8xf32>, vector<1x8x8xf32> -> vector<4x8x8xf32>
    %152 = vector.extract_strided_slice %133 {offsets = [0, 64], sizes = [8, 8], strides = [1, 1]} : vector<8x96xf32> to vector<8x8xf32>
    %153 = vector.extract_strided_slice %133 {offsets = [0, 72], sizes = [8, 8], strides = [1, 1]} : vector<8x96xf32> to vector<8x8xf32>
    %154 = vector.extract_strided_slice %133 {offsets = [0, 80], sizes = [8, 8], strides = [1, 1]} : vector<8x96xf32> to vector<8x8xf32>
    %155 = vector.extract_strided_slice %133 {offsets = [0, 88], sizes = [8, 8], strides = [1, 1]} : vector<8x96xf32> to vector<8x8xf32>
    %156 = vector.shape_cast %152 : vector<8x8xf32> to vector<1x8x8xf32>
    %157 = vector.shape_cast %153 : vector<8x8xf32> to vector<1x8x8xf32>
    %158 = vector.shape_cast %154 : vector<8x8xf32> to vector<1x8x8xf32>
    %159 = vector.shape_cast %155 : vector<8x8xf32> to vector<1x8x8xf32>
    %160 = tpu.concatenate %156, %157, %158, %159 in 0 : vector<1x8x8xf32>, vector<1x8x8xf32>, vector<1x8x8xf32>, vector<1x8x8xf32> -> vector<4x8x8xf32>
    "tpu.trace_start"() <{level = 10 : i32, message = "hqd,hkd->hqk"}> : () -> ()
    %cst_54 = arith.constant dense<0.000000e+00> : vector<4x8x8xf32>
    %161 = tpu.matmul %142, %151, %cst_54 {dimension_numbers = #tpu.dot_dimension_numbers<[2], [2], [1], [1], [0, 0, 0, 1, 1, 1], [0], [0]>} : vector<4x8x8xf32>, vector<4x8x8xf32>, vector<4x8x8xf32> -> vector<4x8x8xf32>
    "tpu.trace_stop"() : () -> ()
    %cst_55 = arith.constant dense<0xFF800000> : vector<4x8xf32>
    %162 = vector.multi_reduction <maximumf>, %161, %cst_55 [2] : vector<4x8x8xf32> to vector<4x8xf32>
    %163 = vector.shape_cast %162 : vector<4x8xf32> to vector<4x8x1xf32>
    %164 = vector.broadcast %163 : vector<4x8x1xf32> to vector<4x8x8xf32>
    %165 = arith.subf %161, %164 : vector<4x8x8xf32>
    %166 = math.exp %165 : vector<4x8x8xf32>
    %cst_56 = arith.constant dense<0.000000e+00> : vector<4x8xf32>
    %167 = vector.multi_reduction <add>, %166, %cst_56 [2] : vector<4x8x8xf32> to vector<4x8xf32>
    %168 = vector.shape_cast %167 : vector<4x8xf32> to vector<4x8x1xf32>
    %169 = tpu.reciprocal %168 {approx = true} : vector<4x8x1xf32> -> vector<4x8x1xf32>
    %170 = vector.broadcast %169 : vector<4x8x1xf32> to vector<4x8x8xf32>
    %171 = arith.mulf %166, %170 : vector<4x8x8xf32>
    "tpu.trace_start"() <{level = 10 : i32, message = "hqk,hkd->hqd"}> : () -> ()
    %cst_57 = arith.constant dense<0.000000e+00> : vector<4x8x8xf32>
    %172 = tpu.matmul %171, %160, %cst_57 {dimension_numbers = #tpu.dot_dimension_numbers<[2], [1], [1], [2], [0, 0, 0, 1, 1, 2], [0], [0]>} : vector<4x8x8xf32>, vector<4x8x8xf32>, vector<4x8x8xf32> -> vector<4x8x8xf32>
    "tpu.trace_stop"() : () -> ()
    %173 = vector.extract_strided_slice %172 {offsets = [0, 0, 0], sizes = [1, 8, 8], strides = [1, 1, 1]} : vector<4x8x8xf32> to vector<1x8x8xf32>
    %174 = vector.shape_cast %173 : vector<1x8x8xf32> to vector<8x8xf32>
    %175 = vector.extract_strided_slice %172 {offsets = [1, 0, 0], sizes = [1, 8, 8], strides = [1, 1, 1]} : vector<4x8x8xf32> to vector<1x8x8xf32>
    %176 = vector.shape_cast %175 : vector<1x8x8xf32> to vector<8x8xf32>
    %177 = vector.extract_strided_slice %172 {offsets = [2, 0, 0], sizes = [1, 8, 8], strides = [1, 1, 1]} : vector<4x8x8xf32> to vector<1x8x8xf32>
    %178 = vector.shape_cast %177 : vector<1x8x8xf32> to vector<8x8xf32>
    %179 = vector.extract_strided_slice %172 {offsets = [3, 0, 0], sizes = [1, 8, 8], strides = [1, 1, 1]} : vector<4x8x8xf32> to vector<1x8x8xf32>
    %180 = vector.shape_cast %179 : vector<1x8x8xf32> to vector<8x8xf32>
    %181 = tpu.concatenate %174, %176, %178, %180 in 1 : vector<8x8xf32>, vector<8x8xf32>, vector<8x8xf32>, vector<8x8xf32> -> vector<8x32xf32>
    %c0_58 = arith.constant 0 : index
    %c0_59 = arith.constant 0 : index
    %182 = vector.load %arg18[%c0_58, %c0_59] : memref<32x32xf32, #tpu.memory_space<vmem>>, vector<32x32xf32>
    %cst_60 = arith.constant dense<0.000000e+00> : vector<8x32xf32>
    %183 = tpu.matmul %181, %182, %cst_60 {dimension_numbers = #tpu.dot_dimension_numbers<[1], [0], [0], [1], [0, 0, 1, 1], [], []>} : vector<8x32xf32>, vector<32x32xf32>, vector<8x32xf32> -> vector<8x32xf32>
    %c0_61 = arith.constant 0 : index
    %c0_62 = arith.constant 0 : index
    %184 = vector.load %arg19[%c0_61, %c0_62] : memref<1x32xf32, #tpu.memory_space<vmem>>, vector<1x32xf32>
    %185 = vector.broadcast %184 : vector<1x32xf32> to vector<8x32xf32>
    %186 = arith.addf %183, %185 : vector<8x32xf32>
    %187 = arith.addf %128, %186 : vector<8x32xf32>
    %c0_63 = arith.constant 0 : index
    %c0_64 = arith.constant 0 : index
    %188 = vector.load %arg20[%c0_63, %c0_64] : memref<1x32xf32, #tpu.memory_space<vmem>>, vector<1x32xf32>
    %c0_65 = arith.constant 0 : index
    %c0_66 = arith.constant 0 : index
    %189 = vector.load %arg21[%c0_65, %c0_66] : memref<1x32xf32, #tpu.memory_space<vmem>>, vector<1x32xf32>
    %cst_67 = arith.constant dense<0.000000e+00> : vector<8xf32>
    %190 = vector.multi_reduction <add>, %187, %cst_67 [1] : vector<8x32xf32> to vector<8xf32>
    %191 = vector.shape_cast %190 : vector<8xf32> to vector<8x1xf32>
    %cst_68 = arith.constant 3.200000e+01 : f32
    %192 = vector.broadcast %cst_68 : f32 to vector<8x1xf32>
    %193 = arith.divf %191, %192 : vector<8x1xf32>
    %194 = vector.broadcast %193 : vector<8x1xf32> to vector<8x32xf32>
    %195 = arith.subf %187, %194 : vector<8x32xf32>
    %196 = arith.mulf %195, %195 : vector<8x32xf32>
    %cst_69 = arith.constant dense<0.000000e+00> : vector<8xf32>
    %197 = vector.multi_reduction <add>, %196, %cst_69 [1] : vector<8x32xf32> to vector<8xf32>
    %198 = vector.shape_cast %197 : vector<8xf32> to vector<8x1xf32>
    %cst_70 = arith.constant 3.200000e+01 : f32
    %199 = vector.broadcast %cst_70 : f32 to vector<8x1xf32>
    %200 = arith.divf %198, %199 : vector<8x1xf32>
    %201 = vector.broadcast %193 : vector<8x1xf32> to vector<8x32xf32>
    %202 = arith.subf %187, %201 : vector<8x32xf32>
    %cst_71 = arith.constant 9.99999974E-6 : f32
    %203 = vector.broadcast %cst_71 : f32 to vector<8x1xf32>
    %204 = arith.addf %200, %203 : vector<8x1xf32>
    %205 = math.rsqrt %204 : vector<8x1xf32>
    %206 = vector.broadcast %205 : vector<8x1xf32> to vector<8x32xf32>
    %207 = arith.mulf %202, %206 : vector<8x32xf32>
    %208 = vector.broadcast %188 : vector<1x32xf32> to vector<8x32xf32>
    %209 = arith.mulf %207, %208 : vector<8x32xf32>
    %210 = vector.broadcast %189 : vector<1x32xf32> to vector<8x32xf32>
    %211 = arith.addf %209, %210 : vector<8x32xf32>
    %212 = arith.truncf %211 : vector<8x32xf32> to vector<8x32xbf16>
    %c0_72 = arith.constant 0 : index
    %c0_73 = arith.constant 0 : index
    %213 = vector.load %arg22[%c0_72, %c0_73] : memref<32x2048xbf16, #tpu.memory_space<vmem>>, vector<32x2048xbf16>
    %cst_74 = arith.constant dense<0.000000e+00> : vector<8x2048xf32>
    %214 = tpu.matmul %212, %213, %cst_74 {dimension_numbers = #tpu.dot_dimension_numbers<[1], [0], [0], [1], [0, 0, 1, 1], [], []>} : vector<8x32xbf16>, vector<32x2048xbf16>, vector<8x2048xf32> -> vector<8x2048xf32>
    %c0_75 = arith.constant 0 : index
    %c0_76 = arith.constant 0 : index
    %215 = vector.load %arg23[%c0_75, %c0_76] : memref<1x2048xf32, #tpu.memory_space<vmem>>, vector<1x2048xf32>
    %216 = vector.broadcast %215 : vector<1x2048xf32> to vector<8x2048xf32>
    %217 = arith.addf %214, %216 : vector<8x2048xf32>
    %cst_77 = arith.constant 0.000000e+00 : f32
    %218 = vector.broadcast %cst_77 : f32 to vector<8x2048xf32>
    %219 = arith.maximumf %217, %218 : vector<8x2048xf32>
    %220 = arith.truncf %219 : vector<8x2048xf32> to vector<8x2048xbf16>
    %c0_78 = arith.constant 0 : index
    %c0_79 = arith.constant 0 : index
    %221 = vector.load %arg24[%c0_78, %c0_79] : memref<2048x32xbf16, #tpu.memory_space<vmem>>, vector<2048x32xbf16>
    %cst_80 = arith.constant dense<0.000000e+00> : vector<8x32xf32>
    %222 = tpu.matmul %220, %221, %cst_80 {dimension_numbers = #tpu.dot_dimension_numbers<[1], [0], [0], [1], [0, 0, 1, 1], [], []>} : vector<8x2048xbf16>, vector<2048x32xbf16>, vector<8x32xf32> -> vector<8x32xf32>
    %c0_81 = arith.constant 0 : index
    %c0_82 = arith.constant 0 : index
    %223 = vector.load %arg25[%c0_81, %c0_82] : memref<1x32xf32, #tpu.memory_space<vmem>>, vector<1x32xf32>
    %224 = vector.broadcast %223 : vector<1x32xf32> to vector<8x32xf32>
    %225 = arith.addf %222, %224 : vector<8x32xf32>
    %226 = arith.addf %211, %225 : vector<8x32xf32>
    %c0_83 = arith.constant 0 : index
    %c0_84 = arith.constant 0 : index
    %227 = vector.load %arg26[%c0_83, %c0_84] : memref<1x32xf32, #tpu.memory_space<vmem>>, vector<1x32xf32>
    %c0_85 = arith.constant 0 : index
    %c0_86 = arith.constant 0 : index
    %228 = vector.load %arg27[%c0_85, %c0_86] : memref<1x32xf32, #tpu.memory_space<vmem>>, vector<1x32xf32>
    %cst_87 = arith.constant dense<0.000000e+00> : vector<8xf32>
    %229 = vector.multi_reduction <add>, %226, %cst_87 [1] : vector<8x32xf32> to vector<8xf32>
    %230 = vector.shape_cast %229 : vector<8xf32> to vector<8x1xf32>
    %cst_88 = arith.constant 3.200000e+01 : f32
    %231 = vector.broadcast %cst_88 : f32 to vector<8x1xf32>
    %232 = arith.divf %230, %231 : vector<8x1xf32>
    %233 = vector.broadcast %232 : vector<8x1xf32> to vector<8x32xf32>
    %234 = arith.subf %226, %233 : vector<8x32xf32>
    %235 = arith.mulf %234, %234 : vector<8x32xf32>
    %cst_89 = arith.constant dense<0.000000e+00> : vector<8xf32>
    %236 = vector.multi_reduction <add>, %235, %cst_89 [1] : vector<8x32xf32> to vector<8xf32>
    %237 = vector.shape_cast %236 : vector<8xf32> to vector<8x1xf32>
    %cst_90 = arith.constant 3.200000e+01 : f32
    %238 = vector.broadcast %cst_90 : f32 to vector<8x1xf32>
    %239 = arith.divf %237, %238 : vector<8x1xf32>
    %240 = vector.broadcast %232 : vector<8x1xf32> to vector<8x32xf32>
    %241 = arith.subf %226, %240 : vector<8x32xf32>
    %cst_91 = arith.constant 9.99999974E-6 : f32
    %242 = vector.broadcast %cst_91 : f32 to vector<8x1xf32>
    %243 = arith.addf %239, %242 : vector<8x1xf32>
    %244 = math.rsqrt %243 : vector<8x1xf32>
    %245 = vector.broadcast %244 : vector<8x1xf32> to vector<8x32xf32>
    %246 = arith.mulf %241, %245 : vector<8x32xf32>
    %247 = vector.broadcast %227 : vector<1x32xf32> to vector<8x32xf32>
    %248 = arith.mulf %246, %247 : vector<8x32xf32>
    %249 = vector.broadcast %228 : vector<1x32xf32> to vector<8x32xf32>
    %250 = arith.addf %248, %249 : vector<8x32xf32>
    %cst_92 = arith.constant dense<0.000000e+00> : vector<32xf32>
    %251 = vector.multi_reduction <add>, %250, %cst_92 [0] : vector<8x32xf32> to vector<32xf32>
    %252 = vector.shape_cast %251 : vector<32xf32> to vector<1x32xf32>
    %cst_93 = arith.constant 8.000000e+00 : f32
    %253 = vector.broadcast %cst_93 : f32 to vector<1x32xf32>
    %254 = arith.divf %252, %253 : vector<1x32xf32>
    %c0_94 = arith.constant 0 : index
    %c0_95 = arith.constant 0 : index
    %255 = vector.load %arg28[%c0_94, %c0_95] : memref<32x5xf32, #tpu.memory_space<vmem>>, vector<32x5xf32>
    %cst_96 = arith.constant dense<0.000000e+00> : vector<1x5xf32>
    %256 = tpu.matmul %254, %255, %cst_96 {dimension_numbers = #tpu.dot_dimension_numbers<[1], [0], [0], [1], [0, 0, 1, 1], [], []>} : vector<1x32xf32>, vector<32x5xf32>, vector<1x5xf32> -> vector<1x5xf32>
    %c0_97 = arith.constant 0 : index
    %c0_98 = arith.constant 0 : index
    %257 = vector.load %arg29[%c0_97, %c0_98] : memref<1x5xf32, #tpu.memory_space<vmem>>, vector<1x5xf32>
    %258 = arith.addf %256, %257 : vector<1x5xf32>
    %c0_99 = arith.constant 0 : index
    %c0_100 = arith.constant 0 : index
    %c0_101 = arith.constant 0 : index
    %259 = vector.load %arg30[%c0_99, %c0_100, %c0_101] : memref<1x1x5xf32, #tpu.memory_space<vmem>>, vector<1x1x5xf32>
    %260 = vector.shape_cast %259 : vector<1x1x5xf32> to vector<1x5xf32>
    %261 = vector.shape_cast %258 : vector<1x5xf32> to vector<1x1x5xf32>
    tpu.vector_store %arg30[%c0_99, %c0_100, %c0_101], %261 {strides = array<i32>} : memref<1x1x5xf32, #tpu.memory_space<vmem>>, vector<1x1x5xf32>,
    return
  }
  func.func @transform_0(%arg0: i32) -> (i32, i32, i32) {
    %c0_i32 = arith.constant 0 : i32
    %c0_i32_0 = arith.constant 0 : i32
    %c0_i32_1 = arith.constant 0 : i32
    return %arg0, %c0_i32, %c0_i32_0 : i32, i32, i32
  }
  func.func @transform_1(%arg0: i32) -> (i32, i32) {
    %c0_i32 = arith.constant 0 : i32
    %c0_i32_0 = arith.constant 0 : i32
    %c0_i32_1 = arith.constant 0 : i32
    return %c0_i32, %c0_i32_0 : i32, i32
  }
  func.func @transform_2(%arg0: i32) -> (i32, i32) {
    %c0_i32 = arith.constant 0 : i32
    %c0_i32_0 = arith.constant 0 : i32
    %c0_i32_1 = arith.constant 0 : i32
    return %c0_i32, %c0_i32_0 : i32, i32
  }
  func.func @transform_3(%arg0: i32) -> (i32, i32) {
    %c0_i32 = arith.constant 0 : i32
    %c0_i32_0 = arith.constant 0 : i32
    %c0_i32_1 = arith.constant 0 : i32
    return %c0_i32, %c0_i32_0 : i32, i32
  }
  func.func @transform_4(%arg0: i32) -> (i32, i32) {
    %c0_i32 = arith.constant 0 : i32
    %c0_i32_0 = arith.constant 0 : i32
    %c0_i32_1 = arith.constant 0 : i32
    return %c0_i32, %c0_i32_0 : i32, i32
  }
  func.func @transform_5(%arg0: i32) -> (i32, i32) {
    %c0_i32 = arith.constant 0 : i32
    %c0_i32_0 = arith.constant 0 : i32
    %c0_i32_1 = arith.constant 0 : i32
    return %c0_i32, %c0_i32_0 : i32, i32
  }
  func.func @transform_6(%arg0: i32) -> (i32, i32) {
    %c0_i32 = arith.constant 0 : i32
    %c0_i32_0 = arith.constant 0 : i32
    %c0_i32_1 = arith.constant 0 : i32
    return %c0_i32, %c0_i32_0 : i32, i32
  }
  func.func @transform_7(%arg0: i32) -> (i32, i32) {
    %c0_i32 = arith.constant 0 : i32
    %c0_i32_0 = arith.constant 0 : i32
    %c0_i32_1 = arith.constant 0 : i32
    return %c0_i32, %c0_i32_0 : i32, i32
  }
  func.func @transform_8(%arg0: i32) -> (i32, i32) {
    %c0_i32 = arith.constant 0 : i32
    %c0_i32_0 = arith.constant 0 : i32
    %c0_i32_1 = arith.constant 0 : i32
    return %c0_i32, %c0_i32_0 : i32, i32
  }
  func.func @transform_9(%arg0: i32) -> (i32, i32) {
    %c0_i32 = arith.constant 0 : i32
    %c0_i32_0 = arith.constant 0 : i32
    %c0_i32_1 = arith.constant 0 : i32
    return %c0_i32, %c0_i32_0 : i32, i32
  }
  func.func @transform_10(%arg0: i32) -> (i32, i32) {
    %c0_i32 = arith.constant 0 : i32
    %c0_i32_0 = arith.constant 0 : i32
    %c0_i32_1 = arith.constant 0 : i32
    return %c0_i32, %c0_i32_0 : i32, i32
  }
  func.func @transform_11(%arg0: i32) -> (i32, i32) {
    %c0_i32 = arith.constant 0 : i32
    %c0_i32_0 = arith.constant 0 : i32
    %c0_i32_1 = arith.constant 0 : i32
    return %c0_i32, %c0_i32_0 : i32, i32
  }
  func.func @transform_12(%arg0: i32) -> (i32, i32) {
    %c0_i32 = arith.constant 0 : i32
    %c0_i32_0 = arith.constant 0 : i32
    %c0_i32_1 = arith.constant 0 : i32
    return %c0_i32, %c0_i32_0 : i32, i32
  }
  func.func @transform_13(%arg0: i32) -> (i32, i32) {
    %c0_i32 = arith.constant 0 : i32
    %c0_i32_0 = arith.constant 0 : i32
    %c0_i32_1 = arith.constant 0 : i32
    return %c0_i32, %c0_i32_0 : i32, i32
  }
  func.func @transform_14(%arg0: i32) -> (i32, i32) {
    %c0_i32 = arith.constant 0 : i32
    %c0_i32_0 = arith.constant 0 : i32
    %c0_i32_1 = arith.constant 0 : i32
    return %c0_i32, %c0_i32_0 : i32, i32
  }
  func.func @transform_15(%arg0: i32) -> (i32, i32) {
    %c0_i32 = arith.constant 0 : i32
    %c0_i32_0 = arith.constant 0 : i32
    %c0_i32_1 = arith.constant 0 : i32
    return %c0_i32, %c0_i32_0 : i32, i32
  }
  func.func @transform_16(%arg0: i32) -> (i32, i32) {
    %c0_i32 = arith.constant 0 : i32
    %c0_i32_0 = arith.constant 0 : i32
    %c0_i32_1 = arith.constant 0 : i32
    return %c0_i32, %c0_i32_0 : i32, i32
  }
  func.func @transform_17(%arg0: i32) -> (i32, i32) {
    %c0_i32 = arith.constant 0 : i32
    %c0_i32_0 = arith.constant 0 : i32
    %c0_i32_1 = arith.constant 0 : i32
    return %c0_i32, %c0_i32_0 : i32, i32
  }
  func.func @transform_18(%arg0: i32) -> (i32, i32) {
    %c0_i32 = arith.constant 0 : i32
    %c0_i32_0 = arith.constant 0 : i32
    %c0_i32_1 = arith.constant 0 : i32
    return %c0_i32, %c0_i32_0 : i32, i32
  }
  func.func @transform_19(%arg0: i32) -> (i32, i32) {
    %c0_i32 = arith.constant 0 : i32
    %c0_i32_0 = arith.constant 0 : i32
    %c0_i32_1 = arith.constant 0 : i32
    return %c0_i32, %c0_i32_0 : i32, i32
  }
  func.func @transform_20(%arg0: i32) -> (i32, i32) {
    %c0_i32 = arith.constant 0 : i32
    %c0_i32_0 = arith.constant 0 : i32
    %c0_i32_1 = arith.constant 0 : i32
    return %c0_i32, %c0_i32_0 : i32, i32
  }
  func.func @transform_21(%arg0: i32) -> (i32, i32) {
    %c0_i32 = arith.constant 0 : i32
    %c0_i32_0 = arith.constant 0 : i32
    %c0_i32_1 = arith.constant 0 : i32
    return %c0_i32, %c0_i32_0 : i32, i32
  }
  func.func @transform_22(%arg0: i32) -> (i32, i32) {
    %c0_i32 = arith.constant 0 : i32
    %c0_i32_0 = arith.constant 0 : i32
    %c0_i32_1 = arith.constant 0 : i32
    return %c0_i32, %c0_i32_0 : i32, i32
  }
  func.func @transform_23(%arg0: i32) -> (i32, i32) {
    %c0_i32 = arith.constant 0 : i32
    %c0_i32_0 = arith.constant 0 : i32
    %c0_i32_1 = arith.constant 0 : i32
    return %c0_i32, %c0_i32_0 : i32, i32
  }
  func.func @transform_24(%arg0: i32) -> (i32, i32) {
    %c0_i32 = arith.constant 0 : i32
    %c0_i32_0 = arith.constant 0 : i32
    %c0_i32_1 = arith.constant 0 : i32
    return %c0_i32, %c0_i32_0 : i32, i32
  }
  func.func @transform_25(%arg0: i32) -> (i32, i32) {
    %c0_i32 = arith.constant 0 : i32
    %c0_i32_0 = arith.constant 0 : i32
    %c0_i32_1 = arith.constant 0 : i32
    return %c0_i32, %c0_i32_0 : i32, i32
  }
  func.func @transform_26(%arg0: i32) -> (i32, i32) {
    %c0_i32 = arith.constant 0 : i32
    %c0_i32_0 = arith.constant 0 : i32
    %c0_i32_1 = arith.constant 0 : i32
    return %c0_i32, %c0_i32_0 : i32, i32
  }
  func.func @transform_27(%arg0: i32) -> (i32, i32) {
    %c0_i32 = arith.constant 0 : i32
    %c0_i32_0 = arith.constant 0 : i32
    %c0_i32_1 = arith.constant 0 : i32
    return %c0_i32, %c0_i32_0 : i32, i32
  }
  func.func @transform_28(%arg0: i32) -> (i32, i32) {
    %c0_i32 = arith.constant 0 : i32
    %c0_i32_0 = arith.constant 0 : i32
    %c0_i32_1 = arith.constant 0 : i32
    return %c0_i32, %c0_i32_0 : i32, i32
  }
  func.func @transform_29(%arg0: i32) -> (i32, i32, i32) {
    %c0_i32 = arith.constant 0 : i32
    %c0_i32_0 = arith.constant 0 : i32
    %c0_i32_1 = arith.constant 0 : i32
    return %arg0, %c0_i32, %c0_i32_0 : i32, i32, i32
  }
}

</mosaic_0001>

<bundles_post_ra>
// kernel: tpu_custom_call.1
= control target key start
LH: loop header
LB: loop body
LE: loop exit
PB: predicated region body
PF: predicated region fallthrough
CT: control target
= control target key end

     0   :  { %s8338_s6 = smov 1   ;;  %s8339_s10 = smov 2   ;;  %s9388_s0 = inlined_call_operand.smem [shape: u32[30], index: -1, kind: input, shape index: {}] }
   0x1   :  { %s8387_s5 = sld [smem:[%s9388_s0]]   ;;  %s8340_s14 = smov 3  }
   0x2   :  { %s8392_s9 = sld [smem:[%s9388_s0 + %s8338_s6]]   ;;  %s8341_s18 = smov 4  }
   0x3   :  { %s8397_s13 = sld [smem:[%s9388_s0 + %s8339_s10]]   ;;  %s8342_s22 = smov 5  }
   0x4   :  { %s8402_s17 = sld [smem:[%s9388_s0 + %s8340_s14]]   ;;  %s8343_s26 = smov 6  }
   0x5   :  { %s8407_s21 = sld [smem:[%s9388_s0 + %s8341_s18]]   ;;  %s8344_s30 = smov 7  }
   0x6   :  { %s8412_s25 = sld [smem:[%s9388_s0 + %s8342_s22]]   ;;  %s8345_s4 = smov 8  }
   0x7   :  { %9406 = sst [smem:[#allocation5_spill]] %s8387_s5  ;;  %s8346_s10 = smov 9  }
   0x8   :  { %9407 = sst [smem:[#allocation6_spill]] %s8392_s9  ;;  %s8347_s15 = smov 10  }
   0x9   :  { %9408 = sst [smem:[#allocation7_spill]] %s8397_s13  ;;  %s8348_s20 = smov 11  }
   0xa   :  { %s8417_s29 = sld [smem:[%s9388_s0 + %s8343_s26]]   ;;  %s8349_s26 = smov 12  }
   0xb   :  { %s8422_s3 = sld [smem:[%s9388_s0 + %s8344_s30]]   ;;  %s8350_s1 = smov 13  }
   0xc   :  { %s8427_s8 = sld [smem:[%s9388_s0 + %s8345_s4]]   ;;  %s8351_s7 = smov 14  }
   0xd   :  { %s8432_s14 = sld [smem:[%s9388_s0 + %s8346_s10]]   ;;  %s8353_s22 = smov 16  }
   0xe   :  { %s8437_s19 = sld [smem:[%s9388_s0 + %s8347_s15]]   ;;  %s8352_s15 = smov 15  }
   0xf   :  { %s8442_s24 = sld [smem:[%s9388_s0 + %s8348_s20]]   ;;  %s8354_s28 = smov 17  }
  0x10   :  { %s8447_s30 = sld [smem:[%s9388_s0 + %s8349_s26]]  }
  0x11   :  { %9409 = sst [smem:[#allocation8_spill]] %s8422_s3 }
  0x12   :  { %9410 = sst [smem:[#allocation9_spill]] %s8427_s8 }
  0x13   :  { %s8452_s6 = sld [smem:[%s9388_s0 + %s8350_s1]]  }
  0x14   :  { %s8457_s12 = sld [smem:[%s9388_s0 + %s8351_s7]]   ;;  %s8355_s7 = smov 18  }
  0x15   :  { %s8462_s20 = sld [smem:[%s9388_s0 + %s8352_s15]]   ;;  %s8356_s15 = smov 19  }
  0x16   :  { %s8467_s27 = sld [smem:[%s9388_s0 + %s8353_s22]]   ;;  %s8357_s22 = smov 20  }
  0x17   :  { %s8472_s4 = sld [smem:[%s9388_s0 + %s8354_s28]]   ;;  %s8358_s28 = smov 21  }
  0x19   :  { %9411 = sst [smem:[#allocation10_spill]] %s8452_s6 }
  0x1a   :  { %9412 = sst [smem:[#allocation11_spill]] %s8457_s12 }
  0x1b   :  { %s8477_s12 = sld [smem:[%s9388_s0 + %s8355_s7]]   ;;  %s8359_s7 = smov 22  }
  0x1c   :  { %9413 = sst [smem:[#allocation12_spill]] %s8467_s27 }
  0x1d   :  { %9414 = sst [smem:[#allocation13_spill]] %s8472_s4 }
  0x1e   :  { %s8482_s6 = sld [smem:[%s9388_s0 + %s8356_s15]]   ;;  %s8360_s15 = smov 23  }
  0x1f   :  { %s8487_s27 = sld [smem:[%s9388_s0 + %s8357_s22]]   ;;  %s8361_s22 = smov 24  }
  0x20   :  { %s8492_s4 = sld [smem:[%s9388_s0 + %s8358_s28]]   ;;  %s8362_s28 = smov 25  }
  0x21   :  { %9415 = sst [smem:[#allocation14_spill]] %s8477_s12 }
  0x22   :  { %s8497_s12 = sld [smem:[%s9388_s0 + %s8359_s7]]   ;;  %s8363_s7 = smov 26  }
  0x24   :  { %9416 = sst [smem:[#allocation15_spill]] %s8482_s6 }
  0x25   :  { %9417 = sst [smem:[#allocation16_spill]] %s8487_s27 }
  0x26   :  { %9418 = sst [smem:[#allocation17_spill]] %s8492_s4 }
  0x27   :  { %s8502_s6 = sld [smem:[%s9388_s0 + %s8360_s15]]   ;;  %s8364_s15 = smov 27  }
  0x28   :  { %9419 = sst [smem:[#allocation18_spill]] %s8497_s12 }
  0x29   :  { %s8507_s27 = sld [smem:[%s9388_s0 + %s8361_s22]]   ;;  %s8365_s22 = smov 28  }
  0x2a   :  { %s8512_s4 = sld [smem:[%s9388_s0 + %s8362_s28]]   ;;  %s8366_s28 = smov 29  }
  0x2b   :  { %s8517_s12 = sld [smem:[%s9388_s0 + %s8363_s7]]  }
  0x2d   :  { %9420 = sst [smem:[#allocation19_spill]] %s8502_s6 }
  0x2e   :  { %s8522_s6 = sld [smem:[%s9388_s0 + %s8364_s15]]  }
  0x2f   :  { %9421 = sst [smem:[#allocation20_spill]] %s8507_s27 }
  0x30   :  { %9422 = sst [smem:[#allocation21_spill]] %s8512_s4 }
  0x31   :  { %9423 = sst [smem:[#allocation22_spill]] %s8517_s12 }
  0x32   :  { %s8527_s27 = sld [smem:[%s9388_s0 + %s8365_s22]]  }
  0x33   :  { %s8532_s4 = sld [smem:[%s9388_s0 + %s8366_s28]]  }
  0x34   :  { %9424 = sst [smem:[#allocation23_spill]] %s8522_s6 }
  0x35   :  { %64 = vsyncpa [#allocation3], 0 }
  0x36   :  { %66 = vsyncpa [#allocation3 + $0x1], 0  ;;  %s8534_s7 = smov 0   ;;  %s8536_s10 = smov 0  }
  0x37   :  { %s8538_s11 = smov 0   ;;  %s8540_s15 = smov 0  }
  0x38 LB: > { %s9425_s9 = sld [smem:[#allocation6_spill]]  ;;  %s8555_s0 = sadd.s32 4294967295, %s8336_s15   ;;  %s8328_s10 = sphi %s8536_s10, %s9454_s10   ;;  %s8324_s7 = sphi %s8534_s7, %s9453_s7   ;;  %s8336_s15 = sphi %s8540_s15, %s9456_s15   ;;  %s8332_s11 = sphi %s8538_s11, %s9455_s11  }
  0x39   : > { %s9426_s6 = sld [smem:[#allocation23_spill]]  ;;  %s6958_s16 = sadd.s32 4294967294, %s8336_s15  }
  0x3a   : > { %s8559_s18 = sadd.s32 1, %s8336_s15   ;;  %s693_s22 = sadd.s32 1, %s8332_s11 }
  0x3b   : > { %s690_s23 = ssub.s32 %s8336_s15, %s8559_s18  ;;  %p703_p0 = scmp.ne.s32.totalorder %s8332_s11, %s8328_s10 }
  0x3c   : > { %p691_p1 = scmp.eq.s32.totalorder %s690_s23, 0  ;;  %p704_p2 = scmp.eq.s32.totalorder %s8555_s0, 1 }
  0x3d   : > { %p709_p3 = scmp.ne.s32.totalorder %s8328_s10, %s8324_s7  ;;  %p710_p4 = scmp.eq.s32.totalorder %s6958_s16, 1 }
  0x3e   : > { %s8570_s26 = scalar_select %p691_p1, %s8332_s11, %s693_s22  }
  0x3f   : > { %p8572_p5 = por %p704_p2, %p703_p0  ;;  %p8576_p6 = por %p710_p4, %p709_p3 }
  0x40   : > { %p6961_p7 = scmp.ge.s32.totalorder %s8336_s15, 1  ;;  %p819_p8 = scmp.lt.s32.totalorder %s8336_s15, 3 }
  0x42   : > { %p820_p9 = pnand %p6961_p7, %p819_p8 }
  0x43   : > { %p893_p10 = scmp.lt.s32.totalorder (!%p820_p9), %s8555_s0, 1  ;;  %s9429_s5 = sld [smem:[#allocation5_spill]] (!%p820_p9) }
  0x44   : > { %823 = sbr.rel (%p820_p9) target bundleno = 5626 (0x15fa), region = 136  ;;  %s9430_s13 = sld [smem:[#allocation7_spill]] (!%p820_p9) }
  0x45   : > { %s9397_s23 = smov (!%p820_p9), 104   ;;  %s9431_s3 = sld [smem:[#allocation8_spill]] (!%p820_p9) }
  0x46   : > { %s9432_s8 = sld [smem:[#allocation9_spill]] (!%p820_p9) }
  0x47   : > { %s9452_s12 = sld [smem:[#allocation22_spill]] (!%p820_p9) }
  0x49   : > { %v900_v0 = vld [vmem:[%s9425_s9 + $0x8] sm:$0xff]  ;;  %v8367_v1 = vmov 0.0   ;;  %v899_v2 = vld [vmem:[%s9425_s9] sm:$0xff]  ;;  %vm8368_vm0 = vmmov 0   ;;  %v985_v3 = vld [vmem:[%s8402_s17 + $0x18] sm:$0xff]  ;;  %s894_s2 = scalar_select %p893_p10, %s8555_s0, 1 }
  0x4a   : > { %7759 = vmatprep.subr.mxu0 %v8367_v1  ;;  %7763 = vmatprep.mubr.msk.f32.mxu0 %vm8368_vm0, %v8367_v1  ;;  %v984_v4 = vld [vmem:[%s8402_s17 + $0x10] sm:$0xff]  ;;  %vm908_vm1 = vcmask 130048   ;;  %v983_v6 = vld [vmem:[%s8402_s17 + $0x8] sm:$0xff]  ;;  %v982_v7 = vld [vmem:[%s8402_s17] sm:$0xff]  ;;  %vm993_vm2 = vcmask 261120   ;;  %vm1076_vm3 = vcmask 64512  }
  0x4b   : > { %7760 = vmatpush3.msra.mxu0 %v900_v0  ;;  %7766 = vmatprep.subr.mxu1 %v8367_v1  ;;  %s6962_s16 = sshll.u32 %s894_s2, 3  ;;  %v6963_v8 = vld [vmem:[%s9430_s13] ss:$0 sm:$0xff]  ;;  %s9398_s2 = smov 120   ;;  %vm1741_vm4 = vcmask 195584   ;;  %vm6859_vm5 = vcmask 32768  }
  0x4c   : > { %7761 = vmatprep.subr.mxu0 %v8367_v1  ;;  %7767 = vmatpush3.msra.mxu1 %v985_v3  ;;  %s896_s22 = scalar_lea.vmem %s9429_s5, %s6962_s16  ;;  %v6965_v12 = vld [vmem:[%s8407_s21] ss:$0 sm:$0xff]  ;;  %s9393_s16 = smov 96  }
  0x4d   : > { %7762 = vmatpush3.msra.mxu0 %v899_v2  ;;  %7768 = vmatprep.subr.mxu1 %v8367_v1  ;;  %v898_v5 = vld [vmem:[%s896_s22] sm:$0xff]  ;;  %s8372_s22 = smov 112  }
  0x4e   : > { %7769 = vmatpush3.msra.mxu1 %v984_v4  ;;  %7774 = vmatprep.mubr.msk.f32.mxu1 %vm8368_vm0, %v8367_v1 }
  0x4f   : > { %7770 = vmatprep.subr.mxu1 %v8367_v1  ;;  %7777 = vmatprep.subr.mxu0 %v8367_v1 }
  0x50   : > { %7764 = vmatmul.mubr.msk.f32.vlgmr.msra.gmra.mxu0 %vm908_vm1, %v898_v5  ;;  %7771 = vmatpush3.msra.mxu1 %v983_v6 }
  0x51   : > { %7779 = vmatprep.mubr.msk.f32.mxu0 %vm8368_vm0, %v8367_v1  ;;  %7772 = vmatprep.subr.mxu1 %v8367_v1 }
  0x52   : > { %7773 = vmatpush3.msra.mxu1 %v982_v7 }
  0x53   : > { %7787 = vmatprep.subr.mxu1 %v8367_v1 }
 0x110   : > { %v978_v9 = vpop.f32.mrf.mxu0 }
 0x111   : > { %v8607_v10 = vadd.f32 %v6963_v8, %v978_v9  ;;  %v1746_v8 = vld [vmem:[%s8412_s25 + $0x18] sm:$0xff] }
 0x112   : > { %v7765_v11 = vpop.f32.mrf.mxu0 }
 0x113   : > { %7775 = vmatmul.mubr.msk.f32.vlgmr.msra.gmra.mxu1 %vm993_vm2, %v8607_v10 }
 0x114   : > { %7789 = vmatprep.mubr.msk.f32.mxu1 %vm8368_vm0, %v8367_v1 }
 0x1d3   : > { %v1063_v13 = vpop.f32.mrf.mxu1 }
 0x1d4   : > { %v1064_v14 = vadd.f32 %v6965_v12, %v1063_v13  ;;  %v1745_v12 = vld [vmem:[%s8412_s25 + $0x10] sm:$0xff]  ;;  %v1744_v13 = vld [vmem:[%s8412_s25 + $0x8] sm:$0xff] }
 0x1d5   : > { %v7776_v15 = vpop.f32.mrf.mxu1 }
 0x1d6   : > { %1072 = vrot.lane.b32.xlu1 %v1064_v14, %s9397_s23  ;;  %1068 = vrot.lane.b32.xlu0 %v1064_v14, %s9398_s2  ;;  %s9400_s23 = smov 24   ;;  %s9399_s2 = smov 16  }
 0x1da   : > { %1074 = vrot.lane.b32.xlu1 %v1064_v14, %s9393_s16  ;;  %1070 = vrot.lane.b32.xlu0 %v1064_v14, %s8372_s22 }
 0x248   : > { %v8618_v16 = vpop.permute.xlu1 %1072  ;;  %v1069_v17 = vpop.permute.xlu0 %1068 }
 0x249   : > { %1151 = vrot.lane.b32.xlu0 %v1069_v17, %s9393_s16 }
 0x24c   : > { %v1075_v18 = vpop.permute.xlu1 %1074  ;;  %v8621_v19 = vpop.permute.xlu0 %1070 }
 0x24d   : > { %7778 = vmatpush3.xpose.msk.msra.mxu0 %vm1076_vm3, %v1075_v18  ;;  %1303 = vrot.lane.b32.xlu0 %v8618_v16, %s9393_s16 }
 0x24e   : > { %1227 = vrot.lane.b32.xlu1 %v8621_v19, %s9393_s16  ;;  %7782 = vmatprep.subr.mxu0 %v8367_v1  ;;  %s9395_s16 = smov 64  }
 0x250   : > { %7780 = vmatmul.mubr.msk.f32.vlgmr.msra.gmra.mxu0 %vm1076_vm3, %v1064_v14 }
 0x251   : > { %7784 = vmatprep.mubr.msk.f32.mxu0 %vm8368_vm0, %v8367_v1 }
 0x2bb   : > { %v1152_v20 = vpop.permute.xlu0 %1151 }
 0x2bc   : > { %7783 = vmatpush3.xpose.msk.msra.mxu0 %vm1076_vm3, %v1152_v20 }
 0x2bd   : > { %7792 = vmatprep.subr.mxu0 %v8367_v1 }
 0x2bf   : > { %7785 = vmatmul.mubr.msk.f32.vlgmr.msra.gmra.mxu0 %vm1076_vm3, %v1069_v17  ;;  %v1304_v21 = vpop.permute.xlu0 %1303 }
 0x2c0   : > { %v1228_v22 = vpop.permute.xlu1 %1227  ;;  %7793 = vmatpush3.xpose.msk.msra.mxu0 %vm1076_vm3, %v1304_v21  ;;  %7794 = vmatprep.mubr.msk.f32.mxu0 %vm8368_vm0, %v8367_v1 }
 0x2c1   : > { %7788 = vmatpush3.xpose.msk.msra.mxu1 %vm1076_vm3, %v1228_v22  ;;  %7802 = vmatprep.subr.mxu0 %v8367_v1 }
 0x2c2   : > { %7797 = vmatprep.subr.mxu1 %v8367_v1 }
 0x2c3   : > { %7795 = vmatmul.mubr.msk.f32.vlgmr.msra.gmra.mxu0 %vm1076_vm3, %v8618_v16 }
 0x2c4   : > { %7790 = vmatmul.mubr.msk.f32.vlgmr.msra.gmra.mxu1 %vm1076_vm3, %v8621_v19  ;;  %7804 = vmatprep.mubr.msk.f32.mxu0 %vm8368_vm0, %v8367_v1 }
 0x2c5   : > { %7799 = vmatprep.mubr.msk.f32.mxu1 %vm8368_vm0, %v8367_v1 }
 0x310   : > { %v1147_v23 = vpop.f32.mrf.mxu0 }
 0x311   : > { %v1379_v24 = vsel %vm1076_vm3, %v1147_v23, -inf }
 0x312   : > { %1380 = vmax.xlane.f32.xlu1 %v1379_v24  ;;  %v7781_v25 = vpop.f32.mrf.mxu0 }
 0x37f   : > { %v1223_v26 = vpop.f32.mrf.mxu0 }
 0x380   : > { %v1382_v27 = vsel %vm1076_vm3, %v1223_v26, -inf }
 0x381   : > { %1383 = vmax.xlane.f32.xlu0 %v1382_v27  ;;  %v7786_v28 = vpop.f32.mrf.mxu0  ;;  %v6979_v27 = vld [vmem:[%s8417_s29] ss:$0 sm:$0xff] }
 0x383   : > { %v1375_v29 = vpop.f32.mrf.mxu0 }
 0x384   : > { %v1299_v30 = vpop.f32.mrf.mxu1  ;;  %v1388_v31 = vsel %vm1076_vm3, %v1375_v29, -inf }
 0x385   : > { %v1385_v32 = vsel %vm1076_vm3, %v1299_v30, -inf  ;;  %1389 = vmax.xlane.f32.xlu1 %v1388_v31  ;;  %v7796_v33 = vpop.f32.mrf.mxu0 }
 0x386   : > { %v7791_v34 = vpop.f32.mrf.mxu1  ;;  %1386 = vmax.xlane.f32.xlu0 %v1385_v32 }
 0x396   : > { %1499 = vrot.lane.b32.xlu1 %v1069_v17, %s9395_s16 }
 0x39b   : > { %v1381_v35 = vpop.xlane.xlu1 %1380 }
 0x39c   : > { %1423 = vrot.lane.b32.xlu0 %v1064_v14, %s9395_s16  ;;  %v1391_v36 = vsub.f32 %v1147_v23, %v1381_v35  ;;  %v1743_v14 = vld [vmem:[%s8412_s25] sm:$0xff] }
 0x39e   : > { %v1395_v37 = vmul.f32 1.442695, %v1391_v36 }
 0x3a0   : > { %8236 = vpow2.f32 %v1395_v37 }
 0x3ad   : > { %v8237_v38 = vpop.eup %8236 }
 0x3ae   : > { %v1403_v39 = vsel %vm1076_vm3, %v8237_v38, 0.0 }
 0x3bb   : > { %1404 = vadd.xlane.f32.xlu0 %v1403_v39  ;;  %v1883_v39 = vld [vmem:[%s8432_s14 + $0xc0] sm:$0xff] }
 0x40a   : > { %v1384_v40 = vpop.xlane.xlu0 %1383 }
 0x40b   : > { %v1392_v41 = vsub.f32 %v1223_v26, %v1384_v40  ;;  %v1876_v40 = vld [vmem:[%s8432_s14 + $0x88] sm:$0xff] }
 0x40d   : > { %v1397_v42 = vmul.f32 1.442695, %v1392_v41 }
 0x40e   : > { %v1390_v43 = vpop.xlane.xlu1 %1389 }
 0x40f   : > { %8238 = vpow2.f32 %v1397_v42  ;;  %v1387_v44 = vpop.xlane.xlu0 %1386  ;;  %v1394_v45 = vsub.f32 %v1375_v29, %v1390_v43  ;;  %v1884_v42 = vld [vmem:[%s8432_s14 + $0xc8] sm:$0xff] }
 0x410   : > { %v1393_v46 = vsub.f32 %v1299_v30, %v1387_v44  ;;  %v7001_v43 = vcombine.low %v1876_v40, %v1884_v42  ;;  %v7002_v44 = vcombine.high %v1876_v40, %v1884_v42  ;;  %v1865_v40 = vld [vmem:[%s8432_s14 + $0x30] sm:$0xff]  ;;  %v1866_v42 = vld [vmem:[%s8432_s14 + $0x38] sm:$0xff] }
 0x411   : > { %v1401_v47 = vmul.f32 1.442695, %v1394_v45  ;;  %v1859_v45 = vld [vmem:[%s8432_s14] sm:$0xff] }
 0x412   : > { %v1399_v48 = vmul.f32 1.442695, %v1393_v46  ;;  %v1500_v49 = vpop.permute.xlu1 %1499  ;;  %v1867_v46 = vld [vmem:[%s8432_s14 + $0x40] sm:$0xff] }
 0x413   : > { %8240 = vpow2.f32 %v1401_v47  ;;  %v1424_v50 = vpop.permute.xlu0 %1423  ;;  %7803 = vmatpush3.msra.mxu0 %v1500_v49  ;;  %v1860_v47 = vld [vmem:[%s8432_s14 + $0x8] sm:$0xff] }
 0x414   : > { %8242 = vpow2.f32 %v1399_v48  ;;  %7798 = vmatpush3.msra.mxu1 %v1424_v50  ;;  %7812 = vmatprep.subr.mxu0 %v8367_v1  ;;  %v6984_v48 = vcombine.high %v1859_v45, %v1867_v46  ;;  %v1868_v49 = vld [vmem:[%s8432_s14 + $0x48] sm:$0xff]  ;;  %v6983_v50 = vcombine.low %v1859_v45, %v1867_v46 }
 0x415   : > { %7807 = vmatprep.subr.mxu1 %v8367_v1 }
 0x41c   : > { %v8239_v51 = vpop.eup %8238 }
 0x41d   : > { %v1406_v52 = vsel %vm1076_vm3, %v8239_v51, 0.0 }
 0x41e   : > { %1407 = vadd.xlane.f32.xlu1 %v1406_v52  ;;  %v6986_v52 = vcombine.high %v1860_v47, %v1868_v49 }
 0x420   : > { %v8241_v53 = vpop.eup %8240 }
 0x421   : > { %v8243_v54 = vpop.eup %8242  ;;  %v1412_v55 = vsel %vm1076_vm3, %v8241_v53, 0.0 }
 0x422   : > { %v1409_v56 = vsel %vm1076_vm3, %v8243_v54, 0.0  ;;  %1413 = vadd.xlane.f32.xlu1 %v1412_v55  ;;  %v1878_v55 = vld [vmem:[%s8432_s14 + $0x98] sm:$0xff] }
 0x423   : > { %1410 = vadd.xlane.f32.xlu0 %v1409_v56 }
 0x433   : > { %1575 = vrot.lane.b32.xlu1 %v8621_v19, %s9395_s16 }
 0x439   : > { %1651 = vrot.lane.b32.xlu0 %v8618_v16, %s9395_s16  ;;  %s9401_s16 = smov 8  }
 0x444   : > { %v1405_v57 = vpop.xlane.xlu0 %1404 }
 0x445   : > { %8244 = vrcp.f32 %v1405_v57  ;;  %v1886_v57 = vld [vmem:[%s8432_s14 + $0xd8] sm:$0xff] }
 0x452   : > { %v8245_v58 = vpop.eup %8244 }
 0x453   : > { %v1419_v59 = vmul.f32 %v8245_v58, %v8237_v38  ;;  %v1875_v38 = vld [vmem:[%s8432_s14 + $0x80] sm:$0xff]  ;;  %v8377_v58 = vmov 0  }
 0x454   : > { %v7000_v41 = vcombine.high %v1875_v38, %v1883_v39 }
 0x455   : > { %7800 = vmatmul.mubr.msk.f32.vlgmr.msra.gmra.mxu1 %vm1076_vm3, %v1419_v59 }
 0x456   : > { %7809 = vmatprep.mubr.msk.f32.mxu1 %vm8368_vm0, %v8367_v1 }
 0x4a7   : > { %v1408_v60 = vpop.xlane.xlu1 %1407 }
 0x4a8   : > { %8246 = vrcp.f32 %v1408_v60  ;;  %v7005_v60 = vcombine.low %v1878_v55, %v1886_v57 }
 0x4ab   : > { %v1414_v61 = vpop.xlane.xlu1 %1413 }
 0x4ac   : > { %v1411_v62 = vpop.xlane.xlu0 %1410  ;;  %8248 = vrcp.f32 %v1414_v61  ;;  %v7006_v61 = vcombine.high %v1878_v55, %v1886_v57  ;;  %v7986_v55 = vld [vmem:[%s8442_s24 + $0x30] sm:$0xff]   ;;  %v7988_v57 = vld [vmem:[%s8442_s24 + $0x68] sm:$0xff]  }
 0x4ad   : > { %8250 = vrcp.f32 %v1411_v62 }
 0x4af   : > { %v1576_v63 = vpop.permute.xlu1 %1575 }
 0x4b0   : > { %7808 = vmatpush3.msra.mxu1 %v1576_v63  ;;  %v1652_v3 = vpop.permute.xlu0 %1651 }
 0x4b1   : > { %7817 = vmatprep.subr.mxu1 %v8367_v1 }
 0x4b5   : > { %v8247_v0 = vpop.eup %8246 }
 0x4b6   : > { %v1420_v2 = vmul.f32 %v8247_v0, %v8239_v51  ;;  %v6985_v51 = vcombine.low %v1860_v47, %v1868_v49  ;;  %v7980_v49 = vld [vmem:[%s8442_s24 + $0x78] sm:$0xff]  }
 0x4b8   : > { %7805 = vmatmul.mubr.msk.f32.vlgmr.msra.gmra.mxu0 %vm1076_vm3, %v1420_v2 }
 0x4b9   : > { %v8249_v4 = vpop.eup %8248  ;;  %7813 = vmatpush3.msra.mxu0 %v1652_v3  ;;  %7814 = vmatprep.mubr.msk.f32.mxu0 %vm8368_vm0, %v8367_v1  ;;  %v6981_v3 = vld [vmem:[%s9431_s3] ss:$0 sm:$0xff]  ;;  %s9436_s3 = smov 120  }
 0x4ba   : > { %v8251_v5 = vpop.eup %8250  ;;  %v1422_v6 = vmul.f32 %v8249_v4, %v8241_v53  ;;  %2150 = vmatprep.subr.bf16.mxu0 %v7000_v41  ;;  %v1877_v53 = vld [vmem:[%s8432_s14 + $0x90] sm:$0xff] }
 0x4bb   : > { %v1421_v7 = vmul.f32 %v8251_v5, %v8243_v54  ;;  %v1885_v54 = vld [vmem:[%s8432_s14 + $0xd0] sm:$0xff]  ;;  %v6982_v5 = vld [vmem:[%s9432_s8] ss:$0 sm:$0xff] }
 0x4bc   : > { %7815 = vmatmul.mubr.msk.f32.vlgmr.msra.gmra.mxu0 %vm1076_vm3, %v1422_v6  ;;  %v7004_v56 = vcombine.high %v1877_v53, %v1885_v54  ;;  %v7003_v59 = vcombine.low %v1877_v53, %v1885_v54  ;;  %v1873_v41 = vld [vmem:[%s8432_s14 + $0x70] sm:$0xff] }
 0x4bd   : > { %7810 = vmatmul.mubr.msk.f32.vlgmr.msra.gmra.mxu1 %vm1076_vm3, %v1421_v7  ;;  %2170 = vmatprep.mubr.bf16.mxu0 %v8377_v58  ;;  %v1861_v7 = vld [vmem:[%s8432_s14 + $0x10] sm:$0xff]  ;;  %v6996_v45 = vcombine.high %v1865_v40, %v1873_v41  ;;  %v6995_v47 = vcombine.low %v1865_v40, %v1873_v41 }
 0x4be   : > { %7825 = vmatprep.mubr.msk.f32.mxu1 %vm8368_vm0, %v8367_v1  ;;  %7818 = vmatpush3.msra.mxu1 %v1746_v8  ;;  %v1869_v8 = vld [vmem:[%s8432_s14 + $0x50] sm:$0xff] }
 0x4bf   : > { %7819 = vmatprep.subr.mxu1 %v8367_v1  ;;  %v7984_v53 = vld [vmem:[%s8442_s24 + $0x70] sm:$0xff]  }
 0x4c0   : > { %7820 = vmatpush3.msra.mxu1 %v1745_v12  ;;  %v7985_v54 = vld [vmem:[%s8442_s24 + $0xf0] sm:$0xff]  }
 0x4c1   : > { %7821 = vmatprep.subr.mxu1 %v8367_v1 }
 0x4c2   : > { %7822 = vmatpush3.msra.mxu1 %v1744_v13 }
 0x4c3   : > { %7823 = vmatprep.subr.mxu1 %v8367_v1 }
 0x4c4   : > { %7824 = vmatpush3.msra.mxu1 %v1743_v14  ;;  %v6988_v14 = vcombine.high %v1861_v7, %v1869_v8 }
 0x4c5   : > { %2191 = vmatprep.subr.bf16.mxu1 %v7002_v44 }
 0x515   : > { %v1495_v9 = vpop.f32.mrf.mxu1 }
 0x517   : > { %v7801_v11 = vpop.f32.mrf.mxu1 }
 0x518   : > { %v1870_v11 = vld [vmem:[%s8432_s14 + $0x58] sm:$0xff] }
 0x578   : > { %v1571_v15 = vpop.f32.mrf.mxu0 }
 0x579   : > { %1728 = vrot.lane.b32.xlu1 %v1571_v15, %s9401_s16  ;;  %s9435_s16 = sld [smem:[#allocation12_spill]] }
 0x57a   : > { %v7806_v16 = vpop.f32.mrf.mxu0 }
 0x57b   : > { %v1879_v16 = vld [vmem:[%s8432_s14 + $0xa0] sm:$0xff] }
 0x57c   : > { %v1723_v17 = vpop.f32.mrf.mxu0 }
 0x57d   : > { %v1647_v18 = vpop.f32.mrf.mxu1  ;;  %1736 = vrot.lane.b32.xlu1 %v1723_v17, %s9400_s23  ;;  %v1887_v17 = vld [vmem:[%s8432_s14 + $0xe0] sm:$0xff]  ;;  %s9434_s23 = sld [smem:[#allocation11_spill]] }
 0x57e   : > { %1732 = vrot.lane.b32.xlu0 %v1647_v18, %s9399_s2  ;;  %v7816_v19 = vpop.f32.mrf.mxu0  ;;  %v1880_v18 = vld [vmem:[%s8432_s14 + $0xa8] sm:$0xff]  ;;  %s9433_s2 = sld [smem:[#allocation10_spill]] }
 0x57f   : > { %v7811_v20 = vpop.f32.mrf.mxu1  ;;  %v1888_v19 = vld [vmem:[%s8432_s14 + $0xe8] sm:$0xff] }
 0x580   : > { %v6987_v20 = vcombine.low %v1861_v7, %v1869_v8  ;;  %v8000_v7 = vld [vmem:[%s8442_s24 + $0x50] sm:$0xff]  }
 0x581   : > { %v8001_v8 = vld [vmem:[%s8442_s24 + $0xd0] sm:$0xff]  }
 0x5eb   : > { %v1729_v21 = vpop.permute.xlu1 %1728 }
 0x5ec   : > { %v1739_v23 = vsel %vm1076_vm3, %v1495_v9, %v1729_v21  ;;  %v1862_v9 = vld [vmem:[%s8432_s14 + $0x18] sm:$0xff] }
 0x5ed   : > { %v6990_v15 = vcombine.high %v1862_v9, %v1870_v11  ;;  %v6989_v21 = vcombine.low %v1862_v9, %v1870_v11  ;;  %v8002_v9 = vld [vmem:[%s8442_s24 + $0x10] sm:$0xff]  }
 0x5ee   : > { %v8003_v11 = vld [vmem:[%s8442_s24 + $0x90] sm:$0xff]  }
 0x5ef   : > { %v1737_v22 = vpop.permute.xlu1 %1736 }
 0x5f0   : > { %v1733_v24 = vpop.permute.xlu0 %1732 }
 0x5f1   : > { %v1740_v25 = vsel %vm908_vm1, %v1739_v23, %v1733_v24  ;;  %v7010_v23 = vcombine.high %v1880_v18, %v1888_v19  ;;  %v1863_v24 = vld [vmem:[%s8432_s14 + $0x20] sm:$0xff] }
 0x5f2   : > { %v1742_v26 = vsel %vm1741_vm4, %v1740_v25, %v1737_v22  ;;  %v7008_v22 = vcombine.high %v1879_v16, %v1887_v17  ;;  %v1871_v25 = vld [vmem:[%s8432_s14 + $0x60] sm:$0xff] }
 0x5f3   : > { %7826 = vmatmul.mubr.msk.f32.vlgmr.msra.gmra.mxu1 %vm993_vm2, %v1742_v26  ;;  %v1864_v26 = vld [vmem:[%s8432_s14 + $0x28] sm:$0xff] }
 0x5f4   : > { %2192 = vmatpush1.bf16.msra.mxu1 %v7001_v43  ;;  %2211 = vmatprep.mubr.bf16.mxu1 %v8377_v58 }
 0x5f5   : > { %2193 = vmatprep.subr.bf16.mxu1 %v6986_v52  ;;  %v7983_v52 = vld [vmem:[%s8442_s24 + $0xb8] sm:$0xff]  }
 0x5f8   : > { %2194 = vmatpush1.bf16.msra.mxu1 %v6985_v51  ;;  %v7982_v51 = vld [vmem:[%s8442_s24 + $0x38] sm:$0xff]  }
 0x5f9   : > { %2273 = vmatprep.subr.bf16.mxu1 %v7006_v61  ;;  %v7991_v61 = vld [vmem:[%s8442_s24 + $0xa8] sm:$0xff]  }
 0x6b3   : > { %v1823_v28 = vpop.f32.mrf.mxu1 }
 0x6b4   : > { %v1824_v29 = vadd.f32 %v6979_v27, %v1823_v28  ;;  %v1872_v27 = vld [vmem:[%s8432_s14 + $0x68] sm:$0xff]  ;;  %v7007_v28 = vcombine.low %v1879_v16, %v1887_v17  ;;  %v8008_v17 = vld [vmem:[%s8442_s24 + $0x40] sm:$0xff]  }
 0x6b5   : > { %v7827_v30 = vpop.f32.mrf.mxu1  ;;  %v8007_v16 = vld [vmem:[%s8442_s24 + $0x88] sm:$0xff]  }
 0x6b6   : > { %v1827_v31 = vadd.f32 %v1824_v29, %v8607_v10  ;;  %v6999_v10 = vcombine.low %v1875_v38, %v1883_v39  ;;  %v7009_v29 = vcombine.low %v1880_v18, %v1888_v19  ;;  %v6992_v30 = vcombine.high %v1863_v24, %v1871_v25  ;;  %v8009_v18 = vld [vmem:[%s8442_s24 + $0xc0] sm:$0xff]  }
 0x6b7   : > { %v8010_v19 = vld [vmem:[%s8442_s24] sm:$0xff]  }
 0x6b8   : > { %v1830_v32 = vsel %vm993_vm2, %v1827_v31, 0.0  ;;  %2151 = vmatpush1.bf16.msra.mxu0 %v6999_v10  ;;  %v1874_v10 = vld [vmem:[%s8432_s14 + $0x78] sm:$0xff] }
 0x6b9   : > { %1831 = vadd.xlane.f32.xlu0 %v1830_v32  ;;  %2152 = vmatprep.subr.bf16.mxu0 %v6984_v48  ;;  %v1881_v32 = vld [vmem:[%s8432_s14 + $0xb0] sm:$0xff]  ;;  %v6998_v46 = vcombine.high %v1866_v42, %v1874_v10  ;;  %v6997_v48 = vcombine.low %v1866_v42, %v1874_v10 }
 0x6bc   : > { %2153 = vmatpush1.bf16.msra.mxu0 %v6983_v50  ;;  %v7981_v50 = vld [vmem:[%s8442_s24 + $0xf8] sm:$0xff]  }
 0x6bd   : > { %2232 = vmatprep.subr.bf16.mxu0 %v7004_v56  ;;  %v7987_v56 = vld [vmem:[%s8442_s24 + $0xb0] sm:$0xff]  }
 0x742   : > { %v1832_v33 = vpop.xlane.xlu0 %1831 }
 0x743   : > { %v1834_v34 = vmul.f32 0.03125, %v1832_v33  ;;  %v1889_v33 = vld [vmem:[%s8432_s14 + $0xf0] sm:$0xff] }
 0x744   : > { %v7012_v38 = vcombine.high %v1881_v32, %v1889_v33  ;;  %v7011_v43 = vcombine.low %v1881_v32, %v1889_v33 }
 0x745   : > { %v1835_v35 = vsub.f32 %v1827_v31, %v1834_v34  ;;  %v6994_v31 = vcombine.high %v1864_v26, %v1872_v27  ;;  %v1882_v34 = vld [vmem:[%s8432_s14 + $0xb8] sm:$0xff] }
 0x747   : > { %v1836_v36 = vmul.f32 %v1835_v35, %v1835_v35 }
 0x749   : > { %v1837_v37 = vsel %vm993_vm2, %v1836_v36, 0.0  ;;  %v6991_v36 = vcombine.low %v1863_v24, %v1871_v25 }
 0x74a   : > { %1838 = vadd.xlane.f32.xlu1 %v1837_v37  ;;  %v6993_v37 = vcombine.low %v1864_v26, %v1872_v27  ;;  %v8801_v27 = vld [vmem:[%s8437_s19] sm:$0xff] }
 0x7d3   : > { %v1839_v62 = vpop.xlane.xlu1 %1838 }
 0x7d4   : > { %v1840_v63 = vmul.f32 0.03125, %v1839_v62  ;;  %v7992_v62 = vld [vmem:[%s8442_s24 + $0x60] sm:$0xff]  }
 0x7d6   : > { %v1841_v0 = vadd.f32 1e-05, %v1840_v63  ;;  %v7993_v63 = vld [vmem:[%s8442_s24 + $0xe0] sm:$0xff]  }
 0x7d8   : > { %8252 = vrsqrt.f32 %v1841_v0  ;;  %v7994_v0 = vld [vmem:[%s8442_s24 + $0x20] sm:$0xff]  }
 0x7e5   : > { %v8253_v2 = vpop.eup %8252 }
 0x7e6   : > { %v1843_v4 = vmul.f32 %v8253_v2, %v1835_v35  ;;  %v1890_v35 = vld [vmem:[%s8432_s14 + $0xf8] sm:$0xff]  ;;  %v7995_v2 = vld [vmem:[%s8442_s24 + $0xa0] sm:$0xff]  }
 0x7e7   : > { %v7014_v39 = vcombine.high %v1882_v34, %v1890_v35  ;;  %v7013_v44 = vcombine.low %v1882_v34, %v1890_v35 }
 0x7e8   : > { %v1850_v6 = vmul.f32 %v6981_v3, %v1843_v4  ;;  %v7996_v3 = vld [vmem:[%s8442_s24 + $0x58] sm:$0xff]  }
 0x7e9   : > { %v7997_v4 = vld [vmem:[%s8442_s24 + $0xd8] sm:$0xff]  }
 0x7ea   : > { %v8714_v12 = vadd.f32 %v6982_v5, %v1850_v6  ;;  %v7998_v5 = vld [vmem:[%s8442_s24 + $0x18] sm:$0xff]  }
 0x7eb   : > { %v7999_v6 = vld [vmem:[%s8442_s24 + $0x98] sm:$0xff]  }
 0x7ec   : > { %v8718_v13 = vpack.c.bf16 %v8714_v12, %v8714_v12 }
 0x7ee   : > { %7015 = vmatmul.mubr.msk.bf16.vlgmr.msra.gmra.mxu0 %vm993_vm2, %v8718_v13  ;;  %7016 = vmatmul.mubr.msk.bf16.vlgmr.msra.gmra.mxu1 %vm993_vm2, %v8718_v13 }
 0x7ef   : > { %2233 = vmatpush1.bf16.msra.mxu0 %v7003_v59  ;;  %2274 = vmatpush1.bf16.msra.mxu1 %v7005_v60  ;;  %v7989_v59 = vld [vmem:[%s8442_s24 + $0xe8] sm:$0xff]  }
 0x7f0   : > { %2234 = vmatprep.subr.bf16.mxu0 %v6988_v14  ;;  %2275 = vmatprep.subr.bf16.mxu1 %v6990_v15  ;;  %v7990_v60 = vld [vmem:[%s8442_s24 + $0x28] sm:$0xff]  }
 0x7f1   : > { %2252 = vmatprep.mubr.bf16.mxu0 %v8377_v58  ;;  %2293 = vmatprep.mubr.bf16.mxu1 %v8377_v58  ;;  %v8005_v14 = vld [vmem:[%s8442_s24 + $0xc8] sm:$0xff]  }
 0x7f2   : > { %v8006_v15 = vld [vmem:[%s8442_s24 + $0x8] sm:$0xff]  }
 0x7f3   : > { %2235 = vmatpush1.bf16.msra.mxu0 %v6987_v20  ;;  %2276 = vmatpush1.bf16.msra.mxu1 %v6989_v21  ;;  %v8011_v20 = vld [vmem:[%s8442_s24 + $0x80] sm:$0xff]   ;;  %v8012_v21 = vld [vmem:[%s8442_s24 + $0x178] sm:$0xff]  }
 0x7f4   : > { %2314 = vmatprep.subr.bf16.mxu0 %v7008_v22  ;;  %2355 = vmatprep.subr.bf16.mxu1 %v7010_v23  ;;  %v8013_v22 = vld [vmem:[%s8442_s24 + $0x1f8] sm:$0xff]   ;;  %v1895_v23 = vlaneseq }
 0x7f6   : > { %7017 = vmatmul.mubr.msk.bf16.vlgmr.msra.gmra.mxu0 %vm993_vm2, %v8718_v13  ;;  %7018 = vmatmul.mubr.msk.bf16.vlgmr.msra.gmra.mxu1 %vm993_vm2, %v8718_v13  ;;  %v8792_v24 = vshrl.u32 %v1895_v23, 7  ;;  %v8024_v23 = vld [vmem:[%s8442_s24 + $0x160] sm:$0xff]  }
 0x7f7   : > { %2315 = vmatpush1.bf16.msra.mxu0 %v7007_v28  ;;  %2356 = vmatpush1.bf16.msra.mxu1 %v7009_v29 }
 0x7f8   : > { %2316 = vmatprep.subr.bf16.mxu0 %v6992_v30  ;;  %2357 = vmatprep.subr.bf16.mxu1 %v6994_v31  ;;  %v8795_v25 = vsub.s32 0, %v8792_v24  ;;  %v8798_v26 = vsub.s32 2, %v8792_v24  ;;  %v8804_v28 = vsub.s32 1, %v8792_v24  ;;  %v8807_v29 = vsub.s32 3, %v8792_v24 }
 0x7f9   : > { %2334 = vmatprep.mubr.bf16.mxu0 %v8377_v58  ;;  %2375 = vmatprep.mubr.bf16.mxu1 %v8377_v58  ;;  %v8818_v42 = vsub.s32 5, %v8792_v24  ;;  %v8821_v10 = vsub.s32 7, %v8792_v24 }
 0x7fa   : > { %v1898_v30 = vrot.slane %v8801_v27, %v8795_v25  ;;  %v1906_v31 = vrot.slane %v8801_v27, %v8798_v26  ;;  %v1902_v32 = vrot.slane %v8801_v27, %v8804_v28  ;;  %v1910_v33 = vrot.slane %v8801_v27, %v8807_v29 }
 0x7fb   : > { %2317 = vmatpush1.bf16.msra.mxu0 %v6991_v36  ;;  %2358 = vmatpush1.bf16.msra.mxu1 %v6993_v37 }
 0x7fc   : > { %2396 = vmatprep.subr.bf16.mxu0 %v7012_v38  ;;  %2437 = vmatprep.subr.bf16.mxu1 %v7014_v39 }
 0x7fe   : > { %7019 = vmatmul.mubr.msk.bf16.vlgmr.msra.gmra.mxu0 %vm993_vm2, %v8718_v13  ;;  %7020 = vmatmul.mubr.msk.bf16.vlgmr.msra.gmra.mxu1 %vm993_vm2, %v8718_v13 }
 0x7ff   : > { %2397 = vmatpush1.bf16.msra.mxu0 %v7011_v43  ;;  %2438 = vmatpush1.bf16.msra.mxu1 %v7013_v44 }
 0x800   : > { %2398 = vmatprep.subr.bf16.mxu0 %v6996_v45  ;;  %2439 = vmatprep.subr.bf16.mxu1 %v6998_v46 }
 0x801   : > { %2416 = vmatprep.mubr.bf16.mxu0 %v8377_v58  ;;  %2457 = vmatprep.mubr.bf16.mxu1 %v8377_v58 }
 0x803   : > { %2399 = vmatpush1.bf16.msra.mxu0 %v6995_v47  ;;  %2440 = vmatpush1.bf16.msra.mxu1 %v6997_v48 }
 0x804   : > { %7376 = vmatprep.subr.bf16.mxu0 %v7980_v49  ;;  %7398 = vmatprep.subr.bf16.mxu1 %v7981_v50 }
 0x806   : > { %7021 = vmatmul.mubr.msk.bf16.vlgmr.msra.gmra.mxu0 %vm993_vm2, %v8718_v13  ;;  %7022 = vmatmul.mubr.msk.bf16.vlgmr.msra.gmra.mxu1 %vm993_vm2, %v8718_v13  ;;  %v8004_v13 = vld [vmem:[%s8442_s24 + $0x48] sm:$0xff]  }
 0x807   : > { %7377 = vmatpush3.bf16.msra.mxu0 %v7982_v51  ;;  %7399 = vmatpush3.bf16.msra.mxu1 %v7983_v52 }
 0x808   : > { %7378 = vmatprep.subr.bf16.mxu0 %v7984_v53  ;;  %7400 = vmatprep.subr.bf16.mxu1 %v7985_v54  ;;  %v1918_v53 = vrot.slane %v8801_v27, %v8818_v42  ;;  %v1926_v54 = vrot.slane %v8801_v27, %v8821_v10 }
 0x80b   : > { %7379 = vmatpush3.bf16.msra.mxu0 %v7986_v55  ;;  %7401 = vmatpush3.bf16.msra.mxu1 %v7987_v56  ;;  %v8014_v55 = vld [vmem:[%s8442_s24 + $0x138] sm:$0xff]  }
 0x80c   : > { %7380 = vmatprep.subr.bf16.mxu0 %v7988_v57  ;;  %7402 = vmatprep.subr.bf16.mxu1 %v7989_v59  ;;  %v8015_v56 = vld [vmem:[%s8442_s24 + $0x1b8] sm:$0xff]  }
 0x80f   : > { %7381 = vmatpush3.bf16.msra.mxu0 %v7990_v60  ;;  %7403 = vmatpush3.bf16.msra.mxu1 %v7991_v61 }
 0x810   : > { %7382 = vmatprep.subr.bf16.mxu0 %v7992_v62  ;;  %7404 = vmatprep.subr.bf16.mxu1 %v7993_v63  ;;  %v8016_v62 = vld [vmem:[%s8442_s24 + $0x170] sm:$0xff]  }
 0x811   : > { %v8017_v63 = vld [vmem:[%s8442_s24 + $0x1f0] sm:$0xff]  }
 0x813   : > { %7383 = vmatpush3.bf16.msra.mxu0 %v7994_v0  ;;  %7405 = vmatpush3.bf16.msra.mxu1 %v7995_v2 }
 0x814   : > { %7384 = vmatprep.subr.bf16.mxu0 %v7996_v3  ;;  %7406 = vmatprep.subr.bf16.mxu1 %v7997_v4 }
 0x817   : > { %7385 = vmatpush3.bf16.msra.mxu0 %v7998_v5  ;;  %7407 = vmatpush3.bf16.msra.mxu1 %v7999_v6  ;;  %v8018_v5 = vld [vmem:[%s8442_s24 + $0x130] sm:$0xff]  }
 0x818   : > { %7386 = vmatprep.subr.bf16.mxu0 %v8000_v7  ;;  %7408 = vmatprep.subr.bf16.mxu1 %v8001_v8  ;;  %v8019_v6 = vld [vmem:[%s8442_s24 + $0x1b0] sm:$0xff]  }
 0x81b   : > { %7387 = vmatpush3.bf16.msra.mxu0 %v8002_v9  ;;  %7409 = vmatpush3.bf16.msra.mxu1 %v8003_v11  ;;  %v8020_v9 = vld [vmem:[%s8442_s24 + $0x168] sm:$0xff]  }
 0x81c   : > { %7388 = vmatprep.subr.bf16.mxu0 %v8004_v13  ;;  %7410 = vmatprep.subr.bf16.mxu1 %v8005_v14  ;;  %v8021_v11 = vld [vmem:[%s8442_s24 + $0x1e8] sm:$0xff]  }
 0x81f   : > { %7389 = vmatpush3.bf16.msra.mxu0 %v8006_v15  ;;  %7411 = vmatpush3.bf16.msra.mxu1 %v8007_v16 }
 0x820   : > { %7390 = vmatprep.subr.bf16.mxu0 %v8008_v17  ;;  %7412 = vmatprep.subr.bf16.mxu1 %v8009_v18 }
 0x823   : > { %7391 = vmatpush3.bf16.msra.mxu0 %v8010_v19  ;;  %7413 = vmatpush3.bf16.msra.mxu1 %v8011_v20  ;;  %v8022_v19 = vld [vmem:[%s8442_s24 + $0x128] sm:$0xff]  }
 0x824   : > { %7420 = vmatprep.subr.bf16.mxu0 %v8012_v21  ;;  %7442 = vmatprep.subr.bf16.mxu1 %v8013_v22  ;;  %v8023_v20 = vld [vmem:[%s8442_s24 + $0x1a8] sm:$0xff]  }
 0x8ae   : > { %v2172_v34 = vpop.f32.mrf.mxu0  ;;  %v2213_v35 = vpop.f32.mrf.mxu1 }
 0x8af   : > { %v2173_v36 = vadd.f32 %v2172_v34, %v1898_v30  ;;  %v2214_v37 = vadd.f32 %v2213_v35, %v1906_v31  ;;  %v8025_v30 = vld [vmem:[%s8442_s24 + $0x1e0] sm:$0xff]  }
 0x8b0   : > { %v2174_v38 = vpop.f32.mrf.mxu0  ;;  %v2215_v39 = vpop.f32.mrf.mxu1  ;;  %v8026_v34 = vld [vmem:[%s8442_s24 + $0x120] sm:$0xff]  }
 0x8b1   : > { %v2175_v40 = vadd.f32 %v2174_v38, %v1902_v32  ;;  %v2216_v41 = vadd.f32 %v2215_v39, %v1910_v33  ;;  %v2466_v43 = vmax.f32 %v2173_v36, 0.0  ;;  %v2468_v44 = vmax.f32 %v2214_v37, 0.0  ;;  %v8027_v35 = vld [vmem:[%s8442_s24 + $0x1a0] sm:$0xff]   ;;  %v8853_v36 = vld [vmem:[%s8437_s19 + $0x8] sm:$0xff]  ;;  %v8028_v39 = vld [vmem:[%s8442_s24 + $0x158] sm:$0xff]  }
 0x8b2   : > { %v2176_v45 = vpop.f32.mrf.mxu0  ;;  %v2217_v46 = vpop.f32.mrf.mxu1  ;;  %v8848_v33 = vsub.s32 6, %v8792_v24 }
 0x8b3   : > { %v2467_v47 = vmax.f32 %v2175_v40, 0.0  ;;  %v2469_v48 = vmax.f32 %v2216_v41, 0.0  ;;  %v2482_v57 = vpack.c.bf16 %v2466_v43, %v2466_v43  ;;  %v2484_v59 = vpack.c.bf16 %v2468_v44, %v2468_v44  ;;  %v8029_v40 = vld [vmem:[%s8442_s24 + $0x1d8] sm:$0xff]  }
 0x8b4   : > { %v2177_v49 = vpop.f32.mrf.mxu0  ;;  %v2218_v50 = vpop.f32.mrf.mxu1  ;;  %v1954_v41 = vrot.slane %v8853_v36, %v8848_v33  ;;  %v8030_v45 = vld [vmem:[%s8442_s24 + $0x118] sm:$0xff]  }
 0x8b5   : > { %v2483_v51 = vpack.c.bf16 %v2467_v47, %v2467_v47  ;;  %v2485_v52 = vpack.c.bf16 %v2469_v48, %v2469_v48  ;;  %v8031_v46 = vld [vmem:[%s8442_s24 + $0x198] sm:$0xff]   ;;  %v8862_v47 = vsub.s32 4, %v8792_v24  ;;  %v8032_v50 = vld [vmem:[%s8442_s24 + $0x150] sm:$0xff]  }
 0x8b6   : > { %v8829_v60 = vpop.f32.mrf.mxu0  ;;  %v8831_v61 = vpop.f32.mrf.mxu1  ;;  %v8035_v24 = vld [vmem:[%s8442_s24 + $0x190] sm:$0xff]  }
 0x8b7   : > { %3561 = vmatprep.mubr.bf16.mxu0 %v2483_v51  ;;  %3601 = vmatprep.mubr.bf16.mxu1 %v2485_v52  ;;  %v8033_v51 = vld [vmem:[%s8442_s24 + $0x1d0] sm:$0xff]  }
 0x8b8   : > { %v2256_v0 = vpop.f32.mrf.mxu0  ;;  %v2297_v2 = vpop.f32.mrf.mxu1  ;;  %3562 = vmatmul.mubr.bf16.vlgmr.msra.gmra.mxu0 %v2482_v57  ;;  %3602 = vmatmul.mubr.bf16.vlgmr.msra.gmra.mxu1 %v2484_v59  ;;  %v1922_v57 = vrot.slane %v8801_v27, %v8848_v33 }
 0x8b9   : > { %v2257_v3 = vadd.f32 %v2256_v0, %v1918_v53  ;;  %v2298_v4 = vadd.f32 %v2297_v2, %v1926_v54  ;;  %7421 = vmatpush3.bf16.msra.mxu0 %v8014_v55  ;;  %7443 = vmatpush3.bf16.msra.mxu1 %v8015_v56  ;;  %v8034_v55 = vld [vmem:[%s8442_s24 + $0x110] sm:$0xff]   ;;  %v1914_v56 = vrot.slane %v8801_v27, %v8862_v47  ;;  %v8037_v0 = vld [vmem:[%s8442_s24 + $0x1c8] sm:$0xff]  }
 0x8ba   : > { %v2258_v7 = vpop.f32.mrf.mxu0  ;;  %v2299_v8 = vpop.f32.mrf.mxu1  ;;  %7422 = vmatprep.subr.bf16.mxu0 %v8016_v62  ;;  %7444 = vmatprep.subr.bf16.mxu1 %v8017_v63  ;;  %v8036_v63 = vld [vmem:[%s8442_s24 + $0x148] sm:$0xff]   ;;  %v1934_v2 = vrot.slane %v8853_v36, %v8804_v28 }
 0x8bb   : > { %v2471_v13 = vmax.f32 %v2257_v3, 0.0  ;;  %v2473_v14 = vmax.f32 %v2298_v4, 0.0  ;;  %v1942_v3 = vrot.slane %v8853_v36, %v8807_v29  ;;  %v8038_v27 = vld [vmem:[%s8442_s24 + $0x108] sm:$0xff]   ;;  %v2255_v7 = vadd.f32 %v8829_v60, %v1914_v56  ;;  %v8044_v60 = vld [vmem:[%s8442_s24 + $0x278] sm:$0xff]  }
 0x8bc   : > { %v2259_v15 = vpop.f32.mrf.mxu0  ;;  %v2300_v16 = vpop.f32.mrf.mxu1  ;;  %v2296_v8 = vadd.f32 %v8831_v61, %v1922_v57  ;;  %v8045_v61 = vld [vmem:[%s8442_s24 + $0x2f8] sm:$0xff]  }
 0x8bd   : > { %v2487_v17 = vpack.c.bf16 %v2471_v13, %v2471_v13  ;;  %v2489_v18 = vpack.c.bf16 %v2473_v14, %v2473_v14  ;;  %7423 = vmatpush3.bf16.msra.mxu0 %v8018_v5  ;;  %7445 = vmatpush3.bf16.msra.mxu1 %v8019_v6  ;;  %v8039_v6 = vld [vmem:[%s8442_s24 + $0x188] sm:$0xff]   ;;  %v8042_v15 = vld [vmem:[%s8442_s24 + $0x100] sm:$0xff]   ;;  %v8062_v56 = vld [vmem:[%s8442_s24 + $0x218] sm:$0xff]  }
 0x8be   : > { %v8841_v21 = vpop.f32.mrf.mxu0  ;;  %v8843_v22 = vpop.f32.mrf.mxu1  ;;  %7424 = vmatprep.subr.bf16.mxu0 %v8020_v9  ;;  %7446 = vmatprep.subr.bf16.mxu1 %v8021_v11  ;;  %v8040_v9 = vld [vmem:[%s8442_s24 + $0x140] sm:$0xff]   ;;  %v8063_v57 = vld [vmem:[%s8442_s24 + $0x298] sm:$0xff]  }
 0x8bf   : > { %3641 = vmatprep.mubr.bf16.mxu0 %v2487_v17  ;;  %3681 = vmatprep.mubr.bf16.mxu1 %v2489_v18  ;;  %v8041_v11 = vld [vmem:[%s8442_s24 + $0x1c0] sm:$0xff]   ;;  %v2470_v17 = vmax.f32 %v2255_v7, 0.0  ;;  %v2472_v18 = vmax.f32 %v2296_v8, 0.0  ;;  %v8070_v7 = vld [vmem:[%s8442_s24 + $0x208] sm:$0xff]  }
 0x8c0   : > { %v2338_v31 = vpop.f32.mrf.mxu0  ;;  %v2379_v32 = vpop.f32.mrf.mxu1  ;;  %v8043_v16 = vld [vmem:[%s8442_s24 + $0x180] sm:$0xff]  }
 0x8c1   : > { %7425 = vmatpush3.bf16.msra.mxu0 %v8022_v19  ;;  %7447 = vmatpush3.bf16.msra.mxu1 %v8023_v20  ;;  %v2339_v13 = vadd.f32 %v2338_v31, %v1934_v2  ;;  %v2380_v14 = vadd.f32 %v2379_v32, %v1942_v3  ;;  %v2488_v31 = vpack.c.bf16 %v2472_v18, %v2472_v18  ;;  %v8047_v32 = vld [vmem:[%s8442_s24 + $0x2b8] sm:$0xff]   ;;  %v8067_v2 = vld [vmem:[%s8442_s24 + $0x290] sm:$0xff]   ;;  %v8068_v3 = vld [vmem:[%s8442_s24 + $0x248] sm:$0xff]  }
 0x8c2   : > { %v2340_v37 = vpop.f32.mrf.mxu0  ;;  %v2381_v38 = vpop.f32.mrf.mxu1  ;;  %7426 = vmatprep.subr.bf16.mxu0 %v8024_v23  ;;  %7448 = vmatprep.subr.bf16.mxu1 %v8025_v30  ;;  %v8046_v23 = vld [vmem:[%s8442_s24 + $0x238] sm:$0xff]   ;;  %v2486_v30 = vpack.c.bf16 %v2470_v17, %v2470_v17  ;;  %v8074_v17 = vld [vmem:[%s8442_s24 + $0x200] sm:$0xff]  }
 0x8c3   : > { %v2475_v19 = vmax.f32 %v2339_v13, 0.0  ;;  %v2477_v20 = vmax.f32 %v2380_v14, 0.0  ;;  %v8049_v37 = vld [vmem:[%s8442_s24 + $0x2f0] sm:$0xff]   ;;  %v8073_v14 = vld [vmem:[%s8442_s24 + $0x2c0] sm:$0xff]  }
 0x8c4   : > { %v2341_v43 = vpop.f32.mrf.mxu0  ;;  %v2382_v44 = vpop.f32.mrf.mxu1 }
 0x8c5   : > { %7427 = vmatpush3.bf16.msra.mxu0 %v8026_v34  ;;  %7449 = vmatpush3.bf16.msra.mxu1 %v8027_v35  ;;  %v2491_v34 = vpack.c.bf16 %v2475_v19, %v2475_v19  ;;  %v8048_v35 = vld [vmem:[%s8442_s24 + $0x270] sm:$0xff]   ;;  %v2493_v38 = vpack.c.bf16 %v2477_v20, %v2477_v20  ;;  %v8053_v43 = vld [vmem:[%s8442_s24 + $0x2e8] sm:$0xff]  }
 0x8c6   : > { %v8864_v48 = vpop.f32.mrf.mxu0  ;;  %v2459_v49 = vpop.f32.mrf.mxu1  ;;  %7428 = vmatprep.subr.bf16.mxu0 %v8028_v39  ;;  %7450 = vmatprep.subr.bf16.mxu1 %v8029_v40  ;;  %v8050_v39 = vld [vmem:[%s8442_s24 + $0x230] sm:$0xff]   ;;  %v8054_v44 = vld [vmem:[%s8442_s24 + $0x228] sm:$0xff]  }
 0x8c7   : > { %v8868_v52 = vadd.f32 %v2459_v49, %v1954_v41  ;;  %v8051_v40 = vld [vmem:[%s8442_s24 + $0x2b0] sm:$0xff]   ;;  %v8052_v41 = vld [vmem:[%s8442_s24 + $0x268] sm:$0xff]   ;;  %v8057_v49 = vld [vmem:[%s8442_s24 + $0x2e0] sm:$0xff]  }
 0x8c8   : > { %v8870_v53 = vpop.f32.mrf.mxu0  ;;  %v8872_v54 = vpop.f32.mrf.mxu1 }
 0x8c9   : > { %7429 = vmatpush3.bf16.msra.mxu0 %v8030_v45  ;;  %7451 = vmatpush3.bf16.msra.mxu1 %v8031_v46  ;;  %v8055_v45 = vld [vmem:[%s8442_s24 + $0x2a8] sm:$0xff]   ;;  %v8056_v46 = vld [vmem:[%s8442_s24 + $0x260] sm:$0xff]  }
 0x8ca   : > { %v2422_v59 = vpop.f32.mrf.mxu0  ;;  %v2463_v62 = vpop.f32.mrf.mxu1  ;;  %7430 = vmatprep.subr.bf16.mxu0 %v8032_v50  ;;  %7452 = vmatprep.subr.bf16.mxu1 %v8033_v51  ;;  %v8058_v50 = vld [vmem:[%s8442_s24 + $0x220] sm:$0xff]  }
 0x8cb   : > { %v8059_v51 = vld [vmem:[%s8442_s24 + $0x2a0] sm:$0xff]   ;;  %v8064_v59 = vld [vmem:[%s8442_s24 + $0x250] sm:$0xff]  }
 0x8cc   : > { %v2423_v4 = vpop.f32.mrf.mxu0  ;;  %v2464_v5 = vpop.f32.mrf.mxu1  ;;  %v8065_v62 = vld [vmem:[%s8442_s24 + $0x2d0] sm:$0xff]  }
 0x8cd   : > { %7431 = vmatpush3.bf16.msra.mxu0 %v8034_v55  ;;  %7453 = vmatpush3.bf16.msra.mxu1 %v8035_v24  ;;  %v8060_v55 = vld [vmem:[%s8442_s24 + $0x258] sm:$0xff]   ;;  %v1938_v4 = vrot.slane %v8853_v36, %v8798_v26  ;;  %v8069_v5 = vld [vmem:[%s8442_s24 + $0x2c8] sm:$0xff]  }
 0x8ce   : > { %7432 = vmatprep.subr.bf16.mxu0 %v8036_v63  ;;  %7454 = vmatprep.subr.bf16.mxu1 %v8037_v0  ;;  %v8061_v24 = vld [vmem:[%s8442_s24 + $0x2d8] sm:$0xff]   ;;  %v8066_v63 = vld [vmem:[%s8442_s24 + $0x210] sm:$0xff]   ;;  %v1930_v0 = vrot.slane %v8853_v36, %v8795_v25 }
 0x8cf   : > { %v2378_v13 = vadd.f32 %v8843_v22, %v1938_v4  ;;  %v8077_v22 = vld [vmem:[%s8442_s24 + $0x3f8] sm:$0xff]  }
 0x8d0   : > { %v2337_v8 = vadd.f32 %v8841_v21, %v1930_v0  ;;  %v8075_v21 = vld [vmem:[%s8442_s24 + $0x280] sm:$0xff]   ;;  %v8100_v0 = vld [vmem:[%s8442_s24 + $0x348] sm:$0xff]  }
 0x8d1   : > { %7433 = vmatpush3.bf16.msra.mxu0 %v8038_v27  ;;  %7455 = vmatpush3.bf16.msra.mxu1 %v8039_v6  ;;  %v1950_v27 = vrot.slane %v8853_v36, %v8818_v42  ;;  %v1958_v6 = vrot.slane %v8853_v36, %v8821_v10 }
 0x8d2   : > { %7434 = vmatprep.subr.bf16.mxu0 %v8040_v9  ;;  %7456 = vmatprep.subr.bf16.mxu1 %v8041_v11  ;;  %v8071_v9 = vld [vmem:[%s8442_s24 + $0x288] sm:$0xff]   ;;  %v8072_v11 = vld [vmem:[%s8442_s24 + $0x240] sm:$0xff]   ;;  %v2474_v18 = vmax.f32 %v2337_v8, 0.0 }
 0x8d3   : > { %v8107_v8 = vld [vmem:[%s8442_s24 + $0x380] sm:$0xff]  }
 0x8d5   : > { %7435 = vmatpush3.bf16.msra.mxu0 %v8042_v15  ;;  %7457 = vmatpush3.bf16.msra.mxu1 %v8043_v16  ;;  %v2421_v15 = vadd.f32 %v8870_v53, %v1950_v27  ;;  %v2462_v16 = vadd.f32 %v8872_v54, %v1958_v6  ;;  %v8078_v53 = vld [vmem:[%s8442_s24 + $0x338] sm:$0xff]   ;;  %v8104_v27 = vld [vmem:[%s8442_s24 + $0x340] sm:$0xff]  }
 0x8d6   : > { %7464 = vmatprep.subr.bf16.mxu0 %v8044_v60  ;;  %7486 = vmatprep.subr.bf16.mxu1 %v8045_v61  ;;  %v8076_v60 = vld [vmem:[%s8442_s24 + $0x378] sm:$0xff]   ;;  %v2476_v61 = vmax.f32 %v2378_v13, 0.0  ;;  %v8105_v6 = vld [vmem:[%s8442_s24 + $0x3c0] sm:$0xff]  }
 0x8d7   : > { %v2479_v19 = vmax.f32 %v2421_v15, 0.0  ;;  %v2481_v20 = vmax.f32 %v2462_v16, 0.0  ;;  %v8079_v54 = vld [vmem:[%s8442_s24 + $0x3b8] sm:$0xff]  }
 0x8d8   : > { %3642 = vmatmul.mubr.bf16.vlgmr.msra.gmra.mxu0 %v2486_v30  ;;  %3682 = vmatmul.mubr.bf16.vlgmr.msra.gmra.mxu1 %v2488_v31  ;;  %v2492_v30 = vpack.c.bf16 %v2476_v61, %v2476_v61  ;;  %v8080_v31 = vld [vmem:[%s8442_s24 + $0x370] sm:$0xff]  }
 0x8d9   : > { %7465 = vmatpush3.bf16.msra.mxu0 %v8046_v23  ;;  %3721 = vmatprep.mubr.bf16.mxu0 %v2491_v34  ;;  %v2490_v23 = vpack.c.bf16 %v2474_v18, %v2474_v18  ;;  %v8081_v34 = vld [vmem:[%s8442_s24 + $0x3f0] sm:$0xff]  }
 0x8da   : > { %7487 = vmatpush3.bf16.msra.mxu1 %v8047_v32  ;;  %3761 = vmatprep.mubr.bf16.mxu1 %v2493_v38  ;;  %v2495_v32 = vpack.c.bf16 %v2479_v19, %v2479_v19  ;;  %v8083_v38 = vld [vmem:[%s8442_s24 + $0x3b0] sm:$0xff]  }
 0x8db   : > { %7466 = vmatprep.subr.bf16.mxu0 %v8048_v35  ;;  %7488 = vmatprep.subr.bf16.mxu1 %v8049_v37  ;;  %v2497_v35 = vpack.c.bf16 %v2481_v20, %v2481_v20  ;;  %v8082_v37 = vld [vmem:[%s8442_s24 + $0x330] sm:$0xff]  }
 0x8dd   : > { %7467 = vmatpush3.bf16.msra.mxu0 %v8050_v39  ;;  %v8084_v39 = vld [vmem:[%s8442_s24 + $0x368] sm:$0xff]  }
 0x8de   : > { %7489 = vmatpush3.bf16.msra.mxu1 %v8051_v40  ;;  %7468 = vmatprep.subr.bf16.mxu0 %v8052_v41  ;;  %v8085_v40 = vld [vmem:[%s8442_s24 + $0x3e8] sm:$0xff]  }
 0x8df   : > { %7490 = vmatprep.subr.bf16.mxu1 %v8053_v43  ;;  %v8086_v41 = vld [vmem:[%s8442_s24 + $0x328] sm:$0xff]  }
 0x8e0   : > { %v8087_v43 = vld [vmem:[%s8442_s24 + $0x3a8] sm:$0xff]  }
 0x8e1   : > { %7469 = vmatpush3.bf16.msra.mxu0 %v8054_v44  ;;  %v8088_v44 = vld [vmem:[%s8442_s24 + $0x360] sm:$0xff]  }
 0x8e2   : > { %7491 = vmatpush3.bf16.msra.mxu1 %v8055_v45  ;;  %7470 = vmatprep.subr.bf16.mxu0 %v8056_v46  ;;  %v8089_v45 = vld [vmem:[%s8442_s24 + $0x3e0] sm:$0xff]  }
 0x8e3   : > { %7492 = vmatprep.subr.bf16.mxu1 %v8057_v49  ;;  %v8090_v46 = vld [vmem:[%s8442_s24 + $0x320] sm:$0xff]  }
 0x8e4   : > { %v8091_v49 = vld [vmem:[%s8442_s24 + $0x3a0] sm:$0xff]  }
 0x8e5   : > { %7471 = vmatpush3.bf16.msra.mxu0 %v8058_v50  ;;  %v8092_v50 = vld [vmem:[%s8442_s24 + $0x358] sm:$0xff]  }
 0x8e6   : > { %7493 = vmatpush3.bf16.msra.mxu1 %v8059_v51  ;;  %7472 = vmatprep.subr.bf16.mxu0 %v8060_v55  ;;  %v8093_v51 = vld [vmem:[%s8442_s24 + $0x3d8] sm:$0xff]  }
 0x8e7   : > { %7494 = vmatprep.subr.bf16.mxu1 %v8061_v24  ;;  %v8094_v55 = vld [vmem:[%s8442_s24 + $0x318] sm:$0xff]  }
 0x8e8   : > { %v8095_v24 = vld [vmem:[%s8442_s24 + $0x398] sm:$0xff]  }
 0x8e9   : > { %7473 = vmatpush3.bf16.msra.mxu0 %v8062_v56  ;;  %v8096_v56 = vld [vmem:[%s8442_s24 + $0x350] sm:$0xff]  }
 0x8ea   : > { %7495 = vmatpush3.bf16.msra.mxu1 %v8063_v57  ;;  %7474 = vmatprep.subr.bf16.mxu0 %v8064_v59  ;;  %v8097_v57 = vld [vmem:[%s8442_s24 + $0x3d0] sm:$0xff]  }
 0x8eb   : > { %7496 = vmatprep.subr.bf16.mxu1 %v8065_v62  ;;  %v8098_v59 = vld [vmem:[%s8442_s24 + $0x310] sm:$0xff]   ;;  %v1946_v62 = vrot.slane %v8853_v36, %v8862_v47  ;;  %v8106_v36 = vld [vmem:[%s8442_s24 + $0x300] sm:$0xff]  }
 0x8ed   : > { %7475 = vmatpush3.bf16.msra.mxu0 %v8066_v63  ;;  %v8099_v63 = vld [vmem:[%s8442_s24 + $0x390] sm:$0xff]   ;;  %v2419_v4 = vadd.f32 %v8864_v48, %v1946_v62 }
 0x8ee   : > { %7497 = vmatpush3.bf16.msra.mxu1 %v8067_v2  ;;  %7476 = vmatprep.subr.bf16.mxu0 %v8068_v3  ;;  %v8101_v2 = vld [vmem:[%s8442_s24 + $0x3c8] sm:$0xff]  }
 0x8ef   : > { %7498 = vmatprep.subr.bf16.mxu1 %v8069_v5  ;;  %v8102_v3 = vld [vmem:[%s8442_s24 + $0x308] sm:$0xff]  }
 0x8f0   : > { %v8103_v5 = vld [vmem:[%s8442_s24 + $0x388] sm:$0xff]  }
 0x8f1   : > { %7477 = vmatpush3.bf16.msra.mxu0 %v8070_v7  ;;  %v2478_v7 = vmax.f32 %v2419_v4, 0.0 }
 0x8f2   : > { %7499 = vmatpush3.bf16.msra.mxu1 %v8071_v9  ;;  %7478 = vmatprep.subr.bf16.mxu0 %v8072_v11  ;;  %v2480_v9 = vmax.f32 %v8868_v52, 0.0  ;;  %v7023_v52 = vld [vmem:[%s8447_s30] ss:$0 sm:$0xff] }
 0x8f3   : > { %7500 = vmatprep.subr.bf16.mxu1 %v8073_v14  ;;  %v2494_v11 = vpack.c.bf16 %v2478_v7, %v2478_v7 }
 0x8f4   : > { %v2496_v48 = vpack.c.bf16 %v2480_v9, %v2480_v9 }
 0x8f5   : > { %7479 = vmatpush3.bf16.msra.mxu0 %v8074_v17 }
 0x8f6   : > { %7501 = vmatpush3.bf16.msra.mxu1 %v8075_v21  ;;  %7508 = vmatprep.subr.bf16.mxu0 %v8076_v60 }
 0x8f7   : > { %7530 = vmatprep.subr.bf16.mxu1 %v8077_v22 }
 0x8f8   : > { %3722 = vmatmul.mubr.bf16.vlgmr.msra.gmra.mxu0 %v2490_v23 }
 0x8f9   : > { %3762 = vmatmul.mubr.bf16.vlgmr.msra.gmra.mxu1 %v2492_v30  ;;  %7509 = vmatpush3.bf16.msra.mxu0 %v8078_v53 }
 0x8fa   : > { %3801 = vmatprep.mubr.bf16.mxu0 %v2495_v32  ;;  %7531 = vmatpush3.bf16.msra.mxu1 %v8079_v54 }
 0x8fb   : > { %3841 = vmatprep.mubr.bf16.mxu1 %v2497_v35  ;;  %7510 = vmatprep.subr.bf16.mxu0 %v8080_v31 }
 0x8fc   : > { %7532 = vmatprep.subr.bf16.mxu1 %v8081_v34 }
 0x8fd   : > { %7511 = vmatpush3.bf16.msra.mxu0 %v8082_v37 }
 0x8fe   : > { %7533 = vmatpush3.bf16.msra.mxu1 %v8083_v38  ;;  %7512 = vmatprep.subr.bf16.mxu0 %v8084_v39 }
 0x8ff   : > { %7534 = vmatprep.subr.bf16.mxu1 %v8085_v40 }
 0x901   : > { %7513 = vmatpush3.bf16.msra.mxu0 %v8086_v41 }
 0x902   : > { %7535 = vmatpush3.bf16.msra.mxu1 %v8087_v43  ;;  %7514 = vmatprep.subr.bf16.mxu0 %v8088_v44 }
 0x903   : > { %7536 = vmatprep.subr.bf16.mxu1 %v8089_v45 }
 0x905   : > { %7515 = vmatpush3.bf16.msra.mxu0 %v8090_v46 }
 0x906   : > { %7537 = vmatpush3.bf16.msra.mxu1 %v8091_v49  ;;  %7516 = vmatprep.subr.bf16.mxu0 %v8092_v50 }
 0x907   : > { %7538 = vmatprep.subr.bf16.mxu1 %v8093_v51 }
 0x909   : > { %7517 = vmatpush3.bf16.msra.mxu0 %v8094_v55 }
 0x90a   : > { %7539 = vmatpush3.bf16.msra.mxu1 %v8095_v24  ;;  %7518 = vmatprep.subr.bf16.mxu0 %v8096_v56 }
 0x90b   : > { %7540 = vmatprep.subr.bf16.mxu1 %v8097_v57 }
 0x90d   : > { %7519 = vmatpush3.bf16.msra.mxu0 %v8098_v59 }
 0x90e   : > { %7541 = vmatpush3.bf16.msra.mxu1 %v8099_v63  ;;  %7520 = vmatprep.subr.bf16.mxu0 %v8100_v0 }
 0x90f   : > { %7542 = vmatprep.subr.bf16.mxu1 %v8101_v2 }
 0x911   : > { %7521 = vmatpush3.bf16.msra.mxu0 %v8102_v3 }
 0x912   : > { %7543 = vmatpush3.bf16.msra.mxu1 %v8103_v5  ;;  %7522 = vmatprep.subr.bf16.mxu0 %v8104_v27 }
 0x913   : > { %7544 = vmatprep.subr.bf16.mxu1 %v8105_v6 }
 0x915   : > { %7523 = vmatpush3.bf16.msra.mxu0 %v8106_v36 }
 0x916   : > { %7545 = vmatpush3.bf16.msra.mxu1 %v8107_v8  ;;  %7828 = vmatprep.subr.mxu0 %v8367_v1 }
 0x917   : > { %7844 = vmatprep.subr.mxu1 %v8367_v1 }
 0x918   : > { %3802 = vmatmul.mubr.bf16.vlgmr.msra.gmra.mxu0 %v2494_v11 }
 0x919   : > { %3842 = vmatmul.mubr.bf16.vlgmr.msra.gmra.mxu1 %v2496_v48  ;;  %7836 = vmatprep.mubr.msk.f32.mxu0 %vm8368_vm0, %v8367_v1 }
 0x91a   : > { %7846 = vmatprep.mubr.msk.f32.mxu1 %vm8368_vm0, %v8367_v1 }
 0x978   : > { %v7392_v13 = vpop.f32.mrf.mxu0  ;;  %v7414_v14 = vpop.f32.mrf.mxu1 }
 0x97a   : > { %v7393_v15 = vpop.f32.mrf.mxu0  ;;  %v7415_v16 = vpop.f32.mrf.mxu1 }
 0x97b   : > { %v7394_v17 = vadd.f32 %v7393_v15, %v7392_v13  ;;  %v7416_v18 = vadd.f32 %v7415_v16, %v7414_v14  ;;  %v3882_v15 = vld [vmem:[%s8462_s20 + $0x18] sm:$0xff]  ;;  %v3881_v16 = vld [vmem:[%s8462_s20 + $0x10] sm:$0xff] }
 0x97c   : > { %v7395_v21 = vpop.f32.mrf.mxu0  ;;  %v7417_v60 = vpop.f32.mrf.mxu1  ;;  %7829 = vmatpush3.msra.mxu0 %v3882_v15 }
 0x97d   : > { %v3564_v61 = vadd.f32 %v7394_v17, %v7023_v52  ;;  %7830 = vmatprep.subr.mxu0 %v8367_v1  ;;  %v3880_v17 = vld [vmem:[%s8462_s20 + $0x8] sm:$0xff] }
 0x97e   : > { %v7396_v22 = vpop.f32.mrf.mxu0  ;;  %v7418_v19 = vpop.f32.mrf.mxu1  ;;  %7831 = vmatpush3.msra.mxu0 %v3881_v16 }
 0x97f   : > { %v3604_v20 = vadd.f32 %v7416_v18, %v3564_v61  ;;  %7832 = vmatprep.subr.mxu0 %v8367_v1  ;;  %v7152_v22 = vld [vmem:[%s9433_s2] ss:$0 sm:$0xff]  ;;  %s9437_s2 = smov 104  }
 0x980   : > { %7833 = vmatpush3.msra.mxu0 %v3880_v17 }
 0x981   : > { %7834 = vmatprep.subr.mxu0 %v8367_v1 }
 0x998   : > { %v7436_v53 = vpop.f32.mrf.mxu0  ;;  %v7458_v23 = vpop.f32.mrf.mxu1 }
 0x99a   : > { %v7437_v54 = vpop.f32.mrf.mxu0  ;;  %v7459_v30 = vpop.f32.mrf.mxu1 }
 0x99b   : > { %v7438_v46 = vadd.f32 %v7437_v54, %v7436_v53  ;;  %v7460_v50 = vadd.f32 %v7459_v30, %v7458_v23  ;;  %v7154_v54 = vld [vmem:[%s9435_s16] ss:$0 sm:$0xff]  ;;  %s9440_s16 = sld [smem:[#allocation13_spill]] }
 0x99c   : > { %v7439_v31 = vpop.f32.mrf.mxu0  ;;  %v7461_v32 = vpop.f32.mrf.mxu1 }
 0x99d   : > { %v3644_v49 = vadd.f32 %v7438_v46, %v3604_v20  ;;  %v7153_v20 = vld [vmem:[%s9434_s23] ss:$0 sm:$0xff]  ;;  %s9438_s23 = smov 96  }
 0x99e   : > { %v7440_v34 = vpop.f32.mrf.mxu0  ;;  %v7462_v35 = vpop.f32.mrf.mxu1 }
 0x99f   : > { %v3684_v55 = vadd.f32 %v7460_v50, %v3644_v49 }
 0x9b8   : > { %v7480_v37 = vpop.f32.mrf.mxu0 }
 0x9b9   : > { %v7502_v38 = vpop.f32.mrf.mxu1 }
 0x9ba   : > { %v7481_v39 = vpop.f32.mrf.mxu0 }
 0x9bb   : > { %v7503_v40 = vpop.f32.mrf.mxu1  ;;  %v7482_v51 = vadd.f32 %v7481_v39, %v7480_v37 }
 0x9bc   : > { %v7483_v41 = vpop.f32.mrf.mxu0  ;;  %v7504_v57 = vadd.f32 %v7503_v40, %v7502_v38 }
 0x9bd   : > { %v7505_v43 = vpop.f32.mrf.mxu1  ;;  %v3724_v24 = vadd.f32 %v7482_v51, %v3684_v55 }
 0x9be   : > { %v7484_v44 = vpop.f32.mrf.mxu0 }
 0x9bf   : > { %v7506_v45 = vpop.f32.mrf.mxu1  ;;  %v3764_v63 = vadd.f32 %v7504_v57, %v3724_v24 }
 0x9d8   : > { %v7524_v56 = vpop.f32.mrf.mxu0 }
 0x9d9   : > { %v7546_v59 = vpop.f32.mrf.mxu1 }
 0x9da   : > { %v7525_v62 = vpop.f32.mrf.mxu0 }
 0x9db   : > { %v7526_v0 = vadd.f32 %v7525_v62, %v7524_v56  ;;  %v7547_v2 = vpop.f32.mrf.mxu1 }
 0x9dc   : > { %v7527_v3 = vpop.f32.mrf.mxu0  ;;  %v7548_v5 = vadd.f32 %v7547_v2, %v7546_v59 }
 0x9dd   : > { %v3804_v4 = vadd.f32 %v7526_v0, %v3764_v63  ;;  %v7549_v27 = vpop.f32.mrf.mxu1 }
 0x9de   : > { %v7528_v6 = vpop.f32.mrf.mxu0 }
 0x9df   : > { %v3844_v36 = vadd.f32 %v7548_v5, %v3804_v4  ;;  %v7550_v7 = vpop.f32.mrf.mxu1 }
 0x9e1   : > { %v3849_v8 = vadd.f32 %v3844_v36, %v8714_v12  ;;  %v3879_v12 = vld [vmem:[%s8462_s20] sm:$0xff] }
 0x9e2   : > { %7835 = vmatpush3.msra.mxu0 %v3879_v12 }
 0x9e3   : > { %v3852_v9 = vsel %vm993_vm2, %v3849_v8, 0.0  ;;  %7839 = vmatprep.subr.mxu0 %v8367_v1 }
 0x9e4   : > { %3853 = vadd.xlane.f32.xlu0 %v3852_v9 }
 0xa6d   : > { %v3854_v11 = vpop.xlane.xlu0 %3853 }
 0xa6e   : > { %v3855_v48 = vmul.f32 0.03125, %v3854_v11 }
 0xa70   : > { %v3856_v13 = vsub.f32 %v3849_v8, %v3855_v48 }
 0xa72   : > { %v3857_v14 = vmul.f32 %v3856_v13, %v3856_v13 }
 0xa74   : > { %v3858_v52 = vsel %vm993_vm2, %v3857_v14, 0.0 }
 0xa75   : > { %3859 = vadd.xlane.f32.xlu0 %v3858_v52 }
 0xafe   : > { %v3860_v18 = vpop.xlane.xlu0 %3859 }
 0xaff   : > { %v3861_v21 = vmul.f32 0.03125, %v3860_v18 }
 0xb01   : > { %v3862_v60 = vadd.f32 1e-05, %v3861_v21 }
 0xb03   : > { %8254 = vrsqrt.f32 %v3862_v60 }
 0xb10   : > { %v8255_v61 = vpop.eup %8254 }
 0xb11   : > { %v3864_v19 = vmul.f32 %v8255_v61, %v3856_v13 }
 0xb13   : > { %v3871_v53 = vmul.f32 %v7152_v22, %v3864_v19 }
 0xb15   : > { %v8994_v23 = vadd.f32 %v7153_v20, %v3871_v53 }
 0xb17   : > { %7837 = vmatmul.mubr.msk.f32.vlgmr.msra.gmra.mxu0 %vm993_vm2, %v8994_v23 }
 0xb18   : > { %7841 = vmatprep.mubr.msk.f32.mxu0 %vm8368_vm0, %v8367_v1 }
 0xbd7   : > { %v3959_v30 = vpop.f32.mrf.mxu0 }
 0xbd8   : > { %v3960_v31 = vadd.f32 %v7154_v54, %v3959_v30 }
 0xbd9   : > { %v7838_v32 = vpop.f32.mrf.mxu0 }
 0xbda   : > { %3966 = vrot.lane.b32.xlu0 %v3960_v31, %s8372_s22  ;;  %3964 = vrot.lane.b32.xlu1 %v3960_v31, %s9436_s3  ;;  %s9439_s3 = smov 64   ;;  %s9441_s22 = smov 8  }
 0xbde   : > { %3968 = vrot.lane.b32.xlu1 %v3960_v31, %s9437_s2  ;;  %s9442_s2 = sld [smem:[#allocation14_spill]] }
 0xbe2   : > { %3970 = vrot.lane.b32.xlu1 %v3960_v31, %s9438_s23 }
 0xc4c   : > { %v9005_v34 = vpop.permute.xlu0 %3966  ;;  %v3965_v35 = vpop.permute.xlu1 %3964 }
 0xc4d   : > { %4122 = vrot.lane.b32.xlu1 %v9005_v34, %s9438_s23  ;;  %4046 = vrot.lane.b32.xlu0 %v3965_v35, %s9438_s23 }
 0xc50   : > { %v9010_v37 = vpop.permute.xlu1 %3968 }
 0xc51   : > { %4198 = vrot.lane.b32.xlu0 %v9010_v37, %s9438_s23  ;;  %s9443_s23 = smov 24  }
 0xc54   : > { %v3971_v38 = vpop.permute.xlu1 %3970 }
 0xc55   : > { %7840 = vmatpush3.xpose.msk.msra.mxu0 %vm1076_vm3, %v3971_v38 }
 0xc56   : > { %7849 = vmatprep.subr.mxu0 %v8367_v1 }
 0xc58   : > { %7842 = vmatmul.mubr.msk.f32.vlgmr.msra.gmra.mxu0 %vm1076_vm3, %v3960_v31 }
 0xc59   : > { %7851 = vmatprep.mubr.msk.f32.mxu0 %vm8368_vm0, %v8367_v1 }
 0xcbf   : > { %v4047_v39 = vpop.permute.xlu0 %4046  ;;  %v4123_v40 = vpop.permute.xlu1 %4122 }
 0xcc0   : > { %7845 = vmatpush3.xpose.msk.msra.mxu1 %vm1076_vm3, %v4047_v39  ;;  %7850 = vmatpush3.xpose.msk.msra.mxu0 %vm1076_vm3, %v4123_v40  ;;  %v4640_v39 = vld [vmem:[%s9440_s16 + $0x18] sm:$0xff]  ;;  %v4639_v40 = vld [vmem:[%s9440_s16 + $0x10] sm:$0xff] }
 0xcc1   : > { %7854 = vmatprep.subr.mxu1 %v8367_v1  ;;  %7859 = vmatprep.subr.mxu0 %v8367_v1 }
 0xcc3   : > { %7847 = vmatmul.mubr.msk.f32.vlgmr.msra.gmra.mxu1 %vm1076_vm3, %v3965_v35  ;;  %v4199_v41 = vpop.permute.xlu0 %4198  ;;  %7852 = vmatmul.mubr.msk.f32.vlgmr.msra.gmra.mxu0 %vm1076_vm3, %v9005_v34 }
 0xcc4   : > { %7855 = vmatpush3.xpose.msk.msra.mxu1 %vm1076_vm3, %v4199_v41  ;;  %7856 = vmatprep.mubr.msk.f32.mxu1 %vm8368_vm0, %v8367_v1  ;;  %v4638_v41 = vld [vmem:[%s9440_s16 + $0x8] sm:$0xff] }
 0xcc5   : > { %7864 = vmatprep.subr.mxu1 %v8367_v1  ;;  %7861 = vmatprep.mubr.msk.f32.mxu0 %vm8368_vm0, %v8367_v1 }
 0xcc7   : > { %7857 = vmatmul.mubr.msk.f32.vlgmr.msra.gmra.mxu1 %vm1076_vm3, %v9010_v37 }
 0xcc8   : > { %7866 = vmatprep.mubr.msk.f32.mxu1 %vm8368_vm0, %v8367_v1 }
 0xd18   : > { %v4042_v43 = vpop.f32.mrf.mxu0 }
 0xd19   : > { %v4274_v44 = vsel %vm1076_vm3, %v4042_v43, -inf }
 0xd1a   : > { %4275 = vmax.xlane.f32.xlu1 %v4274_v44  ;;  %v7843_v45 = vpop.f32.mrf.mxu0 }
 0xd83   : > { %v4118_v46 = vpop.f32.mrf.mxu1  ;;  %v4194_v49 = vpop.f32.mrf.mxu0 }
 0xd84   : > { %v4277_v50 = vsel %vm1076_vm3, %v4118_v46, -inf  ;;  %v4280_v57 = vsel %vm1076_vm3, %v4194_v49, -inf }
 0xd85   : > { %v7848_v51 = vpop.f32.mrf.mxu1  ;;  %4278 = vmax.xlane.f32.xlu0 %v4277_v50  ;;  %v7853_v55 = vpop.f32.mrf.mxu0 }
 0xd87   : > { %v4270_v24 = vpop.f32.mrf.mxu1 }
 0xd88   : > { %v4283_v56 = vsel %vm1076_vm3, %v4270_v24, -inf }
 0xd89   : > { %v7858_v59 = vpop.f32.mrf.mxu1  ;;  %4284 = vmax.xlane.f32.xlu1 %v4283_v56  ;;  %4281 = vmax.xlane.f32.xlu0 %v4280_v57 }
 0xd9a   : > { %4394 = vrot.lane.b32.xlu1 %v3965_v35, %s9439_s3 }
 0xd9f   : > { %4318 = vrot.lane.b32.xlu0 %v3960_v31, %s9439_s3 }
 0xda3   : > { %v4276_v62 = vpop.xlane.xlu1 %4275 }
 0xda4   : > { %v4286_v63 = vsub.f32 %v4042_v43, %v4276_v62  ;;  %v4637_v43 = vld [vmem:[%s9440_s16] sm:$0xff] }
 0xda6   : > { %v4290_v0 = vmul.f32 1.442695, %v4286_v63  ;;  %v7168_v63 = vld [vmem:[%s9442_s2] ss:$0 sm:$0xff]  ;;  %s9446_s2 = sld [smem:[#allocation15_spill]] }
 0xda8   : > { %8256 = vpow2.f32 %v4290_v0 }
 0xdb5   : > { %v8257_v2 = vpop.eup %8256 }
 0xdb6   : > { %v4298_v3 = vsel %vm1076_vm3, %v8257_v2, 0.0 }
 0xdbe   : > { %4299 = vadd.xlane.f32.xlu0 %v4298_v3 }
 0xe0e   : > { %v4279_v4 = vpop.xlane.xlu0 %4278 }
 0xe0f   : > { %v4287_v5 = vsub.f32 %v4118_v46, %v4279_v4 }
 0xe11   : > { %v4292_v27 = vmul.f32 1.442695, %v4287_v5 }
 0xe12   : > { %v4285_v6 = vpop.xlane.xlu1 %4284  ;;  %v4282_v36 = vpop.xlane.xlu0 %4281 }
 0xe13   : > { %8258 = vpow2.f32 %v4292_v27  ;;  %v4289_v7 = vsub.f32 %v4270_v24, %v4285_v6  ;;  %v4288_v8 = vsub.f32 %v4194_v49, %v4282_v36 }
 0xe15   : > { %v4296_v9 = vmul.f32 1.442695, %v4289_v7  ;;  %v4294_v11 = vmul.f32 1.442695, %v4288_v8 }
 0xe16   : > { %v4395_v48 = vpop.permute.xlu1 %4394  ;;  %v4319_v13 = vpop.permute.xlu0 %4318 }
 0xe17   : > { %8260 = vpow2.f32 %v4296_v9  ;;  %7860 = vmatpush3.msra.mxu0 %v4319_v13  ;;  %7865 = vmatpush3.msra.mxu1 %v4395_v48 }
 0xe18   : > { %8262 = vpow2.f32 %v4294_v11  ;;  %7869 = vmatprep.subr.mxu0 %v8367_v1  ;;  %7874 = vmatprep.subr.mxu1 %v8367_v1 }
 0xe20   : > { %v8259_v14 = vpop.eup %8258 }
 0xe21   : > { %v4301_v52 = vsel %vm1076_vm3, %v8259_v14, 0.0 }
 0xe22   : > { %4302 = vadd.xlane.f32.xlu1 %v4301_v52 }
 0xe24   : > { %v8261_v15 = vpop.eup %8260 }
 0xe25   : > { %v8263_v16 = vpop.eup %8262  ;;  %v4307_v17 = vsel %vm1076_vm3, %v8261_v15, 0.0 }
 0xe26   : > { %4308 = vadd.xlane.f32.xlu1 %v4307_v17  ;;  %v4304_v12 = vsel %vm1076_vm3, %v8263_v16, 0.0 }
 0xe27   : > { %4305 = vadd.xlane.f32.xlu0 %v4304_v12 }
 0xe37   : > { %4470 = vrot.lane.b32.xlu1 %v9005_v34, %s9439_s3 }
 0xe3d   : > { %4546 = vrot.lane.b32.xlu0 %v9010_v37, %s9439_s3  ;;  %s9444_s3 = smov 16  }
 0xe47   : > { %v4300_v18 = vpop.xlane.xlu0 %4299 }
 0xe48   : > { %8264 = vrcp.f32 %v4300_v18 }
 0xe55   : > { %v8265_v21 = vpop.eup %8264 }
 0xe56   : > { %v4314_v60 = vmul.f32 %v8265_v21, %v8257_v2 }
 0xe58   : > { %7862 = vmatmul.mubr.msk.f32.vlgmr.msra.gmra.mxu0 %vm1076_vm3, %v4314_v60 }
 0xe59   : > { %7871 = vmatprep.mubr.msk.f32.mxu0 %vm8368_vm0, %v8367_v1 }
 0xeab   : > { %v4303_v61 = vpop.xlane.xlu1 %4302 }
 0xeac   : > { %8266 = vrcp.f32 %v4303_v61 }
 0xeaf   : > { %v4309_v22 = vpop.xlane.xlu1 %4308 }
 0xeb0   : > { %8268 = vrcp.f32 %v4309_v22  ;;  %v4306_v19 = vpop.xlane.xlu0 %4305 }
 0xeb1   : > { %8270 = vrcp.f32 %v4306_v19 }
 0xeb3   : > { %v4471_v20 = vpop.permute.xlu1 %4470 }
 0xeb4   : > { %7870 = vmatpush3.msra.mxu0 %v4471_v20  ;;  %v4547_v30 = vpop.permute.xlu0 %4546 }
 0xeb5   : > { %7879 = vmatprep.subr.mxu0 %v8367_v1 }
 0xeb9   : > { %v8267_v53 = vpop.eup %8266 }
 0xeba   : > { %v4315_v54 = vmul.f32 %v8267_v53, %v8259_v14 }
 0xebc   : > { %7867 = vmatmul.mubr.msk.f32.vlgmr.msra.gmra.mxu1 %vm1076_vm3, %v4315_v54 }
 0xebd   : > { %v8269_v31 = vpop.eup %8268  ;;  %7875 = vmatpush3.msra.mxu1 %v4547_v30  ;;  %7876 = vmatprep.mubr.msk.f32.mxu1 %vm8368_vm0, %v8367_v1 }
 0xebe   : > { %v8271_v32 = vpop.eup %8270  ;;  %v4317_v34 = vmul.f32 %v8269_v31, %v8261_v15 }
 0xebf   : > { %v4316_v35 = vmul.f32 %v8271_v32, %v8263_v16 }
 0xec0   : > { %7877 = vmatmul.mubr.msk.f32.vlgmr.msra.gmra.mxu1 %vm1076_vm3, %v4317_v34 }
 0xec1   : > { %7872 = vmatmul.mubr.msk.f32.vlgmr.msra.gmra.mxu0 %vm1076_vm3, %v4316_v35  ;;  %5063 = vmatprep.mubr.bf16.mxu1 %v8377_v58 }
 0xec2   : > { %7887 = vmatprep.mubr.msk.f32.mxu0 %vm8368_vm0, %v8367_v1  ;;  %7880 = vmatpush3.msra.mxu0 %v4640_v39 }
 0xec3   : > { %7881 = vmatprep.subr.mxu0 %v8367_v1 }
 0xec4   : > { %7882 = vmatpush3.msra.mxu0 %v4639_v40  ;;  %v7170_v40 = vld [vmem:[%s9446_s2] ss:$0 sm:$0xff]  ;;  %s9449_s2 = sld [smem:[#allocation18_spill]] }
 0xec5   : > { %7883 = vmatprep.subr.mxu0 %v8367_v1 }
 0xec6   : > { %7884 = vmatpush3.msra.mxu0 %v4638_v41 }
 0xec7   : > { %7885 = vmatprep.subr.mxu0 %v8367_v1 }
 0xec8   : > { %7886 = vmatpush3.msra.mxu0 %v4637_v43 }
 0xf18   : > { %v4390_v37 = vpop.f32.mrf.mxu0 }
 0xf1a   : > { %v7863_v38 = vpop.f32.mrf.mxu0 }
 0xf7c   : > { %v4466_v44 = vpop.f32.mrf.mxu1 }
 0xf7d   : > { %4623 = vrot.lane.b32.xlu1 %v4466_v44, %s9441_s22  ;;  %s9445_s22 = sld [smem:[#allocation17_spill]] }
 0xf7e   : > { %v7868_v45 = vpop.f32.mrf.mxu1 }
 0xf80   : > { %v4618_v46 = vpop.f32.mrf.mxu1 }
 0xf81   : > { %v4542_v49 = vpop.f32.mrf.mxu0  ;;  %4631 = vrot.lane.b32.xlu1 %v4618_v46, %s9443_s23  ;;  %s9447_s23 = sld [smem:[#allocation16_spill]] }
 0xf82   : > { %4627 = vrot.lane.b32.xlu0 %v4542_v49, %s9444_s3  ;;  %v7878_v50 = vpop.f32.mrf.mxu1  ;;  %s9448_s3 = sld [smem:[#allocation19_spill]] }
 0xf83   : > { %v7873_v51 = vpop.f32.mrf.mxu0  ;;  %v4768_v9 = vld [vmem:[%s9445_s22 + $0x80] sm:$0xff]  ;;  %v4769_v48 = vld [vmem:[%s9445_s22 + $0x88] sm:$0xff]  ;;  %v4770_v19 = vld [vmem:[%s9445_s22 + $0x90] sm:$0xff] }
 0xf84   : > { %v4776_v11 = vld [vmem:[%s9445_s22 + $0xc0] sm:$0xff]  ;;  %v4777_v14 = vld [vmem:[%s9445_s22 + $0xc8] sm:$0xff]  ;;  %v4778_v20 = vld [vmem:[%s9445_s22 + $0xd0] sm:$0xff] }
 0xf85   : > { %v7189_v13 = vcombine.high %v4768_v9, %v4776_v11  ;;  %v7190_v52 = vcombine.low %v4769_v48, %v4777_v14  ;;  %v7191_v15 = vcombine.high %v4769_v48, %v4777_v14  ;;  %v4752_v16 = vld [vmem:[%s9445_s22] sm:$0xff]  ;;  %v4753_v12 = vld [vmem:[%s9445_s22 + $0x8] sm:$0xff]  ;;  %v4771_v53 = vld [vmem:[%s9445_s22 + $0x98] sm:$0xff]  ;;  %v7193_v54 = vcombine.high %v4770_v19, %v4778_v20 }
 0xf86   : > { %v4760_v17 = vld [vmem:[%s9445_s22 + $0x40] sm:$0xff]  ;;  %v4761_v21 = vld [vmem:[%s9445_s22 + $0x48] sm:$0xff]  ;;  %v4779_v30 = vld [vmem:[%s9445_s22 + $0xd8] sm:$0xff]  ;;  %v7192_v31 = vcombine.low %v4770_v19, %v4778_v20 }
 0xf87   : > { %5043 = vmatprep.subr.bf16.mxu1 %v7189_v13  ;;  %5084 = vmatprep.subr.bf16.mxu0 %v7191_v15  ;;  %v7173_v18 = vcombine.high %v4752_v16, %v4760_v17  ;;  %v7172_v60 = vcombine.low %v4752_v16, %v4760_v17  ;;  %v7174_v61 = vcombine.low %v4753_v12, %v4761_v21  ;;  %v7171_v43 = vld [vmem:[%s9447_s23] ss:$0 sm:$0xff]  ;;  %v4754_v45 = vld [vmem:[%s9445_s22 + $0x10] sm:$0xff]  ;;  %v4755_v49 = vld [vmem:[%s9445_s22 + $0x18] sm:$0xff]  ;;  %s9450_s23 = sld [smem:[#allocation20_spill]] }
 0xf88   : > { %v7175_v22 = vcombine.high %v4753_v12, %v4761_v21  ;;  %v7194_v32 = vcombine.low %v4771_v53, %v4779_v30  ;;  %v7195_v34 = vcombine.high %v4771_v53, %v4779_v30  ;;  %v4762_v46 = vld [vmem:[%s9445_s22 + $0x50] sm:$0xff]  ;;  %v4763_v50 = vld [vmem:[%s9445_s22 + $0x58] sm:$0xff] }
 0xf89   : > { %v4774_v48 = vld [vmem:[%s9445_s22 + $0xb0] sm:$0xff]  ;;  %v4775_v14 = vld [vmem:[%s9445_s22 + $0xb8] sm:$0xff] }
 0xf8a   : > { %v4782_v13 = vld [vmem:[%s9445_s22 + $0xf0] sm:$0xff]  ;;  %v4759_v21 = vld [vmem:[%s9445_s22 + $0x38] sm:$0xff] }
 0xf8b   : > { %v7201_v16 = vcombine.high %v4774_v48, %v4782_v13  ;;  %v4758_v12 = vld [vmem:[%s9445_s22 + $0x30] sm:$0xff]  ;;  %v8108_v30 = vld [vmem:[%s9448_s3 + $0x78] sm:$0xff]  }
 0xfef   : > { %v4624_v55 = vpop.permute.xlu1 %4623 }
 0xff0   : > { %v4634_v56 = vsel %vm1076_vm3, %v4390_v37, %v4624_v55 }
 0xff3   : > { %v4632_v24 = vpop.permute.xlu1 %4631 }
 0xff4   : > { %v4628_v57 = vpop.permute.xlu0 %4627 }
 0xff5   : > { %v4635_v59 = vsel %vm908_vm1, %v4634_v56, %v4628_v57  ;;  %v7179_v56 = vcombine.high %v4755_v49, %v4763_v50  ;;  %v4772_v57 = vld [vmem:[%s9445_s22 + $0xa0] sm:$0xff] }
 0xff6   : > { %v4636_v62 = vsel %vm1741_vm4, %v4635_v59, %v4632_v24  ;;  %v7177_v24 = vcombine.high %v4754_v45, %v4762_v46  ;;  %v4780_v59 = vld [vmem:[%s9445_s22 + $0xe0] sm:$0xff] }
 0xff7   : > { %7888 = vmatmul.mubr.msk.f32.vlgmr.msra.gmra.mxu0 %vm993_vm2, %v4636_v62  ;;  %v4773_v62 = vld [vmem:[%s9445_s22 + $0xa8] sm:$0xff] }
 0xff8   : > { %5104 = vmatprep.mubr.bf16.mxu0 %v8377_v58  ;;  %5085 = vmatpush1.bf16.msra.mxu0 %v7190_v52 }
 0xff9   : > { %5086 = vmatprep.subr.bf16.mxu0 %v7175_v22 }
 0xffc   : > { %5087 = vmatpush1.bf16.msra.mxu0 %v7174_v61  ;;  %v7200_v61 = vcombine.low %v4774_v48, %v4782_v13 }
 0xffd   : > { %5166 = vmatprep.subr.bf16.mxu0 %v7195_v34  ;;  %v8111_v34 = vld [vmem:[%s9448_s3 + $0xb8] sm:$0xff]  }
0x10b7   : > { %v4717_v0 = vpop.f32.mrf.mxu0 }
0x10b8   : > { %v4718_v2 = vadd.f32 %v7168_v63, %v4717_v0  ;;  %v4781_v63 = vld [vmem:[%s9445_s22 + $0xe8] sm:$0xff]  ;;  %v7176_v0 = vcombine.low %v4754_v45, %v4762_v46  ;;  %v8121_v45 = vld [vmem:[%s9448_s3 + $0xe0] sm:$0xff]  }
0x10b9   : > { %v7889_v3 = vpop.f32.mrf.mxu0  ;;  %v8122_v46 = vld [vmem:[%s9448_s3 + $0x20] sm:$0xff]  }
0x10ba   : > { %v4721_v4 = vadd.f32 %v4718_v2, %v8994_v23  ;;  %v7188_v23 = vcombine.low %v4768_v9, %v4776_v11  ;;  %v7178_v2 = vcombine.low %v4755_v49, %v4763_v50  ;;  %v7197_v3 = vcombine.high %v4772_v57, %v4780_v59  ;;  %v8123_v49 = vld [vmem:[%s9448_s3 + $0xa0] sm:$0xff]   ;;  %v8124_v50 = vld [vmem:[%s9448_s3 + $0x58] sm:$0xff]  }
0x10bc   : > { %v4724_v5 = vsel %vm993_vm2, %v4721_v4, 0.0  ;;  %5044 = vmatpush1.bf16.msra.mxu1 %v7188_v23  ;;  %v4783_v23 = vld [vmem:[%s9445_s22 + $0xf8] sm:$0xff] }
0x10bd   : > { %4725 = vadd.xlane.f32.xlu0 %v4724_v5  ;;  %5045 = vmatprep.subr.bf16.mxu1 %v7173_v18  ;;  %v4756_v5 = vld [vmem:[%s9445_s22 + $0x20] sm:$0xff]  ;;  %v7203_v17 = vcombine.high %v4775_v14, %v4783_v23  ;;  %v4766_v18 = vld [vmem:[%s9445_s22 + $0x70] sm:$0xff]  ;;  %v7202_v22 = vcombine.low %v4775_v14, %v4783_v23 }
0x10be   : > { %v7185_v19 = vcombine.high %v4758_v12, %v4766_v18  ;;  %v7184_v53 = vcombine.low %v4758_v12, %v4766_v18 }
0x10c0   : > { %5046 = vmatpush1.bf16.msra.mxu1 %v7172_v60  ;;  %v4767_v60 = vld [vmem:[%s9445_s22 + $0x78] sm:$0xff] }
0x10c1   : > { %5125 = vmatprep.subr.bf16.mxu1 %v7193_v54  ;;  %v7187_v20 = vcombine.high %v4759_v21, %v4767_v60  ;;  %v7186_v54 = vcombine.low %v4759_v21, %v4767_v60 }
0x1146   : > { %v4726_v27 = vpop.xlane.xlu0 %4725 }
0x1147   : > { %v4727_v6 = vmul.f32 0.03125, %v4726_v27  ;;  %v4764_v27 = vld [vmem:[%s9445_s22 + $0x60] sm:$0xff] }
0x1148   : > { %v7181_v9 = vcombine.high %v4756_v5, %v4764_v27  ;;  %v7180_v52 = vcombine.low %v4756_v5, %v4764_v27  ;;  %v8136_v5 = vld [vmem:[%s9448_s3 + $0x40] sm:$0xff]  }
0x1149   : > { %v4728_v36 = vsub.f32 %v4721_v4, %v4727_v6  ;;  %v7199_v4 = vcombine.high %v4773_v62, %v4781_v63  ;;  %v4757_v6 = vld [vmem:[%s9445_s22 + $0x28] sm:$0xff]  ;;  %v8137_v27 = vld [vmem:[%s9448_s3 + $0xc0] sm:$0xff]  }
0x114b   : > { %v4729_v7 = vmul.f32 %v4728_v36, %v4728_v36 }
0x114d   : > { %v4730_v8 = vsel %vm993_vm2, %v4729_v7, 0.0  ;;  %v7196_v7 = vcombine.low %v4772_v57, %v4780_v59  ;;  %v8128_v57 = vld [vmem:[%s9448_s3 + $0x50] sm:$0xff]  }
0x114e   : > { %4731 = vadd.xlane.f32.xlu1 %v4730_v8  ;;  %v7198_v8 = vcombine.low %v4773_v62, %v4781_v63  ;;  %v8129_v59 = vld [vmem:[%s9448_s3 + $0xd0] sm:$0xff]  }
0x114f   : > { %v8130_v62 = vld [vmem:[%s9448_s3 + $0x10] sm:$0xff]  }
0x1150   : > { %v8131_v63 = vld [vmem:[%s9448_s3 + $0x90] sm:$0xff]  }
0x11d7   : > { %v4732_v35 = vpop.xlane.xlu1 %4731 }
0x11d8   : > { %v4733_v37 = vmul.f32 0.03125, %v4732_v35  ;;  %v8112_v35 = vld [vmem:[%s9448_s3 + $0x70] sm:$0xff]  }
0x11da   : > { %v4734_v38 = vadd.f32 1e-05, %v4733_v37  ;;  %v8113_v37 = vld [vmem:[%s9448_s3 + $0xf0] sm:$0xff]  }
0x11dc   : > { %8272 = vrsqrt.f32 %v4734_v38  ;;  %v8115_v38 = vld [vmem:[%s9448_s3 + $0xb0] sm:$0xff]  }
0x11e9   : > { %v8273_v39 = vpop.eup %8272 }
0x11ea   : > { %v4736_v41 = vmul.f32 %v8273_v39, %v4728_v36  ;;  %v4765_v36 = vld [vmem:[%s9445_s22 + $0x68] sm:$0xff] }
0x11eb   : > { %v7183_v11 = vcombine.high %v4757_v6, %v4765_v36  ;;  %v7182_v15 = vcombine.low %v4757_v6, %v4765_v36  ;;  %v8116_v39 = vld [vmem:[%s9448_s3 + $0x68] sm:$0xff]   ;;  %v8138_v6 = vld [vmem:[%s9448_s3] sm:$0xff]  }
0x11ec   : > { %v4743_v44 = vmul.f32 %v7170_v40, %v4736_v41  ;;  %v8117_v40 = vld [vmem:[%s9448_s3 + $0xe8] sm:$0xff]   ;;  %v8139_v36 = vld [vmem:[%s9448_s3 + $0x80] sm:$0xff]  }
0x11ed   : > { %v8118_v41 = vld [vmem:[%s9448_s3 + $0x28] sm:$0xff]  }
0x11ee   : > { %v9101_v51 = vadd.f32 %v7171_v43, %v4743_v44  ;;  %v8119_v43 = vld [vmem:[%s9448_s3 + $0xa8] sm:$0xff]   ;;  %v8120_v44 = vld [vmem:[%s9448_s3 + $0x60] sm:$0xff]  }
0x11f0   : > { %v9105_v55 = vpack.c.bf16 %v9101_v51, %v9101_v51 }
0x11f2   : > { %7204 = vmatmul.mubr.msk.bf16.vlgmr.msra.gmra.mxu1 %vm993_vm2, %v9105_v55  ;;  %7205 = vmatmul.mubr.msk.bf16.vlgmr.msra.gmra.mxu0 %vm993_vm2, %v9105_v55 }
0x11f3   : > { %5126 = vmatpush1.bf16.msra.mxu1 %v7192_v31  ;;  %5167 = vmatpush1.bf16.msra.mxu0 %v7194_v32  ;;  %v8109_v31 = vld [vmem:[%s9448_s3 + $0xf8] sm:$0xff]  }
0x11f4   : > { %5127 = vmatprep.subr.bf16.mxu1 %v7177_v24  ;;  %5168 = vmatprep.subr.bf16.mxu0 %v7179_v56  ;;  %v8110_v32 = vld [vmem:[%s9448_s3 + $0x38] sm:$0xff]  }
0x11f5   : > { %5145 = vmatprep.mubr.bf16.mxu1 %v8377_v58  ;;  %5186 = vmatprep.mubr.bf16.mxu0 %v8377_v58  ;;  %v8126_v24 = vld [vmem:[%s9448_s3 + $0x18] sm:$0xff]  }
0x11f6   : > { %v8127_v56 = vld [vmem:[%s9448_s3 + $0x98] sm:$0xff]  }
0x11f7   : > { %5128 = vmatpush1.bf16.msra.mxu1 %v7176_v0  ;;  %5169 = vmatpush1.bf16.msra.mxu0 %v7178_v2  ;;  %v8132_v0 = vld [vmem:[%s9448_s3 + $0x48] sm:$0xff]  }
0x11f8   : > { %5207 = vmatprep.subr.bf16.mxu1 %v7197_v3  ;;  %5248 = vmatprep.subr.bf16.mxu0 %v7199_v4  ;;  %v8133_v2 = vld [vmem:[%s9448_s3 + $0xc8] sm:$0xff]  }
0x11f9   : > { %v8134_v3 = vld [vmem:[%s9448_s3 + $0x8] sm:$0xff]  }
0x11fa   : > { %7206 = vmatmul.mubr.msk.bf16.vlgmr.msra.gmra.mxu1 %vm993_vm2, %v9105_v55  ;;  %7207 = vmatmul.mubr.msk.bf16.vlgmr.msra.gmra.mxu0 %vm993_vm2, %v9105_v55  ;;  %v8135_v4 = vld [vmem:[%s9448_s3 + $0x88] sm:$0xff]  }
0x11fb   : > { %5208 = vmatpush1.bf16.msra.mxu1 %v7196_v7  ;;  %5249 = vmatpush1.bf16.msra.mxu0 %v7198_v8  ;;  %v8140_v7 = vld [vmem:[%s9448_s3 + $0x178] sm:$0xff]  }
0x11fc   : > { %5209 = vmatprep.subr.bf16.mxu1 %v7181_v9  ;;  %5250 = vmatprep.subr.bf16.mxu0 %v7183_v11  ;;  %v8141_v8 = vld [vmem:[%s9448_s3 + $0x1f8] sm:$0xff]   ;;  %v9180_v9 = vld [vmem:[%s9449_s2] sm:$0xff] }
0x11fd   : > { %5227 = vmatprep.mubr.bf16.mxu1 %v8377_v58  ;;  %5268 = vmatprep.mubr.bf16.mxu0 %v8377_v58  ;;  %v4791_v11 = vrot.slane %v9180_v9, %v8795_v25  ;;  %v4799_v48 = vrot.slane %v9180_v9, %v8798_v26  ;;  %v4795_v13 = vrot.slane %v9180_v9, %v8804_v28 }
0x11fe   : > { %v4803_v14 = vrot.slane %v9180_v9, %v8807_v29 }
0x11ff   : > { %5210 = vmatpush1.bf16.msra.mxu1 %v7180_v52  ;;  %5251 = vmatpush1.bf16.msra.mxu0 %v7182_v15 }
0x1200   : > { %5289 = vmatprep.subr.bf16.mxu1 %v7201_v16  ;;  %5330 = vmatprep.subr.bf16.mxu0 %v7203_v17 }
0x1202   : > { %7208 = vmatmul.mubr.msk.bf16.vlgmr.msra.gmra.mxu1 %vm993_vm2, %v9105_v55  ;;  %7209 = vmatmul.mubr.msk.bf16.vlgmr.msra.gmra.mxu0 %vm993_vm2, %v9105_v55 }
0x1203   : > { %5290 = vmatpush1.bf16.msra.mxu1 %v7200_v61  ;;  %5331 = vmatpush1.bf16.msra.mxu0 %v7202_v22 }
0x1204   : > { %5291 = vmatprep.subr.bf16.mxu1 %v7185_v19  ;;  %5332 = vmatprep.subr.bf16.mxu0 %v7187_v20 }
0x1205   : > { %5309 = vmatprep.mubr.bf16.mxu1 %v8377_v58  ;;  %5350 = vmatprep.mubr.bf16.mxu0 %v8377_v58  ;;  %v8114_v58 = vld [vmem:[%s9448_s3 + $0x30] sm:$0xff]  }
0x1207   : > { %5292 = vmatpush1.bf16.msra.mxu1 %v7184_v53  ;;  %5333 = vmatpush1.bf16.msra.mxu0 %v7186_v54 }
0x1208   : > { %7578 = vmatprep.subr.bf16.mxu1 %v8108_v30  ;;  %7600 = vmatprep.subr.bf16.mxu0 %v8109_v31 }
0x120a   : > { %7210 = vmatmul.mubr.msk.bf16.vlgmr.msra.gmra.mxu1 %vm993_vm2, %v9105_v55  ;;  %7211 = vmatmul.mubr.msk.bf16.vlgmr.msra.gmra.mxu0 %vm993_vm2, %v9105_v55  ;;  %v8125_v55 = vld [vmem:[%s9448_s3 + $0xd8] sm:$0xff]  }
0x120b   : > { %7579 = vmatpush3.bf16.msra.mxu1 %v8110_v32  ;;  %7601 = vmatpush3.bf16.msra.mxu0 %v8111_v34  ;;  %v4811_v34 = vrot.slane %v9180_v9, %v8818_v42 }
0x120c   : > { %7580 = vmatprep.subr.bf16.mxu1 %v8112_v35  ;;  %7602 = vmatprep.subr.bf16.mxu0 %v8113_v37  ;;  %v4819_v35 = vrot.slane %v9180_v9, %v8821_v10  ;;  %v8142_v37 = vld [vmem:[%s9448_s3 + $0x138] sm:$0xff]  }
0x120f   : > { %7581 = vmatpush3.bf16.msra.mxu1 %v8114_v58  ;;  %7603 = vmatpush3.bf16.msra.mxu0 %v8115_v38  ;;  %v8143_v58 = vld [vmem:[%s9448_s3 + $0x1b8] sm:$0xff]  }
0x1210   : > { %7582 = vmatprep.subr.bf16.mxu1 %v8116_v39  ;;  %7604 = vmatprep.subr.bf16.mxu0 %v8117_v40 }
0x1213   : > { %7583 = vmatpush3.bf16.msra.mxu1 %v8118_v41  ;;  %7605 = vmatpush3.bf16.msra.mxu0 %v8119_v43  ;;  %v8144_v43 = vld [vmem:[%s9448_s3 + $0x170] sm:$0xff]  }
0x1214   : > { %7584 = vmatprep.subr.bf16.mxu1 %v8120_v44  ;;  %7606 = vmatprep.subr.bf16.mxu0 %v8121_v45  ;;  %v8145_v44 = vld [vmem:[%s9448_s3 + $0x1f0] sm:$0xff]  }
0x1217   : > { %7585 = vmatpush3.bf16.msra.mxu1 %v8122_v46  ;;  %7607 = vmatpush3.bf16.msra.mxu0 %v8123_v49 }
0x1218   : > { %7586 = vmatprep.subr.bf16.mxu1 %v8124_v50  ;;  %7608 = vmatprep.subr.bf16.mxu0 %v8125_v55  ;;  %v8146_v55 = vld [vmem:[%s9448_s3 + $0x130] sm:$0xff]  }
0x121b   : > { %7587 = vmatpush3.bf16.msra.mxu1 %v8126_v24  ;;  %7609 = vmatpush3.bf16.msra.mxu0 %v8127_v56  ;;  %v8147_v24 = vld [vmem:[%s9448_s3 + $0x1b0] sm:$0xff]  }
0x121c   : > { %7588 = vmatprep.subr.bf16.mxu1 %v8128_v57  ;;  %7610 = vmatprep.subr.bf16.mxu0 %v8129_v59  ;;  %v8148_v59 = vld [vmem:[%s9448_s3 + $0x168] sm:$0xff]  }
0x121f   : > { %7589 = vmatpush3.bf16.msra.mxu1 %v8130_v62  ;;  %7611 = vmatpush3.bf16.msra.mxu0 %v8131_v63  ;;  %v8149_v62 = vld [vmem:[%s9448_s3 + $0x1e8] sm:$0xff]  }
0x1220   : > { %7590 = vmatprep.subr.bf16.mxu1 %v8132_v0  ;;  %7612 = vmatprep.subr.bf16.mxu0 %v8133_v2 }
0x1223   : > { %7591 = vmatpush3.bf16.msra.mxu1 %v8134_v3  ;;  %7613 = vmatpush3.bf16.msra.mxu0 %v8135_v4 }
0x1224   : > { %7592 = vmatprep.subr.bf16.mxu1 %v8136_v5  ;;  %7614 = vmatprep.subr.bf16.mxu0 %v8137_v27  ;;  %v8150_v27 = vld [vmem:[%s9448_s3 + $0x128] sm:$0xff]  }
0x1227   : > { %7593 = vmatpush3.bf16.msra.mxu1 %v8138_v6  ;;  %7615 = vmatpush3.bf16.msra.mxu0 %v8139_v36  ;;  %v8151_v6 = vld [vmem:[%s9448_s3 + $0x1a8] sm:$0xff]  }
0x1228   : > { %7622 = vmatprep.subr.bf16.mxu1 %v8140_v7  ;;  %7644 = vmatprep.subr.bf16.mxu0 %v8141_v8  ;;  %v8152_v8 = vld [vmem:[%s9448_s3 + $0x160] sm:$0xff]  }
0x12b2   : > { %v5065_v23 = vpop.f32.mrf.mxu1  ;;  %v5106_v52 = vpop.f32.mrf.mxu0 }
0x12b3   : > { %v5066_v15 = vadd.f32 %v5065_v23, %v4791_v11  ;;  %v5107_v16 = vadd.f32 %v5106_v52, %v4799_v48  ;;  %v8153_v11 = vld [vmem:[%s9448_s3 + $0x1e0] sm:$0xff]   ;;  %v9217_v52 = vld [vmem:[%s9449_s2 + $0x8] sm:$0xff]  ;;  %s891_s2 = sand.u32 1, %s8328_s10  }
0x12b4   : > { %v5067_v17 = vpop.f32.mrf.mxu1  ;;  %v5108_v12 = vpop.f32.mrf.mxu0  ;;  %v8155_v23 = vld [vmem:[%s9448_s3 + $0x1a0] sm:$0xff]   ;;  %s6862_s8 = scalar_lea.sflag [#allocation3], %s891_s2 }
0x12b5   : > { %v5068_v18 = vadd.f32 %v5067_v17, %v4795_v13  ;;  %v5109_v21 = vadd.f32 %v5108_v12, %v4803_v14  ;;  %v5359_v60 = vmax.f32 %v5066_v15, 0.0  ;;  %v5361_v61 = vmax.f32 %v5107_v16, 0.0  ;;  %v8154_v14 = vld [vmem:[%s9448_s3 + $0x120] sm:$0xff]   ;;  %v8156_v17 = vld [vmem:[%s9448_s3 + $0x158] sm:$0xff]  }
0x12b6   : > { %v5069_v22 = vpop.f32.mrf.mxu1  ;;  %v5110_v19 = vpop.f32.mrf.mxu0  ;;  %v8157_v12 = vld [vmem:[%s9448_s3 + $0x1d8] sm:$0xff]  }
0x12b7   : > { %v5360_v20 = vmax.f32 %v5068_v18, 0.0  ;;  %v5362_v53 = vmax.f32 %v5109_v21, 0.0  ;;  %v5375_v38 = vpack.c.bf16 %v5359_v60, %v5359_v60  ;;  %v5377_v39 = vpack.c.bf16 %v5361_v61, %v5361_v61  ;;  %v8158_v61 = vld [vmem:[%s9448_s3 + $0x118] sm:$0xff]  }
0x12b8   : > { %v5070_v54 = vpop.f32.mrf.mxu1  ;;  %v5111_v30 = vpop.f32.mrf.mxu0  ;;  %v4847_v18 = vrot.slane %v9217_v52, %v8848_v33  ;;  %v8159_v22 = vld [vmem:[%s9448_s3 + $0x198] sm:$0xff]  }
0x12b9   : > { %v5376_v31 = vpack.c.bf16 %v5360_v20, %v5360_v20  ;;  %v5378_v32 = vpack.c.bf16 %v5362_v53, %v5362_v53  ;;  %v8160_v53 = vld [vmem:[%s9448_s3 + $0x150] sm:$0xff]  }
0x12ba   : > { %v9196_v40 = vpop.f32.mrf.mxu1  ;;  %v9198_v41 = vpop.f32.mrf.mxu0  ;;  %v8161_v54 = vld [vmem:[%s9448_s3 + $0x1d0] sm:$0xff]  }
0x12bb   : > { %6454 = vmatprep.mubr.bf16.mxu1 %v5376_v31  ;;  %6494 = vmatprep.mubr.bf16.mxu0 %v5378_v32 }
0x12bc   : > { %v5149_v45 = vpop.f32.mrf.mxu1  ;;  %v5190_v46 = vpop.f32.mrf.mxu0  ;;  %6455 = vmatmul.mubr.bf16.vlgmr.msra.gmra.mxu1 %v5375_v38  ;;  %6495 = vmatmul.mubr.bf16.vlgmr.msra.gmra.mxu0 %v5377_v39 }
0x12bd   : > { %v5150_v49 = vadd.f32 %v5149_v45, %v4811_v34  ;;  %v5191_v50 = vadd.f32 %v5190_v46, %v4819_v35  ;;  %7623 = vmatpush3.bf16.msra.mxu1 %v8142_v37  ;;  %7645 = vmatpush3.bf16.msra.mxu0 %v8143_v58  ;;  %v8162_v34 = vld [vmem:[%s9448_s3 + $0x110] sm:$0xff]   ;;  %v4807_v37 = vrot.slane %v9180_v9, %v8862_v47 }
0x12be   : > { %v5151_v56 = vpop.f32.mrf.mxu1  ;;  %v5192_v57 = vpop.f32.mrf.mxu0  ;;  %7624 = vmatprep.subr.bf16.mxu1 %v8144_v43  ;;  %7646 = vmatprep.subr.bf16.mxu0 %v8145_v44  ;;  %v8163_v35 = vld [vmem:[%s9448_s3 + $0x190] sm:$0xff]   ;;  %v4815_v58 = vrot.slane %v9180_v9, %v8848_v33  ;;  %v8164_v43 = vld [vmem:[%s9448_s3 + $0x148] sm:$0xff]   ;;  %v4827_v45 = vrot.slane %v9217_v52, %v8804_v28  ;;  %v4835_v46 = vrot.slane %v9217_v52, %v8807_v29  ;;  %v8168_v28 = vld [vmem:[%s9448_s3 + $0x140] sm:$0xff]  }
0x12bf   : > { %v5364_v63 = vmax.f32 %v5150_v49, 0.0  ;;  %v5366_v0 = vmax.f32 %v5191_v50, 0.0  ;;  %v8165_v44 = vld [vmem:[%s9448_s3 + $0x1c8] sm:$0xff]   ;;  %v8169_v56 = vld [vmem:[%s9448_s3 + $0x1c0] sm:$0xff]  }
0x12c0   : > { %v5152_v2 = vpop.f32.mrf.mxu1  ;;  %v5193_v3 = vpop.f32.mrf.mxu0  ;;  %v8166_v33 = vld [vmem:[%s9448_s3 + $0x108] sm:$0xff]  }
0x12c1   : > { %v5380_v4 = vpack.c.bf16 %v5364_v63, %v5364_v63  ;;  %v5382_v5 = vpack.c.bf16 %v5366_v0, %v5366_v0  ;;  %7625 = vmatpush3.bf16.msra.mxu1 %v8146_v55  ;;  %7647 = vmatpush3.bf16.msra.mxu0 %v8147_v24  ;;  %v8167_v9 = vld [vmem:[%s9448_s3 + $0x188] sm:$0xff]   ;;  %v5148_v55 = vadd.f32 %v9196_v40, %v4807_v37  ;;  %v8172_v40 = vld [vmem:[%s9448_s3 + $0x278] sm:$0xff]   ;;  %v8194_v37 = vld [vmem:[%s9448_s3 + $0x210] sm:$0xff]  }
0x12c2   : > { %v9208_v36 = vpop.f32.mrf.mxu1  ;;  %v9210_v7 = vpop.f32.mrf.mxu0  ;;  %7626 = vmatprep.subr.bf16.mxu1 %v8148_v59  ;;  %7648 = vmatprep.subr.bf16.mxu0 %v8149_v62  ;;  %v5189_v24 = vadd.f32 %v9198_v41, %v4815_v58  ;;  %v8170_v59 = vld [vmem:[%s9448_s3 + $0x100] sm:$0xff]   ;;  %v8173_v41 = vld [vmem:[%s9448_s3 + $0x2f8] sm:$0xff]   ;;  %v4823_v58 = vrot.slane %v9217_v52, %v8795_v25  ;;  %v8198_v25 = vld [vmem:[%s9448_s3 + $0x208] sm:$0xff]  }
0x12c3   : > { %6534 = vmatprep.mubr.bf16.mxu1 %v5380_v4  ;;  %6574 = vmatprep.mubr.bf16.mxu0 %v5382_v5  ;;  %v8171_v62 = vld [vmem:[%s9448_s3 + $0x180] sm:$0xff]   ;;  %v5363_v63 = vmax.f32 %v5148_v55, 0.0  ;;  %v8174_v4 = vld [vmem:[%s9448_s3 + $0x238] sm:$0xff]  }
0x12c4   : > { %v5231_v48 = vpop.f32.mrf.mxu1  ;;  %v5272_v13 = vpop.f32.mrf.mxu0  ;;  %v5365_v0 = vmax.f32 %v5189_v24, 0.0  ;;  %v8202_v55 = vld [vmem:[%s9448_s3 + $0x200] sm:$0xff]  }
0x12c5   : > { %7627 = vmatpush3.bf16.msra.mxu1 %v8150_v27  ;;  %7649 = vmatpush3.bf16.msra.mxu0 %v8151_v6  ;;  %v5232_v57 = vadd.f32 %v5231_v48, %v4827_v45  ;;  %v5273_v29 = vadd.f32 %v5272_v13, %v4835_v46  ;;  %v5379_v5 = vpack.c.bf16 %v5363_v63, %v5363_v63  ;;  %v8175_v6 = vld [vmem:[%s9448_s3 + $0x2b8] sm:$0xff]   ;;  %v8177_v48 = vld [vmem:[%s9448_s3 + $0x2f0] sm:$0xff]  }
0x12c6   : > { %v5233_v15 = vpop.f32.mrf.mxu1  ;;  %v5274_v16 = vpop.f32.mrf.mxu0  ;;  %7628 = vmatprep.subr.bf16.mxu1 %v8152_v8  ;;  %7650 = vmatprep.subr.bf16.mxu0 %v8153_v11  ;;  %v5381_v27 = vpack.c.bf16 %v5365_v0, %v5365_v0  ;;  %v8176_v11 = vld [vmem:[%s9448_s3 + $0x270] sm:$0xff]   ;;  %v4843_v45 = vrot.slane %v9217_v52, %v8818_v42  ;;  %v4851_v46 = vrot.slane %v9217_v52, %v8821_v10 }
0x12c7   : > { %v5368_v2 = vmax.f32 %v5232_v57, 0.0  ;;  %v5370_v3 = vmax.f32 %v5273_v29, 0.0  ;;  %v8180_v15 = vld [vmem:[%s9448_s3 + $0x268] sm:$0xff]   ;;  %v8208_v63 = vld [vmem:[%s9448_s3 + $0x370] sm:$0xff]  }
0x12c8   : > { %v5234_v21 = vpop.f32.mrf.mxu1  ;;  %v5275_v60 = vpop.f32.mrf.mxu0  ;;  %v8181_v16 = vld [vmem:[%s9448_s3 + $0x2e8] sm:$0xff]  }
0x12c9   : > { %7629 = vmatpush3.bf16.msra.mxu1 %v8154_v14  ;;  %7651 = vmatpush3.bf16.msra.mxu0 %v8155_v23  ;;  %v5384_v8 = vpack.c.bf16 %v5368_v2, %v5368_v2  ;;  %v5386_v13 = vpack.c.bf16 %v5370_v3, %v5370_v3  ;;  %v8178_v14 = vld [vmem:[%s9448_s3 + $0x230] sm:$0xff]   ;;  %v8185_v21 = vld [vmem:[%s9448_s3 + $0x2e0] sm:$0xff]  }
0x12ca   : > { %v9225_v19 = vpop.f32.mrf.mxu1  ;;  %v5352_v20 = vpop.f32.mrf.mxu0  ;;  %7630 = vmatprep.subr.bf16.mxu1 %v8156_v17  ;;  %7652 = vmatprep.subr.bf16.mxu0 %v8157_v12  ;;  %v8179_v23 = vld [vmem:[%s9448_s3 + $0x2b0] sm:$0xff]   ;;  %v8182_v17 = vld [vmem:[%s9448_s3 + $0x228] sm:$0xff]   ;;  %v8186_v60 = vld [vmem:[%s9448_s3 + $0x220] sm:$0xff]  }
0x12cb   : > { %v9229_v30 = vadd.f32 %v5352_v20, %v4847_v18  ;;  %v8183_v12 = vld [vmem:[%s9448_s3 + $0x2a8] sm:$0xff]   ;;  %v8184_v18 = vld [vmem:[%s9448_s3 + $0x260] sm:$0xff]   ;;  %v8189_v20 = vld [vmem:[%s9448_s3 + $0x2d8] sm:$0xff]  }
0x12cc   : > { %v9231_v31 = vpop.f32.mrf.mxu1  ;;  %v9233_v32 = vpop.f32.mrf.mxu0  ;;  %v8210_v2 = vld [vmem:[%s9448_s3 + $0x330] sm:$0xff]  }
0x12cd   : > { %7631 = vmatpush3.bf16.msra.mxu1 %v8158_v61  ;;  %7653 = vmatpush3.bf16.msra.mxu0 %v8159_v22  ;;  %v8187_v61 = vld [vmem:[%s9448_s3 + $0x2a0] sm:$0xff]   ;;  %v8188_v22 = vld [vmem:[%s9448_s3 + $0x258] sm:$0xff]   ;;  %v5314_v42 = vadd.f32 %v9231_v31, %v4843_v45  ;;  %v5355_v10 = vadd.f32 %v9233_v32, %v4851_v46  ;;  %v8211_v3 = vld [vmem:[%s9448_s3 + $0x3b0] sm:$0xff]  }
0x12ce   : > { %v5315_v38 = vpop.f32.mrf.mxu1  ;;  %v5356_v39 = vpop.f32.mrf.mxu0  ;;  %7632 = vmatprep.subr.bf16.mxu1 %v8160_v53  ;;  %7654 = vmatprep.subr.bf16.mxu0 %v8161_v54  ;;  %v8190_v53 = vld [vmem:[%s9448_s3 + $0x218] sm:$0xff]  }
0x12cf   : > { %v8191_v54 = vld [vmem:[%s9448_s3 + $0x298] sm:$0xff]   ;;  %v8195_v38 = vld [vmem:[%s9448_s3 + $0x290] sm:$0xff]   ;;  %v8196_v39 = vld [vmem:[%s9448_s3 + $0x248] sm:$0xff]   ;;  %v5372_v57 = vmax.f32 %v5314_v42, 0.0  ;;  %v5374_v29 = vmax.f32 %v5355_v10, 0.0 }
0x12d0   : > { %v5316_v49 = vpop.f32.mrf.mxu1  ;;  %v5357_v50 = vpop.f32.mrf.mxu0  ;;  %v8206_v31 = vld [vmem:[%s9448_s3 + $0x338] sm:$0xff]  }
0x12d1   : > { %7633 = vmatpush3.bf16.msra.mxu1 %v8162_v34  ;;  %7655 = vmatpush3.bf16.msra.mxu0 %v8163_v35  ;;  %v8192_v34 = vld [vmem:[%s9448_s3 + $0x250] sm:$0xff]   ;;  %v5230_v49 = vadd.f32 %v9208_v36, %v4823_v58  ;;  %v8199_v50 = vld [vmem:[%s9448_s3 + $0x288] sm:$0xff]   ;;  %v8203_v36 = vld [vmem:[%s9448_s3 + $0x280] sm:$0xff]   ;;  %v5388_v0 = vpack.c.bf16 %v5372_v57, %v5372_v57  ;;  %v5373_v58 = vmax.f32 %v9229_v30, 0.0 }
0x12d2   : > { %7634 = vmatprep.subr.bf16.mxu1 %v8164_v43  ;;  %7656 = vmatprep.subr.bf16.mxu0 %v8165_v44  ;;  %v8193_v35 = vld [vmem:[%s9448_s3 + $0x2d0] sm:$0xff]   ;;  %v4831_v43 = vrot.slane %v9217_v52, %v8798_v26  ;;  %v8197_v44 = vld [vmem:[%s9448_s3 + $0x2c8] sm:$0xff]   ;;  %v8200_v26 = vld [vmem:[%s9448_s3 + $0x240] sm:$0xff]  }
0x12d3   : > { %v5367_v24 = vmax.f32 %v5230_v49, 0.0  ;;  %v8207_v32 = vld [vmem:[%s9448_s3 + $0x3b8] sm:$0xff]  }
0x12d5   : > { %7635 = vmatpush3.bf16.msra.mxu1 %v8166_v33  ;;  %7657 = vmatpush3.bf16.msra.mxu0 %v8167_v9  ;;  %v5271_v33 = vadd.f32 %v9210_v7, %v4831_v43  ;;  %v8201_v9 = vld [vmem:[%s9448_s3 + $0x2c0] sm:$0xff]   ;;  %v8205_v7 = vld [vmem:[%s9448_s3 + $0x3f8] sm:$0xff]  }
0x12d6   : > { %7636 = vmatprep.subr.bf16.mxu1 %v8168_v28  ;;  %7658 = vmatprep.subr.bf16.mxu0 %v8169_v56  ;;  %v8204_v28 = vld [vmem:[%s9448_s3 + $0x378] sm:$0xff]  }
0x12d7   : > { %v5369_v56 = vmax.f32 %v5271_v33, 0.0 }
0x12d9   : > { %7637 = vmatpush3.bf16.msra.mxu1 %v8170_v59  ;;  %7659 = vmatpush3.bf16.msra.mxu0 %v8171_v62  ;;  %v5383_v59 = vpack.c.bf16 %v5367_v24, %v5367_v24  ;;  %v5385_v62 = vpack.c.bf16 %v5369_v56, %v5369_v56 }
0x12da   : > { %7666 = vmatprep.subr.bf16.mxu1 %v8172_v40  ;;  %7688 = vmatprep.subr.bf16.mxu0 %v8173_v41  ;;  %v8209_v40 = vld [vmem:[%s9448_s3 + $0x3f0] sm:$0xff]   ;;  %v5390_v41 = vpack.c.bf16 %v5374_v29, %v5374_v29 }
0x12dc   : > { %6535 = vmatmul.mubr.bf16.vlgmr.msra.gmra.mxu1 %v5379_v5  ;;  %6575 = vmatmul.mubr.bf16.vlgmr.msra.gmra.mxu0 %v5381_v27  ;;  %v8213_v5 = vld [vmem:[%s9448_s3 + $0x3e8] sm:$0xff]  }
0x12dd   : > { %7667 = vmatpush3.bf16.msra.mxu1 %v8174_v4  ;;  %6614 = vmatprep.mubr.bf16.mxu1 %v5384_v8  ;;  %v8212_v4 = vld [vmem:[%s9448_s3 + $0x368] sm:$0xff]   ;;  %v8216_v8 = vld [vmem:[%s9448_s3 + $0x360] sm:$0xff]  }
0x12de   : > { %7689 = vmatpush3.bf16.msra.mxu0 %v8175_v6  ;;  %6654 = vmatprep.mubr.bf16.mxu0 %v5386_v13  ;;  %v8214_v27 = vld [vmem:[%s9448_s3 + $0x328] sm:$0xff]   ;;  %v8219_v13 = vld [vmem:[%s9448_s3 + $0x3a0] sm:$0xff]  }
0x12df   : > { %7668 = vmatprep.subr.bf16.mxu1 %v8176_v11  ;;  %7690 = vmatprep.subr.bf16.mxu0 %v8177_v48  ;;  %v8215_v6 = vld [vmem:[%s9448_s3 + $0x3a8] sm:$0xff]   ;;  %v8217_v11 = vld [vmem:[%s9448_s3 + $0x3e0] sm:$0xff]  }
0x12e0   : > { %v8218_v48 = vld [vmem:[%s9448_s3 + $0x320] sm:$0xff]  }
0x12e1   : > { %7669 = vmatpush3.bf16.msra.mxu1 %v8178_v14  ;;  %v8220_v14 = vld [vmem:[%s9448_s3 + $0x358] sm:$0xff]  }
0x12e2   : > { %7691 = vmatpush3.bf16.msra.mxu0 %v8179_v23  ;;  %7670 = vmatprep.subr.bf16.mxu1 %v8180_v15  ;;  %v8221_v23 = vld [vmem:[%s9448_s3 + $0x3d8] sm:$0xff]  }
0x12e3   : > { %7692 = vmatprep.subr.bf16.mxu0 %v8181_v16  ;;  %v8222_v15 = vld [vmem:[%s9448_s3 + $0x318] sm:$0xff]  }
0x12e4   : > { %v8223_v16 = vld [vmem:[%s9448_s3 + $0x398] sm:$0xff]  }
0x12e5   : > { %7671 = vmatpush3.bf16.msra.mxu1 %v8182_v17  ;;  %v8224_v17 = vld [vmem:[%s9448_s3 + $0x350] sm:$0xff]  }
0x12e6   : > { %7693 = vmatpush3.bf16.msra.mxu0 %v8183_v12  ;;  %7672 = vmatprep.subr.bf16.mxu1 %v8184_v18  ;;  %v8225_v12 = vld [vmem:[%s9448_s3 + $0x3d0] sm:$0xff]  }
0x12e7   : > { %7694 = vmatprep.subr.bf16.mxu0 %v8185_v21  ;;  %v8226_v18 = vld [vmem:[%s9448_s3 + $0x310] sm:$0xff]   ;;  %v4839_v21 = vrot.slane %v9217_v52, %v8862_v47  ;;  %v8234_v47 = vld [vmem:[%s9448_s3 + $0x300] sm:$0xff]  }
0x12e9   : > { %7673 = vmatpush3.bf16.msra.mxu1 %v8186_v60  ;;  %v8227_v60 = vld [vmem:[%s9448_s3 + $0x390] sm:$0xff]  }
0x12ea   : > { %7695 = vmatpush3.bf16.msra.mxu0 %v8187_v61  ;;  %7674 = vmatprep.subr.bf16.mxu1 %v8188_v22  ;;  %v8228_v61 = vld [vmem:[%s9448_s3 + $0x348] sm:$0xff]  }
0x12eb   : > { %7696 = vmatprep.subr.bf16.mxu0 %v8189_v20  ;;  %v8229_v22 = vld [vmem:[%s9448_s3 + $0x3c8] sm:$0xff]  }
0x12ec   : > { %v8230_v20 = vld [vmem:[%s9448_s3 + $0x308] sm:$0xff]  }
0x12ed   : > { %7675 = vmatpush3.bf16.msra.mxu1 %v8190_v53  ;;  %v5312_v53 = vadd.f32 %v9225_v19, %v4839_v21  ;;  %v5389_v19 = vpack.c.bf16 %v5373_v58, %v5373_v58 }
0x12ee   : > { %7697 = vmatpush3.bf16.msra.mxu0 %v8191_v54  ;;  %7676 = vmatprep.subr.bf16.mxu1 %v8192_v34  ;;  %v8231_v54 = vld [vmem:[%s9448_s3 + $0x388] sm:$0xff]   ;;  %v8232_v34 = vld [vmem:[%s9448_s3 + $0x340] sm:$0xff]  }
0x12ef   : > { %7698 = vmatprep.subr.bf16.mxu0 %v8193_v35  ;;  %v8233_v35 = vld [vmem:[%s9448_s3 + $0x3c0] sm:$0xff]   ;;  %v5371_v52 = vmax.f32 %v5312_v53, 0.0 }
0x12f1   : > { %7677 = vmatpush3.bf16.msra.mxu1 %v8194_v37  ;;  %v8235_v37 = vld [vmem:[%s9448_s3 + $0x380] sm:$0xff]   ;;  %s892_s3 = scalar_lea.vmem [#allocation2], %s891_s2 }
0x12f2   : > { %7699 = vmatpush3.bf16.msra.mxu0 %v8195_v38  ;;  %7678 = vmatprep.subr.bf16.mxu1 %v8196_v39  ;;  %v5387_v38 = vpack.c.bf16 %v5371_v52, %v5371_v52  ;;  %v6783_v52 = vld [vmem:[%s9426_s6 + $0x10] sm:$0xff]  ;;  %s6874_s5 = sshll.u32 %s892_s3, 4  ;;  %s6875_s5 = int_to_ptr.vmem [resolvable:$true] %s6874_s5 }
0x12f3   : > { %7700 = vmatprep.subr.bf16.mxu0 %v8197_v44  ;;  %v7212_v44 = vld [vmem:[%s9450_s23] ss:$0 sm:$0xff]  ;;  %s9451_s23 = sld [smem:[#allocation21_spill]]  ;;  %s8276_s9 = scalar_lea.vmem %s6875_s5, 16 }
0x12f4   : > { %p8277_p11 = scmp.ne.s32.totalorder %s6875_s5, %s8276_s9 }
0x12f5   : > { %7679 = vmatpush3.bf16.msra.mxu1 %v8198_v25 }
0x12f6   : > { %7701 = vmatpush3.bf16.msra.mxu0 %v8199_v50  ;;  %7680 = vmatprep.subr.bf16.mxu1 %v8200_v26  ;;  %p8278_p12 = pnand %p8277_p11, %p8572_p5 }
0x12f7   : > { %7702 = vmatprep.subr.bf16.mxu0 %v8201_v9 }
0x12f8   : > { %p8279_p13 = pneg %p8278_p12 }
0x12f9   : > { %7681 = vmatpush3.bf16.msra.mxu1 %v8202_v55 }
0x12fa   : > { %7703 = vmatpush3.bf16.msra.mxu0 %v8203_v36  ;;  %7710 = vmatprep.subr.bf16.mxu1 %v8204_v28 }
0x12fb   : > { %7732 = vmatprep.subr.bf16.mxu0 %v8205_v7 }
0x12fc   : > { %6615 = vmatmul.mubr.bf16.vlgmr.msra.gmra.mxu1 %v5383_v59 }
0x12fd   : > { %6655 = vmatmul.mubr.bf16.vlgmr.msra.gmra.mxu0 %v5385_v62  ;;  %7711 = vmatpush3.bf16.msra.mxu1 %v8206_v31 }
0x12fe   : > { %6694 = vmatprep.mubr.bf16.mxu1 %v5388_v0  ;;  %7733 = vmatpush3.bf16.msra.mxu0 %v8207_v32 }
0x12ff   : > { %6734 = vmatprep.mubr.bf16.mxu0 %v5390_v41  ;;  %7712 = vmatprep.subr.bf16.mxu1 %v8208_v63 }
0x1300   : > { %7734 = vmatprep.subr.bf16.mxu0 %v8209_v40 }
0x1301   : > { %7713 = vmatpush3.bf16.msra.mxu1 %v8210_v2 }
0x1302   : > { %7735 = vmatpush3.bf16.msra.mxu0 %v8211_v3  ;;  %7714 = vmatprep.subr.bf16.mxu1 %v8212_v4 }
0x1303   : > { %7736 = vmatprep.subr.bf16.mxu0 %v8213_v5 }
0x1305   : > { %7715 = vmatpush3.bf16.msra.mxu1 %v8214_v27 }
0x1306   : > { %7737 = vmatpush3.bf16.msra.mxu0 %v8215_v6  ;;  %7716 = vmatprep.subr.bf16.mxu1 %v8216_v8 }
0x1307   : > { %7738 = vmatprep.subr.bf16.mxu0 %v8217_v11 }
0x1309   : > { %7717 = vmatpush3.bf16.msra.mxu1 %v8218_v48 }
0x130a   : > { %7739 = vmatpush3.bf16.msra.mxu0 %v8219_v13  ;;  %7718 = vmatprep.subr.bf16.mxu1 %v8220_v14 }
0x130b   : > { %7740 = vmatprep.subr.bf16.mxu0 %v8221_v23 }
0x130d   : > { %7719 = vmatpush3.bf16.msra.mxu1 %v8222_v15 }
0x130e   : > { %7741 = vmatpush3.bf16.msra.mxu0 %v8223_v16  ;;  %7720 = vmatprep.subr.bf16.mxu1 %v8224_v17 }
0x130f   : > { %7742 = vmatprep.subr.bf16.mxu0 %v8225_v12 }
0x1311   : > { %7721 = vmatpush3.bf16.msra.mxu1 %v8226_v18 }
0x1312   : > { %7743 = vmatpush3.bf16.msra.mxu0 %v8227_v60  ;;  %7722 = vmatprep.subr.bf16.mxu1 %v8228_v61 }
0x1313   : > { %7744 = vmatprep.subr.bf16.mxu0 %v8229_v22 }
0x1315   : > { %7723 = vmatpush3.bf16.msra.mxu1 %v8230_v20 }
0x1316   : > { %7745 = vmatpush3.bf16.msra.mxu0 %v8231_v54  ;;  %7724 = vmatprep.subr.bf16.mxu1 %v8232_v34 }
0x1317   : > { %7746 = vmatprep.subr.bf16.mxu0 %v8233_v35 }
0x1319   : > { %7725 = vmatpush3.bf16.msra.mxu1 %v8234_v47  ;;  %v6784_v47 = vld [vmem:[%s9426_s6 + $0x18] sm:$0xff] }
0x131a   : > { %7747 = vmatpush3.bf16.msra.mxu0 %v8235_v37  ;;  %7890 = vmatprep.subr.mxu1 %v8367_v1  ;;  %v6782_v37 = vld [vmem:[%s9426_s6 + $0x8] sm:$0xff] }
0x131c   : > { %6695 = vmatmul.mubr.bf16.vlgmr.msra.gmra.mxu1 %v5387_v38 }
0x131d   : > { %6735 = vmatmul.mubr.bf16.vlgmr.msra.gmra.mxu0 %v5389_v19  ;;  %7898 = vmatprep.mubr.msk.f32.mxu1 %vm8368_vm0, %v8367_v1 }
0x131e   : > { %7891 = vmatpush3.msra.mxu1 %v6784_v47 }
0x131f   : > { %7892 = vmatprep.subr.mxu1 %v8367_v1 }
0x1320   : > { %7893 = vmatpush3.msra.mxu1 %v6783_v52 }
0x1321   : > { %7894 = vmatprep.subr.mxu1 %v8367_v1 }
0x1322   : > { %7895 = vmatpush3.msra.mxu1 %v6782_v37 }
0x1323   : > { %7896 = vmatprep.subr.mxu1 %v8367_v1 }
0x137c   : > { %v7594_v39 = vpop.f32.mrf.mxu1  ;;  %v7616_v43 = vpop.f32.mrf.mxu0 }
0x137e   : > { %v7595_v45 = vpop.f32.mrf.mxu1  ;;  %v7617_v46 = vpop.f32.mrf.mxu0 }
0x137f   : > { %v7596_v25 = vadd.f32 %v7595_v45, %v7594_v39  ;;  %v7618_v49 = vadd.f32 %v7617_v46, %v7616_v43  ;;  %v7341_v43 = vld [vmem:[%s9451_s23] ss:$0 sm:$0xff]  ;;  %s7344_s23 = sshll.u32 %s8555_s0, 4 }
0x1380   : > { %v7597_v30 = vpop.f32.mrf.mxu1  ;;  %v7619_v50 = vpop.f32.mrf.mxu0  ;;  %v7342_v45 = vld [vmem:[%s9452_s12] ss:$0 sm:$0xff]  ;;  %s8378_s12 = smov [#allocation2]  }
0x1381   : > { %v6457_v26 = vadd.f32 %v7596_v25, %v7212_v44  ;;  %s8280_s13 = sshll.u32 %s8378_s12, 4  ;;  %s8281_s13 = int_to_ptr.vmem [resolvable:$false] %s8280_s13 }
0x1382   : > { %v7598_v33 = vpop.f32.mrf.mxu1  ;;  %v7620_v9 = vpop.f32.mrf.mxu0  ;;  %s8282_s0 = scalar_lea.vmem %s8281_s13, 32  ;;  %p8283_p0 = scmp.lt.s32.totalorder %s6875_s5, %s8281_s13 }
0x1383   : > { %v6497_v42 = vadd.f32 %v7618_v49, %v6457_v26  ;;  %p8284_p1 = scmp.lt.s32.totalorder %s8282_s0, %s8276_s9 }
0x1385   : > { %p8285_p2 = por %p8284_p1, %p8283_p0 }
0x1387   : > { %p8286_p3 = pnand %p8285_p2, %p8279_p13 }
0x139c   : > { %v7638_v10 = vpop.f32.mrf.mxu1  ;;  %v7660_v55 = vpop.f32.mrf.mxu0 }
0x139e   : > { %v7639_v24 = vpop.f32.mrf.mxu1  ;;  %v7661_v36 = vpop.f32.mrf.mxu0 }
0x139f   : > { %v7640_v41 = vadd.f32 %v7639_v24, %v7638_v10  ;;  %v7662_v3 = vadd.f32 %v7661_v36, %v7660_v55  ;;  %v6785_v10 = vld [vmem:[%s8527_s27] sm:$0x1] }
0x13a0   : > { %v7641_v28 = vpop.f32.mrf.mxu1  ;;  %v7663_v56 = vpop.f32.mrf.mxu0 }
0x13a1   : > { %v6537_v2 = vadd.f32 %v7640_v41, %v6497_v42 }
0x13a2   : > { %v7642_v7 = vpop.f32.mrf.mxu1  ;;  %v7664_v57 = vpop.f32.mrf.mxu0 }
0x13a3   : > { %v6577_v5 = vadd.f32 %v7662_v3, %v6537_v2 }
0x13bc   : > { %v7682_v29 = vpop.f32.mrf.mxu1 }
0x13bd   : > { %v7704_v31 = vpop.f32.mrf.mxu0 }
0x13be   : > { %v7683_v59 = vpop.f32.mrf.mxu1 }
0x13bf   : > { %v7705_v32 = vpop.f32.mrf.mxu0  ;;  %v7684_v4 = vadd.f32 %v7683_v59, %v7682_v29 }
0x13c0   : > { %v7685_v62 = vpop.f32.mrf.mxu1  ;;  %v7706_v8 = vadd.f32 %v7705_v32, %v7704_v31 }
0x13c1   : > { %v7707_v63 = vpop.f32.mrf.mxu0  ;;  %v6617_v27 = vadd.f32 %v7684_v4, %v6577_v5 }
0x13c2   : > { %v7686_v0 = vpop.f32.mrf.mxu1 }
0x13c3   : > { %v7708_v40 = vpop.f32.mrf.mxu0  ;;  %v6657_v13 = vadd.f32 %v7706_v8, %v6617_v27 }
0x13dc   : > { %v7726_v6 = vpop.f32.mrf.mxu1 }
0x13dd   : > { %v7748_v11 = vpop.f32.mrf.mxu0 }
0x13de   : > { %v7727_v48 = vpop.f32.mrf.mxu1 }
0x13df   : > { %v7728_v14 = vadd.f32 %v7727_v48, %v7726_v6  ;;  %v7749_v23 = vpop.f32.mrf.mxu0 }
0x13e0   : > { %v7729_v15 = vpop.f32.mrf.mxu1  ;;  %v7750_v17 = vadd.f32 %v7749_v23, %v7748_v11 }
0x13e1   : > { %v6697_v16 = vadd.f32 %v7728_v14, %v6657_v13  ;;  %v7751_v12 = vpop.f32.mrf.mxu0 }
0x13e2   : > { %v7730_v18 = vpop.f32.mrf.mxu1 }
0x13e3   : > { %v6737_v21 = vadd.f32 %v7750_v17, %v6697_v16  ;;  %v7752_v60 = vpop.f32.mrf.mxu0 }
0x13e5   : > { %v6742_v61 = vadd.f32 %v6737_v21, %v9101_v51  ;;  %v6781_v51 = vld [vmem:[%s9426_s6] sm:$0xff]  ;;  %s9357_s6 = scalar_lea.hbm %s8532_s4, %s7344_s23 }
0x13e6   : > { %7897 = vmatpush3.msra.mxu1 %v6781_v51 }
0x13e7   : > { %v6745_v22 = vsel %vm993_vm2, %v6742_v61, 0.0 }
0x13e8   : > { %6746 = vadd.xlane.f32.xlu0 %v6745_v22 }
0x1471   : > { %v6747_v20 = vpop.xlane.xlu0 %6746 }
0x1472   : > { %v6748_v53 = vmul.f32 0.03125, %v6747_v20 }
0x1474   : > { %v6749_v54 = vsub.f32 %v6742_v61, %v6748_v53 }
0x1476   : > { %v6750_v34 = vmul.f32 %v6749_v54, %v6749_v54 }
0x1478   : > { %v6751_v35 = vsel %vm993_vm2, %v6750_v34, 0.0 }
0x1479   : > { %6752 = vadd.xlane.f32.xlu0 %v6751_v35 }
0x1502   : > { %v6753_v58 = vpop.xlane.xlu0 %6752 }
0x1503   : > { %v6754_v38 = vmul.f32 0.03125, %v6753_v58 }
0x1505   : > { %v6755_v19 = vadd.f32 1e-05, %v6754_v38 }
0x1507   : > { %8274 = vrsqrt.f32 %v6755_v19 }
0x1514   : > { %v8275_v39 = vpop.eup %8274 }
0x1515   : > { %v6757_v44 = vmul.f32 %v8275_v39, %v6749_v54 }
0x1517   : > { %v6764_v46 = vmul.f32 %v7341_v43, %v6757_v44 }
0x1519   : > { %v6771_v25 = vadd.f32 %v7342_v45, %v6764_v46 }
0x151b   : > { %v6772_v49 = vsel %vm993_vm2, %v6771_v25, 0.0 }
0x151c   : > { %v6773_v30 = vrot.slane %v6772_v49, 4 }
0x151e   : > { %v6774_v50 = vadd.f32 %v6773_v30, %v6772_v49 }
0x1520   : > { %v6775_v1 = vrot.slane %v6774_v50, 2 }
0x1522   : > { %v6776_v26 = vadd.f32 %v6775_v1, %v6774_v50 }
0x1524   : > { %v6777_v33 = vrot.slane %v6776_v26, 1 }
0x1526   : > { %v6778_v9 = vadd.f32 %v6777_v33, %v6776_v26 }
0x1528   : > { %v6780_v42 = vmul.f32 0.125, %v6778_v9 }
0x152a   : > { %7899 = vmatmul.mubr.msk.f32.vlgmr.msra.gmra.mxu1 %vm993_vm2, %v6780_v42 }
0x15ea   : > { %v6855_v55 = vpop.f32.mrf.mxu1 }
0x15eb   : > { %v6856_v24 = vadd.f32 %v6855_v55, %v6785_v10 }
0x15ec   : > { %v7900_v36 = vpop.f32.mrf.mxu1 }
0x15ed   : > { %6860 = vst.msk [vmem:[%s892_s3] sm:$0x1] %vm6859_vm5, %v6856_v24 }
0x15ee   : > { %8289 = shalt.err (!%p8286_p3)
}
0x15ef   : > { %s8290_s3 = scalar_lea.hbm %s9357_s6, 16  ;;  %s8294_s2 = scalar_lea.hbm %s8532_s4, 32 }
0x15f0   : > { %p8291_p4 = scmp.ne.s32.totalorder %s9357_s6, %s8290_s3  ;;  %p8295_p9 = scmp.lt.s32.totalorder %s9357_s6, %s8532_s4 }
0x15f1   : > { %p8296_p10 = scmp.lt.s32.totalorder %s8294_s2, %s8290_s3 }
0x15f2   : > { %p8292_p7 = pnand %p8291_p4, %p8572_p5 }
0x15f3   : > { %p8297_p11 = por %p8296_p10, %p8295_p9 }
0x15f4   : > { %p8293_p8 = pneg %p8292_p7 }
0x15f6   : > { %p8298_p12 = pnand %p8297_p11, %p8293_p8 }
0x15f8   : > { %8301 = shalt.err (!%p8298_p12)
}
0x15f9   : > { %7901 = dma.vmem_to_hbm [thread:$0]  (%p8572_p5), %s6875_s5, 16, %s9357_s6, %s6862_s8  }
0x15fa PF: > { %p7907_p13 = scmp.ge.s32.totalorder %s8336_s15, 2  ;;  %s6886_s9 = sand.u32 1, %s8324_s7  }
0x15fb   : > { %s6887_s13 = scalar_lea.sflag [#allocation3], %s6886_s9 }
0x15fc   : > { %p7904_p0 = pnand %p7907_p13, %p8576_p6 }
0x15fe   : > { %p7905_p1 = pneg %p7904_p0 }
0x1600   : > { %8319 = dma.done.wait (%p7905_p1), %s6887_s13, 16  }
0x1601   : > { %8321 = vsyncadd (%p7905_p1), %s6887_s13, 4294967280  ;;  %p69_p2 = scmp.ge.s32.totalorder %s8559_s18, 4   ;;  %s9453_s7 = smov %s8328_s10 }
0x1602   : > { %s9454_s10 = smov %s8332_s11  ;;  %s9455_s11 = smov %s8570_s26 }
0x1603   : > { %s9456_s15 = smov %s8559_s18  ;;  %71 = sbr.rel (!%p69_p2) target bundleno = 56 (0x38), region = 200 }
0x1608   :  { %6891 = vsyncpa [#allocation3], 1 }
0x1609   :  { %6893 = vsyncpa [#allocation3 + $0x1], 1 }

</bundles_post_ra>
